<compile_context>
chip_gen: v7x
topology: tpu7x:2x2x1
jax: 0.10.0
libtpu: 0.0.40
codegen_flags: <defaults>
</compile_context>

<pallas_src>
import functools
import math

import jax
import jax.numpy as jnp
from jax.experimental import pallas as pl
from jax.experimental.pallas import tpu as pltpu

_EPS = 1e-12  # LayerNorm eps (matches the reference AddNorm/LayerNorm default)


# ------------------------- Fused decoder-stack kernel ----------------------- #

def _decoder_stack_kernel(dec_ref, enc_ref, tmask_ref, smask_ref,
                          wqkv_s_ref, bqkv_s_ref, wo_s_ref, bo_s_ref,
                          wq_c_ref, bq_c_ref, wkv_c_ref, bkv_c_ref,
                          wo_c_ref, bo_c_ref,
                          w1_ref, b1_ref, w2_ref, b2_ref,
                          ln_g_ref, ln_b_ref,
                          out_ref, self_aw_ref, cross_aw_ref,
                          x_scr,
                          *, num_heads, eps):
    f32 = jnp.float32
    layer = pl.program_id(0)

    B, Sq, D = dec_ref.shape
    Sk = enc_ref.shape[1]
    H = num_heads
    hd = D // H
    scale = 1.0 / math.sqrt(hd)

    # Load this layer's input activation: from HBM input at layer 0, otherwise
    # from the VMEM carry (no HBM round-trip between layers).
    @pl.when(layer == 0)
    def _():
        x_scr[...] = dec_ref[...].astype(f32).reshape(B * Sq, D)

    x = x_scr[...]                                         # (B*Sq, D)
    enc2d = enc_ref[...].astype(f32).reshape(B * Sk, D)    # (B*Sk, D)

    def layer_norm(z, idx):
        mean = jnp.mean(z, axis=-1, keepdims=True)
        var = jnp.mean((z - mean) ** 2, axis=-1, keepdims=True)   # unbiased=False
        zn = (z - mean) * jax.lax.rsqrt(var + eps)                # EUP rsqrt
        return ln_g_ref[0, idx:idx + 1, :] * zn + ln_b_ref[0, idx:idx + 1, :]

    def attention(q_rows, kv_rows, q_base, k_base, v_base, s_kv,
                  mask_add, wo_ref, bo_ref, aw_ref):
        """Multi-head attention.  Heads are 2-D lane slices of the projected
        rows; the head merge is folded into the output projection by
        accumulating ctx_h @ Wo[h*hd:(h+1)*hd, :] (no stack / concat / merge
        scratch).  Attention weights are written one contiguous (B,Sq,s_kv)
        slab per head."""
        q3 = q_rows.reshape(B, Sq, q_rows.shape[-1])
        kv3 = kv_rows.reshape(B, s_kv, kv_rows.shape[-1])
        proj = jnp.zeros((B * Sq, D), f32)
        for h in range(H):
            qh = q3[:, :, q_base + h * hd: q_base + (h + 1) * hd]   # (B,Sq,hd)
            kh = kv3[:, :, k_base + h * hd: k_base + (h + 1) * hd]  # (B,Skv,hd)
            vh = kv3[:, :, v_base + h * hd: v_base + (h + 1) * hd]  # (B,Skv,hd)
            s = jnp.einsum('bqd,bkd->bqk', qh, kh,
                           preferred_element_type=f32) * scale
            s = s + mask_add                                        # additive mask
            s = s - jnp.max(s, axis=-1, keepdims=True)
            e = jnp.exp(s)
            attn = e / jnp.sum(e, axis=-1, keepdims=True)           # exact softmax
            aw_ref[0, h] = attn                                     # (B,Sq,s_kv)
            ctx = jnp.einsum('bqk,bkd->bqd', attn, vh,
                             preferred_element_type=f32).reshape(B * Sq, hd)
            # Head merge folded into the output projection (accumulate).
            proj = proj + jnp.dot(ctx, wo_ref[0, h * hd:(h + 1) * hd, :],
                                  preferred_element_type=f32)
        return proj + bo_ref[0]

    # ---- masked self-attention (fused QKV projection) + Add&Norm ----------- #
    qkv = jnp.dot(x, wqkv_s_ref[0], preferred_element_type=f32) + bqkv_s_ref[0]
    self_out = attention(qkv, qkv, 0, D, 2 * D, Sq, tmask_ref[...],
                         wo_s_ref, bo_s_ref, self_aw_ref)
    out1 = layer_norm(x + self_out, 0)

    # ---- cross-attention (fused KV projection) + Add&Norm ------------------ #
    q_c = jnp.dot(out1, wq_c_ref[0], preferred_element_type=f32) + bq_c_ref[0]
    kv_c = jnp.dot(enc2d, wkv_c_ref[0], preferred_element_type=f32) + bkv_c_ref[0]
    cross_out = attention(q_c, kv_c, 0, 0, D, Sk, smask_ref[...],
                          wo_c_ref, bo_c_ref, cross_aw_ref)
    out2 = layer_norm(out1 + cross_out, 1)

    # ---- position-wise FFN + Add&Norm -------------------------------------- #
    h1 = jnp.dot(out2, w1_ref[0], preferred_element_type=f32) + b1_ref[0]
    h1 = jnp.maximum(h1, f32(0.0))
    ff = jnp.dot(h1, w2_ref[0], preferred_element_type=f32) + b2_ref[0]
    out3 = layer_norm(out2 + ff, 2)

    # Carry to next layer (VMEM) and expose final-layer result.
    x_scr[...] = out3
    out_ref[...] = out3.reshape(B, Sq, D)


# --------------------------------- Wrapper ---------------------------------- #

def _stacked_spec(shape):
    """BlockSpec for per-layer-stacked params: block (1, ...) indexed by layer."""
    nd = len(shape)
    return pl.BlockSpec((1,) + tuple(shape[1:]),
                        lambda l, _n=nd: (l,) + (0,) * (_n - 1))


def _const_spec(shape):
    """BlockSpec for an array that is constant across the layer grid."""
    nd = len(shape)
    return pl.BlockSpec(tuple(shape), lambda l, _n=nd: (0,) * _n)


@functools.partial(jax.jit, static_argnames=("num_heads",))
def _decoder_stack(dec_inputs, enc_outputs, params, tgt_add, src_add, *, num_heads):
    B, Sq, D = dec_inputs.shape
    Sk = enc_outputs.shape[1]
    H = num_heads
    L = params["wqkv_s"].shape[0]
    d_ff = params["w1"].shape[-1]

    kernel = functools.partial(_decoder_stack_kernel, num_heads=H, eps=_EPS)

    out, self_aw, cross_aw = pl.pallas_call(
        kernel,
        out_shape=(jax.ShapeDtypeStruct((B, Sq, D), jnp.float32),
                   jax.ShapeDtypeStruct((L, H, B, Sq, Sq), jnp.float32),
                   jax.ShapeDtypeStruct((L, H, B, Sq, Sk), jnp.float32)),
        grid=(L,),
        in_specs=[
            _const_spec((B, Sq, D)),                 # decoder input (layer 0)
            _const_spec((B, Sk, D)),                 # encoder outputs
            _const_spec((B, Sq, Sq)),                # tgt additive mask
            _const_spec((B, Sq, Sk)),                # src additive mask
            _stacked_spec((L, D, 3 * D)), _stacked_spec((L, 1, 3 * D)),  # self QKV
            _stacked_spec((L, D, D)), _stacked_spec((L, 1, D)),          # self out
            _stacked_spec((L, D, D)), _stacked_spec((L, 1, D)),          # cross Q
            _stacked_spec((L, D, 2 * D)), _stacked_spec((L, 1, 2 * D)),  # cross KV
            _stacked_spec((L, D, D)), _stacked_spec((L, 1, D)),          # cross out
            _stacked_spec((L, D, d_ff)), _stacked_spec((L, 1, d_ff)),    # FFN w1
            _stacked_spec((L, d_ff, D)), _stacked_spec((L, 1, D)),       # FFN w2
            _stacked_spec((L, 3, D)), _stacked_spec((L, 3, D)),          # LN g/b
        ],
        out_specs=(
            _const_spec((B, Sq, D)),                 # final activation (resident)
            _stacked_spec((L, H, B, Sq, Sq)),        # self-attn weights, head-major
            _stacked_spec((L, H, B, Sq, Sk)),        # cross-attn weights, head-major
        ),
        scratch_shapes=[pltpu.VMEM((B * Sq, D), jnp.float32)],  # activation carry
        compiler_params=pltpu.CompilerParams(
            dimension_semantics=("arbitrary",),      # layers are sequential
            vmem_limit_bytes=64 * 1024 * 1024),
    )(dec_inputs, enc_outputs, tgt_add, src_add,
      params["wqkv_s"], params["bqkv_s"], params["wo_s"], params["bo_s"],
      params["wq_c"], params["bq_c"], params["wkv_c"], params["bkv_c"],
      params["wo_c"], params["bo_c"],
      params["w1"], params["b1"], params["w2"], params["b2"],
      params["ln_g"], params["ln_b"])

    # (L, H, B, Sq, Sk) -> (L, B, H, Sq, Sk) to match PyTorch attn_weights layout.
    self_aw = jnp.transpose(self_aw, (0, 2, 1, 3, 4))
    cross_aw = jnp.transpose(cross_aw, (0, 2, 1, 3, 4))
    return out, self_aw, cross_aw


def _additive_mask(mask, shape):
    """0 where kept, -1e9 where mask == 0 (built once, reused by all layers)."""
    if mask is None:
        return jnp.zeros(shape, jnp.float32)
    return jnp.where(mask == 0, jnp.float32(-1e9), jnp.float32(0.0))


def decoder_forward(dec_inputs, enc_outputs, params, src_mask=None, tgt_mask=None,
                    *, num_heads):
    """Mirrors Decoder.forward: (out, dec_attn_weights list, dec_enc_attn list)."""
    B, Sq, _ = dec_inputs.shape
    Sk = enc_outputs.shape[1]
    tgt_add = _additive_mask(tgt_mask, (B, Sq, Sq))
    src_add = _additive_mask(src_mask, (B, Sq, Sk))
    out, self_aw, cross_aw = _decoder_stack(
        dec_inputs, enc_outputs, params, tgt_add, src_add, num_heads=num_heads)
    L = self_aw.shape[0]
    return out, [self_aw[l] for l in range(L)], [cross_aw[l] for l in range(L)]


# --------------------------- Deterministic params --------------------------- #

def _init_linear(key, fan_in, fan_out):
    kw, kb = jax.random.split(key)
    bound = 1.0 / math.sqrt(fan_in)
    w = jax.random.uniform(kw, (fan_in, fan_out), jnp.float32, -bound, bound)
    b = jax.random.uniform(kb, (1, fan_out), jnp.float32, -bound, bound)
    return w, b


def _init_layer(key, d_model, d_ff):
    ks = jax.random.split(key, 10)
    wq_s, bq_s = _init_linear(ks[0], d_model, d_model)
    wk_s, bk_s = _init_linear(ks[1], d_model, d_model)
    wv_s, bv_s = _init_linear(ks[2], d_model, d_model)
    wo_s, bo_s = _init_linear(ks[3], d_model, d_model)
    wq_c, bq_c = _init_linear(ks[4], d_model, d_model)
    wk_c, bk_c = _init_linear(ks[5], d_model, d_model)
    wv_c, bv_c = _init_linear(ks[6], d_model, d_model)
    wo_c, bo_c = _init_linear(ks[7], d_model, d_model)
    w1, b1 = _init_linear(ks[8], d_model, d_ff)
    w2, b2 = _init_linear(ks[9], d_ff, d_model)
    ones = jnp.ones((1, d_model), jnp.float32)
    zeros = jnp.zeros((1, d_model), jnp.float32)
    return dict(
        wqkv_s=jnp.concatenate([wq_s, wk_s, wv_s], axis=1),
        bqkv_s=jnp.concatenate([bq_s, bk_s, bv_s], axis=1),
        wo_s=wo_s, bo_s=bo_s,
        wq_c=wq_c, bq_c=bq_c,
        wkv_c=jnp.concatenate([wk_c, wv_c], axis=1),
        bkv_c=jnp.concatenate([bk_c, bv_c], axis=1),
        wo_c=wo_c, bo_c=bo_c,
        w1=w1, b1=b1, w2=w2, b2=b2,
        ln_g=jnp.concatenate([ones, ones, ones], axis=0),
        ln_b=jnp.concatenate([zeros, zeros, zeros], axis=0),
    )


def init_decoder_params(key, d_model, d_ff, n_layers):
    """Per-layer params stacked along a leading layer axis (for the fused kernel)."""
    layers = [_init_layer(jax.random.fold_in(key, i), d_model, d_ff)
              for i in range(n_layers)]
    return {k: jnp.stack([lp[k] for lp in layers], axis=0) for k in layers[0]}


# ------------------------------ Pure-JAX reference -------------------------- #

def _reference_decoder(dec_inputs, enc_outputs, params, tgt_add, src_add,
                       num_heads, eps=_EPS):
    D = dec_inputs.shape[-1]
    H = num_heads
    hd = D // H
    L = params["wqkv_s"].shape[0]

    def ln(z, g, b):
        mean = z.mean(-1, keepdims=True)
        var = ((z - mean) ** 2).mean(-1, keepdims=True)
        return g * (z - mean) / jnp.sqrt(var + eps) + b

    def mha(q_in, kv_in, wq, bq, wk, bk, wv, bv, wo, bo, mask_add):
        B, Sq, _ = q_in.shape
        Sk = kv_in.shape[1]
        split = lambda t, S: t.reshape(B, S, H, hd).transpose(0, 2, 1, 3)
        q = split(q_in @ wq + bq, Sq)
        k = split(kv_in @ wk + bk, Sk)
        v = split(kv_in @ wv + bv, Sk)
        s = jnp.einsum('bhqd,bhkd->bhqk', q, k) / math.sqrt(hd) + mask_add[:, None]
        a = jax.nn.softmax(s, axis=-1)
        ctx = jnp.einsum('bhqk,bhkd->bhqd', a, v).transpose(0, 2, 1, 3).reshape(B, Sq, D)
        return ctx @ wo + bo, a

    out = dec_inputs
    self_ws, cross_ws = [], []
    for l in range(L):
        wqkv, bqkv = params["wqkv_s"][l], params["bqkv_s"][l]
        so, sw = mha(out, out,
                     wqkv[:, :D], bqkv[:, :D],
                     wqkv[:, D:2 * D], bqkv[:, D:2 * D],
                     wqkv[:, 2 * D:], bqkv[:, 2 * D:],
                     params["wo_s"][l], params["bo_s"][l], tgt_add)
        out1 = ln(out + so, params["ln_g"][l, 0], params["ln_b"][l, 0])
        wkv, bkv = params["wkv_c"][l], params["bkv_c"][l]
        co, cw = mha(out1, enc_outputs,
                     params["wq_c"][l], params["bq_c"][l],
                     wkv[:, :D], bkv[:, :D], wkv[:, D:], bkv[:, D:],
                     params["wo_c"][l], params["bo_c"][l], src_add)
        out2 = ln(out1 + co, params["ln_g"][l, 1], params["ln_b"][l, 1])
        h1 = jax.nn.relu(out2 @ params["w1"][l] + params["b1"][l])
        ff = h1 @ params["w2"][l] + params["b2"][l]
        out = ln(out2 + ff, params["ln_g"][l, 2], params["ln_b"][l, 2])
        self_ws.append(sw)
        cross_ws.append(cw)
    return out, self_ws, cross_ws


# ----------------------------------- Main ----------------------------------- #

if __name__ == "__main__":
    d_model, num_heads, n_layers, d_ff = 32, 4, 2, 64
    B, S_dec, S_enc = 2, 8, 8

    key = jax.random.PRNGKey(0)
    k_params, k_dec, k_enc = jax.random.split(key, 3)

    params = init_decoder_params(k_params, d_model, d_ff, n_layers)
    dec_inputs = jax.random.normal(k_dec, (B, S_dec, d_model), jnp.float32)
    enc_outputs = jax.random.normal(k_enc, (B, S_enc, d_model), jnp.float32)

    # tgt_mask: causal (lower-triangular); src_mask: all ones (no masking)
    tgt_mask = jnp.tril(jnp.ones((S_dec, S_dec), jnp.float32))[None].repeat(B, axis=0)
    src_mask = jnp.ones((B, S_dec, S_enc), jnp.float32)

    out, dec_attn_ws, dec_enc_attn_ws = decoder_forward(
        dec_inputs, enc_outputs, params, src_mask, tgt_mask, num_heads=num_heads)

    jax.block_until_ready(out)
    for a in dec_attn_ws + dec_enc_attn_ws:
        jax.block_until_ready(a)

    # Shape / sanity checks.
    assert out.shape == (B, S_dec, d_model)
    assert len(dec_attn_ws) == n_layers and len(dec_enc_attn_ws) == n_layers
    assert dec_attn_ws[0].shape == (B, num_heads, S_dec, S_dec)
    assert dec_enc_attn_ws[0].shape == (B, num_heads, S_dec, S_enc)
    assert bool(jnp.all(jnp.isfinite(out)))
    assert bool(jnp.allclose(jnp.sum(dec_attn_ws[0], axis=-1), 1.0, atol=1e-3))

    # Numerical check against a pure-JAX reference of the PyTorch forward pass.
    tgt_add = _additive_mask(tgt_mask, (B, S_dec, S_dec))
    src_add = _additive_mask(src_mask, (B, S_dec, S_enc))
    ref_out, ref_sw, ref_cw = _reference_decoder(
        dec_inputs, enc_outputs, params, tgt_add, src_add, num_heads)
    assert bool(jnp.allclose(out, ref_out, atol=2e-2, rtol=2e-2))
    for a, r in zip(dec_attn_ws, ref_sw):
        assert bool(jnp.allclose(a, r, atol=2e-2, rtol=2e-2))
    for a, r in zip(dec_enc_attn_ws, ref_cw):
        assert bool(jnp.allclose(a, r, atol=2e-2, rtol=2e-2))

    print("KERNEL_OK")
</pallas_src>

<mosaic_0001>
module attributes {stable_mosaic.version = 11 : i64} {
  func.func @_decoder_stack_kernel(%arg0: i32, %arg1: memref<2x8x32xf32, #tpu.memory_space<vmem>>, %arg2: memref<2x8x32xf32, #tpu.memory_space<vmem>>, %arg3: memref<2x8x8xf32, #tpu.memory_space<vmem>>, %arg4: memref<2x8x8xf32, #tpu.memory_space<vmem>>, %arg5: memref<1x32x96xf32, #tpu.memory_space<vmem>>, %arg6: memref<1x1x96xf32, #tpu.memory_space<vmem>>, %arg7: memref<1x32x32xf32, #tpu.memory_space<vmem>>, %arg8: memref<1x1x32xf32, #tpu.memory_space<vmem>>, %arg9: memref<1x32x32xf32, #tpu.memory_space<vmem>>, %arg10: memref<1x1x32xf32, #tpu.memory_space<vmem>>, %arg11: memref<1x32x64xf32, #tpu.memory_space<vmem>>, %arg12: memref<1x1x64xf32, #tpu.memory_space<vmem>>, %arg13: memref<1x32x32xf32, #tpu.memory_space<vmem>>, %arg14: memref<1x1x32xf32, #tpu.memory_space<vmem>>, %arg15: memref<1x32x64xf32, #tpu.memory_space<vmem>>, %arg16: memref<1x1x64xf32, #tpu.memory_space<vmem>>, %arg17: memref<1x64x32xf32, #tpu.memory_space<vmem>>, %arg18: memref<1x1x32xf32, #tpu.memory_space<vmem>>, %arg19: memref<1x3x32xf32, #tpu.memory_space<vmem>>, %arg20: memref<1x3x32xf32, #tpu.memory_space<vmem>>, %arg21: memref<2x8x32xf32, #tpu.memory_space<vmem>>, %arg22: memref<1x4x2x8x8xf32, #tpu.memory_space<vmem>>, %arg23: memref<1x4x2x8x8xf32, #tpu.memory_space<vmem>>, %arg24: memref<16x32xf32, #tpu.memory_space<vmem>>) attributes {dimension_semantics = [#tpu.dimension_semantics<arbitrary>], iteration_bounds = array<i64: 2>, scalar_prefetch = 0 : i64, scratch_operands = 1 : i64, tpu.core_type = #tpu.core_type<tc>, window_params = [{pipeline_mode = #tpu.pipeline_mode<synchronous>, transform_indices = @transform_0, window_bounds = array<i64: 2, 8, 32>}, {pipeline_mode = #tpu.pipeline_mode<synchronous>, transform_indices = @transform_1, window_bounds = array<i64: 2, 8, 32>}, {pipeline_mode = #tpu.pipeline_mode<synchronous>, transform_indices = @transform_2, window_bounds = array<i64: 2, 8, 8>}, {pipeline_mode = #tpu.pipeline_mode<synchronous>, transform_indices = @transform_3, window_bounds = array<i64: 2, 8, 8>}, {transform_indices = @transform_4, window_bounds = array<i64: 1, 32, 96>}, {transform_indices = @transform_5, window_bounds = array<i64: 1, 1, 96>}, {transform_indices = @transform_6, window_bounds = array<i64: 1, 32, 32>}, {transform_indices = @transform_7, window_bounds = array<i64: 1, 1, 32>}, {transform_indices = @transform_8, window_bounds = array<i64: 1, 32, 32>}, {transform_indices = @transform_9, window_bounds = array<i64: 1, 1, 32>}, {transform_indices = @transform_10, window_bounds = array<i64: 1, 32, 64>}, {transform_indices = @transform_11, window_bounds = array<i64: 1, 1, 64>}, {transform_indices = @transform_12, window_bounds = array<i64: 1, 32, 32>}, {transform_indices = @transform_13, window_bounds = array<i64: 1, 1, 32>}, {transform_indices = @transform_14, window_bounds = array<i64: 1, 32, 64>}, {transform_indices = @transform_15, window_bounds = array<i64: 1, 1, 64>}, {transform_indices = @transform_16, window_bounds = array<i64: 1, 64, 32>}, {transform_indices = @transform_17, window_bounds = array<i64: 1, 1, 32>}, {transform_indices = @transform_18, window_bounds = array<i64: 1, 3, 32>}, {transform_indices = @transform_19, window_bounds = array<i64: 1, 3, 32>}, {pipeline_mode = #tpu.pipeline_mode<synchronous>, transform_indices = @transform_20, window_bounds = array<i64: 2, 8, 32>}, {transform_indices = @transform_21, window_bounds = array<i64: 1, 4, 2, 8, 8>}, {transform_indices = @transform_22, window_bounds = array<i64: 1, 4, 2, 8, 8>}]} {
    %c0_i32 = arith.constant 0 : i32
    %0 = arith.cmpi eq, %arg0, %c0_i32 : i32
    %1 = arith.extui %0 : i1 to i32
    %c0_i32_0 = arith.constant 0 : i32
    %2 = arith.cmpi ne, %1, %c0_i32_0 : i32
    scf.if %2 {
      %c0_198 = arith.constant 0 : index
      %c0_199 = arith.constant 0 : index
      %c0_200 = arith.constant 0 : index
      %343 = vector.load %arg1[%c0_198, %c0_199, %c0_200] : memref<2x8x32xf32, #tpu.memory_space<vmem>>, vector<2x8x32xf32>
      %344 = vector.shape_cast %343 : vector<2x8x32xf32> to vector<16x32xf32>
      %c0_201 = arith.constant 0 : index
      %c0_202 = arith.constant 0 : index
      %345 = vector.load %arg24[%c0_201, %c0_202] : memref<16x32xf32, #tpu.memory_space<vmem>>, vector<16x32xf32>
      tpu.vector_store %arg24[%c0_201, %c0_202], %344 {strides = array<i32>} : memref<16x32xf32, #tpu.memory_space<vmem>>, vector<16x32xf32>,
    } else {
    }
    %c0 = arith.constant 0 : index
    %c0_1 = arith.constant 0 : index
    %3 = vector.load %arg24[%c0, %c0_1] : memref<16x32xf32, #tpu.memory_space<vmem>>, vector<16x32xf32>
    %c0_2 = arith.constant 0 : index
    %c0_3 = arith.constant 0 : index
    %c0_4 = arith.constant 0 : index
    %4 = vector.load %arg2[%c0_2, %c0_3, %c0_4] : memref<2x8x32xf32, #tpu.memory_space<vmem>>, vector<2x8x32xf32>
    %5 = vector.shape_cast %4 : vector<2x8x32xf32> to vector<16x32xf32>
    %c0_5 = arith.constant 0 : index
    %c0_6 = arith.constant 0 : index
    %c0_7 = arith.constant 0 : index
    %6 = vector.load %arg5[%c0_5, %c0_6, %c0_7] : memref<1x32x96xf32, #tpu.memory_space<vmem>>, vector<1x32x96xf32>
    %7 = vector.shape_cast %6 : vector<1x32x96xf32> to vector<32x96xf32>
    %cst = arith.constant dense<0.000000e+00> : vector<16x96xf32>
    %8 = tpu.matmul %3, %7, %cst {dimension_numbers = #tpu.dot_dimension_numbers<[1], [0], [0], [1], [0, 0, 1, 1], [], []>} : vector<16x32xf32>, vector<32x96xf32>, vector<16x96xf32> -> vector<16x96xf32>
    %c0_8 = arith.constant 0 : index
    %c0_9 = arith.constant 0 : index
    %c0_10 = arith.constant 0 : index
    %9 = vector.load %arg6[%c0_8, %c0_9, %c0_10] : memref<1x1x96xf32, #tpu.memory_space<vmem>>, vector<1x1x96xf32>
    %10 = vector.shape_cast %9 : vector<1x1x96xf32> to vector<1x96xf32>
    %11 = vector.broadcast %10 : vector<1x96xf32> to vector<16x96xf32>
    %12 = arith.addf %8, %11 : vector<16x96xf32>
    %c0_11 = arith.constant 0 : index
    %c0_12 = arith.constant 0 : index
    %c0_13 = arith.constant 0 : index
    %13 = vector.load %arg3[%c0_11, %c0_12, %c0_13] : memref<2x8x8xf32, #tpu.memory_space<vmem>>, vector<2x8x8xf32>
    %14 = vector.shape_cast %12 : vector<16x96xf32> to vector<2x8x96xf32>
    %15 = vector.shape_cast %12 : vector<16x96xf32> to vector<2x8x96xf32>
    %cst_14 = arith.constant 0.000000e+00 : f32
    %16 = vector.broadcast %cst_14 : f32 to vector<16x32xf32>
    %17 = vector.extract_strided_slice %14 {offsets = [0, 0, 0], sizes = [2, 8, 8], strides = [1, 1, 1]} : vector<2x8x96xf32> to vector<2x8x8xf32>
    %18 = vector.extract_strided_slice %15 {offsets = [0, 0, 32], sizes = [2, 8, 8], strides = [1, 1, 1]} : vector<2x8x96xf32> to vector<2x8x8xf32>
    %19 = vector.extract_strided_slice %15 {offsets = [0, 0, 64], sizes = [2, 8, 8], strides = [1, 1, 1]} : vector<2x8x96xf32> to vector<2x8x8xf32>
    "tpu.trace_start"() <{level = 10 : i32, message = "bqd,bkd->bqk"}> : () -> ()
    %cst_15 = arith.constant dense<0.000000e+00> : vector<2x8x8xf32>
    %20 = tpu.matmul %17, %18, %cst_15 {dimension_numbers = #tpu.dot_dimension_numbers<[2], [2], [1], [1], [0, 0, 0, 1, 1, 1], [0], [0]>} : vector<2x8x8xf32>, vector<2x8x8xf32>, vector<2x8x8xf32> -> vector<2x8x8xf32>
    "tpu.trace_stop"() : () -> ()
    %cst_16 = arith.constant 0.353553385 : f32
    %21 = vector.broadcast %cst_16 : f32 to vector<2x8x8xf32>
    %22 = arith.mulf %20, %21 : vector<2x8x8xf32>
    %23 = arith.addf %22, %13 : vector<2x8x8xf32>
    %cst_17 = arith.constant dense<0xFF800000> : vector<2x8xf32>
    %24 = vector.multi_reduction <maximumf>, %23, %cst_17 [2] : vector<2x8x8xf32> to vector<2x8xf32>
    %25 = vector.shape_cast %24 : vector<2x8xf32> to vector<2x8x1xf32>
    %26 = vector.broadcast %25 : vector<2x8x1xf32> to vector<2x8x8xf32>
    %27 = arith.subf %23, %26 : vector<2x8x8xf32>
    %28 = math.exp %27 : vector<2x8x8xf32>
    %cst_18 = arith.constant dense<0.000000e+00> : vector<2x8xf32>
    %29 = vector.multi_reduction <add>, %28, %cst_18 [2] : vector<2x8x8xf32> to vector<2x8xf32>
    %30 = vector.shape_cast %29 : vector<2x8xf32> to vector<2x8x1xf32>
    %31 = vector.broadcast %30 : vector<2x8x1xf32> to vector<2x8x8xf32>
    %32 = arith.divf %28, %31 : vector<2x8x8xf32>
    %c0_19 = arith.constant 0 : index
    %c0_20 = arith.constant 0 : index
    %c0_21 = arith.constant 0 : index
    %c0_22 = arith.constant 0 : index
    %c0_23 = arith.constant 0 : index
    %33 = vector.load %arg22[%c0_19, %c0_20, %c0_21, %c0_22, %c0_23] : memref<1x4x2x8x8xf32, #tpu.memory_space<vmem>>, vector<1x1x2x8x8xf32>
    %34 = vector.shape_cast %33 : vector<1x1x2x8x8xf32> to vector<2x8x8xf32>
    %35 = vector.shape_cast %32 : vector<2x8x8xf32> to vector<1x1x2x8x8xf32>
    tpu.vector_store %arg22[%c0_19, %c0_20, %c0_21, %c0_22, %c0_23], %35 {strides = array<i32>} : memref<1x4x2x8x8xf32, #tpu.memory_space<vmem>>, vector<1x1x2x8x8xf32>,
    "tpu.trace_start"() <{level = 10 : i32, message = "bqk,bkd->bqd"}> : () -> ()
    %cst_24 = arith.constant dense<0.000000e+00> : vector<2x8x8xf32>
    %36 = tpu.matmul %32, %19, %cst_24 {dimension_numbers = #tpu.dot_dimension_numbers<[2], [1], [1], [2], [0, 0, 0, 1, 1, 2], [0], [0]>} : vector<2x8x8xf32>, vector<2x8x8xf32>, vector<2x8x8xf32> -> vector<2x8x8xf32>
    "tpu.trace_stop"() : () -> ()
    %37 = vector.shape_cast %36 : vector<2x8x8xf32> to vector<16x8xf32>
    %c0_25 = arith.constant 0 : index
    %c0_26 = arith.constant 0 : index
    %c0_27 = arith.constant 0 : index
    %38 = vector.load %arg7[%c0_25, %c0_26, %c0_27] : memref<1x32x32xf32, #tpu.memory_space<vmem>>, vector<1x8x32xf32>
    %39 = vector.shape_cast %38 : vector<1x8x32xf32> to vector<8x32xf32>
    %cst_28 = arith.constant dense<0.000000e+00> : vector<16x32xf32>
    %40 = tpu.matmul %37, %39, %cst_28 {dimension_numbers = #tpu.dot_dimension_numbers<[1], [0], [0], [1], [0, 0, 1, 1], [], []>} : vector<16x8xf32>, vector<8x32xf32>, vector<16x32xf32> -> vector<16x32xf32>
    %41 = arith.addf %16, %40 : vector<16x32xf32>
    %42 = vector.extract_strided_slice %14 {offsets = [0, 0, 8], sizes = [2, 8, 8], strides = [1, 1, 1]} : vector<2x8x96xf32> to vector<2x8x8xf32>
    %43 = vector.extract_strided_slice %15 {offsets = [0, 0, 40], sizes = [2, 8, 8], strides = [1, 1, 1]} : vector<2x8x96xf32> to vector<2x8x8xf32>
    %44 = vector.extract_strided_slice %15 {offsets = [0, 0, 72], sizes = [2, 8, 8], strides = [1, 1, 1]} : vector<2x8x96xf32> to vector<2x8x8xf32>
    "tpu.trace_start"() <{level = 10 : i32, message = "bqd,bkd->bqk"}> : () -> ()
    %cst_29 = arith.constant dense<0.000000e+00> : vector<2x8x8xf32>
    %45 = tpu.matmul %42, %43, %cst_29 {dimension_numbers = #tpu.dot_dimension_numbers<[2], [2], [1], [1], [0, 0, 0, 1, 1, 1], [0], [0]>} : vector<2x8x8xf32>, vector<2x8x8xf32>, vector<2x8x8xf32> -> vector<2x8x8xf32>
    "tpu.trace_stop"() : () -> ()
    %cst_30 = arith.constant 0.353553385 : f32
    %46 = vector.broadcast %cst_30 : f32 to vector<2x8x8xf32>
    %47 = arith.mulf %45, %46 : vector<2x8x8xf32>
    %48 = arith.addf %47, %13 : vector<2x8x8xf32>
    %cst_31 = arith.constant dense<0xFF800000> : vector<2x8xf32>
    %49 = vector.multi_reduction <maximumf>, %48, %cst_31 [2] : vector<2x8x8xf32> to vector<2x8xf32>
    %50 = vector.shape_cast %49 : vector<2x8xf32> to vector<2x8x1xf32>
    %51 = vector.broadcast %50 : vector<2x8x1xf32> to vector<2x8x8xf32>
    %52 = arith.subf %48, %51 : vector<2x8x8xf32>
    %53 = math.exp %52 : vector<2x8x8xf32>
    %cst_32 = arith.constant dense<0.000000e+00> : vector<2x8xf32>
    %54 = vector.multi_reduction <add>, %53, %cst_32 [2] : vector<2x8x8xf32> to vector<2x8xf32>
    %55 = vector.shape_cast %54 : vector<2x8xf32> to vector<2x8x1xf32>
    %56 = vector.broadcast %55 : vector<2x8x1xf32> to vector<2x8x8xf32>
    %57 = arith.divf %53, %56 : vector<2x8x8xf32>
    %c0_33 = arith.constant 0 : index
    %c1 = arith.constant 1 : index
    %c0_34 = arith.constant 0 : index
    %c0_35 = arith.constant 0 : index
    %c0_36 = arith.constant 0 : index
    %58 = vector.load %arg22[%c0_33, %c1, %c0_34, %c0_35, %c0_36] : memref<1x4x2x8x8xf32, #tpu.memory_space<vmem>>, vector<1x1x2x8x8xf32>
    %59 = vector.shape_cast %58 : vector<1x1x2x8x8xf32> to vector<2x8x8xf32>
    %60 = vector.shape_cast %57 : vector<2x8x8xf32> to vector<1x1x2x8x8xf32>
    tpu.vector_store %arg22[%c0_33, %c1, %c0_34, %c0_35, %c0_36], %60 {strides = array<i32>} : memref<1x4x2x8x8xf32, #tpu.memory_space<vmem>>, vector<1x1x2x8x8xf32>,
    "tpu.trace_start"() <{level = 10 : i32, message = "bqk,bkd->bqd"}> : () -> ()
    %cst_37 = arith.constant dense<0.000000e+00> : vector<2x8x8xf32>
    %61 = tpu.matmul %57, %44, %cst_37 {dimension_numbers = #tpu.dot_dimension_numbers<[2], [1], [1], [2], [0, 0, 0, 1, 1, 2], [0], [0]>} : vector<2x8x8xf32>, vector<2x8x8xf32>, vector<2x8x8xf32> -> vector<2x8x8xf32>
    "tpu.trace_stop"() : () -> ()
    %62 = vector.shape_cast %61 : vector<2x8x8xf32> to vector<16x8xf32>
    %c0_38 = arith.constant 0 : index
    %c8 = arith.constant 8 : index
    %c0_39 = arith.constant 0 : index
    %63 = vector.load %arg7[%c0_38, %c8, %c0_39] : memref<1x32x32xf32, #tpu.memory_space<vmem>>, vector<1x8x32xf32>
    %64 = vector.shape_cast %63 : vector<1x8x32xf32> to vector<8x32xf32>
    %cst_40 = arith.constant dense<0.000000e+00> : vector<16x32xf32>
    %65 = tpu.matmul %62, %64, %cst_40 {dimension_numbers = #tpu.dot_dimension_numbers<[1], [0], [0], [1], [0, 0, 1, 1], [], []>} : vector<16x8xf32>, vector<8x32xf32>, vector<16x32xf32> -> vector<16x32xf32>
    %66 = arith.addf %41, %65 : vector<16x32xf32>
    %67 = vector.extract_strided_slice %14 {offsets = [0, 0, 16], sizes = [2, 8, 8], strides = [1, 1, 1]} : vector<2x8x96xf32> to vector<2x8x8xf32>
    %68 = vector.extract_strided_slice %15 {offsets = [0, 0, 48], sizes = [2, 8, 8], strides = [1, 1, 1]} : vector<2x8x96xf32> to vector<2x8x8xf32>
    %69 = vector.extract_strided_slice %15 {offsets = [0, 0, 80], sizes = [2, 8, 8], strides = [1, 1, 1]} : vector<2x8x96xf32> to vector<2x8x8xf32>
    "tpu.trace_start"() <{level = 10 : i32, message = "bqd,bkd->bqk"}> : () -> ()
    %cst_41 = arith.constant dense<0.000000e+00> : vector<2x8x8xf32>
    %70 = tpu.matmul %67, %68, %cst_41 {dimension_numbers = #tpu.dot_dimension_numbers<[2], [2], [1], [1], [0, 0, 0, 1, 1, 1], [0], [0]>} : vector<2x8x8xf32>, vector<2x8x8xf32>, vector<2x8x8xf32> -> vector<2x8x8xf32>
    "tpu.trace_stop"() : () -> ()
    %cst_42 = arith.constant 0.353553385 : f32
    %71 = vector.broadcast %cst_42 : f32 to vector<2x8x8xf32>
    %72 = arith.mulf %70, %71 : vector<2x8x8xf32>
    %73 = arith.addf %72, %13 : vector<2x8x8xf32>
    %cst_43 = arith.constant dense<0xFF800000> : vector<2x8xf32>
    %74 = vector.multi_reduction <maximumf>, %73, %cst_43 [2] : vector<2x8x8xf32> to vector<2x8xf32>
    %75 = vector.shape_cast %74 : vector<2x8xf32> to vector<2x8x1xf32>
    %76 = vector.broadcast %75 : vector<2x8x1xf32> to vector<2x8x8xf32>
    %77 = arith.subf %73, %76 : vector<2x8x8xf32>
    %78 = math.exp %77 : vector<2x8x8xf32>
    %cst_44 = arith.constant dense<0.000000e+00> : vector<2x8xf32>
    %79 = vector.multi_reduction <add>, %78, %cst_44 [2] : vector<2x8x8xf32> to vector<2x8xf32>
    %80 = vector.shape_cast %79 : vector<2x8xf32> to vector<2x8x1xf32>
    %81 = vector.broadcast %80 : vector<2x8x1xf32> to vector<2x8x8xf32>
    %82 = arith.divf %78, %81 : vector<2x8x8xf32>
    %c0_45 = arith.constant 0 : index
    %c2 = arith.constant 2 : index
    %c0_46 = arith.constant 0 : index
    %c0_47 = arith.constant 0 : index
    %c0_48 = arith.constant 0 : index
    %83 = vector.load %arg22[%c0_45, %c2, %c0_46, %c0_47, %c0_48] : memref<1x4x2x8x8xf32, #tpu.memory_space<vmem>>, vector<1x1x2x8x8xf32>
    %84 = vector.shape_cast %83 : vector<1x1x2x8x8xf32> to vector<2x8x8xf32>
    %85 = vector.shape_cast %82 : vector<2x8x8xf32> to vector<1x1x2x8x8xf32>
    tpu.vector_store %arg22[%c0_45, %c2, %c0_46, %c0_47, %c0_48], %85 {strides = array<i32>} : memref<1x4x2x8x8xf32, #tpu.memory_space<vmem>>, vector<1x1x2x8x8xf32>,
    "tpu.trace_start"() <{level = 10 : i32, message = "bqk,bkd->bqd"}> : () -> ()
    %cst_49 = arith.constant dense<0.000000e+00> : vector<2x8x8xf32>
    %86 = tpu.matmul %82, %69, %cst_49 {dimension_numbers = #tpu.dot_dimension_numbers<[2], [1], [1], [2], [0, 0, 0, 1, 1, 2], [0], [0]>} : vector<2x8x8xf32>, vector<2x8x8xf32>, vector<2x8x8xf32> -> vector<2x8x8xf32>
    "tpu.trace_stop"() : () -> ()
    %87 = vector.shape_cast %86 : vector<2x8x8xf32> to vector<16x8xf32>
    %c0_50 = arith.constant 0 : index
    %c16 = arith.constant 16 : index
    %c0_51 = arith.constant 0 : index
    %88 = vector.load %arg7[%c0_50, %c16, %c0_51] : memref<1x32x32xf32, #tpu.memory_space<vmem>>, vector<1x8x32xf32>
    %89 = vector.shape_cast %88 : vector<1x8x32xf32> to vector<8x32xf32>
    %cst_52 = arith.constant dense<0.000000e+00> : vector<16x32xf32>
    %90 = tpu.matmul %87, %89, %cst_52 {dimension_numbers = #tpu.dot_dimension_numbers<[1], [0], [0], [1], [0, 0, 1, 1], [], []>} : vector<16x8xf32>, vector<8x32xf32>, vector<16x32xf32> -> vector<16x32xf32>
    %91 = arith.addf %66, %90 : vector<16x32xf32>
    %92 = vector.extract_strided_slice %14 {offsets = [0, 0, 24], sizes = [2, 8, 8], strides = [1, 1, 1]} : vector<2x8x96xf32> to vector<2x8x8xf32>
    %93 = vector.extract_strided_slice %15 {offsets = [0, 0, 56], sizes = [2, 8, 8], strides = [1, 1, 1]} : vector<2x8x96xf32> to vector<2x8x8xf32>
    %94 = vector.extract_strided_slice %15 {offsets = [0, 0, 88], sizes = [2, 8, 8], strides = [1, 1, 1]} : vector<2x8x96xf32> to vector<2x8x8xf32>
    "tpu.trace_start"() <{level = 10 : i32, message = "bqd,bkd->bqk"}> : () -> ()
    %cst_53 = arith.constant dense<0.000000e+00> : vector<2x8x8xf32>
    %95 = tpu.matmul %92, %93, %cst_53 {dimension_numbers = #tpu.dot_dimension_numbers<[2], [2], [1], [1], [0, 0, 0, 1, 1, 1], [0], [0]>} : vector<2x8x8xf32>, vector<2x8x8xf32>, vector<2x8x8xf32> -> vector<2x8x8xf32>
    "tpu.trace_stop"() : () -> ()
    %cst_54 = arith.constant 0.353553385 : f32
    %96 = vector.broadcast %cst_54 : f32 to vector<2x8x8xf32>
    %97 = arith.mulf %95, %96 : vector<2x8x8xf32>
    %98 = arith.addf %97, %13 : vector<2x8x8xf32>
    %cst_55 = arith.constant dense<0xFF800000> : vector<2x8xf32>
    %99 = vector.multi_reduction <maximumf>, %98, %cst_55 [2] : vector<2x8x8xf32> to vector<2x8xf32>
    %100 = vector.shape_cast %99 : vector<2x8xf32> to vector<2x8x1xf32>
    %101 = vector.broadcast %100 : vector<2x8x1xf32> to vector<2x8x8xf32>
    %102 = arith.subf %98, %101 : vector<2x8x8xf32>
    %103 = math.exp %102 : vector<2x8x8xf32>
    %cst_56 = arith.constant dense<0.000000e+00> : vector<2x8xf32>
    %104 = vector.multi_reduction <add>, %103, %cst_56 [2] : vector<2x8x8xf32> to vector<2x8xf32>
    %105 = vector.shape_cast %104 : vector<2x8xf32> to vector<2x8x1xf32>
    %106 = vector.broadcast %105 : vector<2x8x1xf32> to vector<2x8x8xf32>
    %107 = arith.divf %103, %106 : vector<2x8x8xf32>
    %c0_57 = arith.constant 0 : index
    %c3 = arith.constant 3 : index
    %c0_58 = arith.constant 0 : index
    %c0_59 = arith.constant 0 : index
    %c0_60 = arith.constant 0 : index
    %108 = vector.load %arg22[%c0_57, %c3, %c0_58, %c0_59, %c0_60] : memref<1x4x2x8x8xf32, #tpu.memory_space<vmem>>, vector<1x1x2x8x8xf32>
    %109 = vector.shape_cast %108 : vector<1x1x2x8x8xf32> to vector<2x8x8xf32>
    %110 = vector.shape_cast %107 : vector<2x8x8xf32> to vector<1x1x2x8x8xf32>
    tpu.vector_store %arg22[%c0_57, %c3, %c0_58, %c0_59, %c0_60], %110 {strides = array<i32>} : memref<1x4x2x8x8xf32, #tpu.memory_space<vmem>>, vector<1x1x2x8x8xf32>,
    "tpu.trace_start"() <{level = 10 : i32, message = "bqk,bkd->bqd"}> : () -> ()
    %cst_61 = arith.constant dense<0.000000e+00> : vector<2x8x8xf32>
    %111 = tpu.matmul %107, %94, %cst_61 {dimension_numbers = #tpu.dot_dimension_numbers<[2], [1], [1], [2], [0, 0, 0, 1, 1, 2], [0], [0]>} : vector<2x8x8xf32>, vector<2x8x8xf32>, vector<2x8x8xf32> -> vector<2x8x8xf32>
    "tpu.trace_stop"() : () -> ()
    %112 = vector.shape_cast %111 : vector<2x8x8xf32> to vector<16x8xf32>
    %c0_62 = arith.constant 0 : index
    %c24 = arith.constant 24 : index
    %c0_63 = arith.constant 0 : index
    %113 = vector.load %arg7[%c0_62, %c24, %c0_63] : memref<1x32x32xf32, #tpu.memory_space<vmem>>, vector<1x8x32xf32>
    %114 = vector.shape_cast %113 : vector<1x8x32xf32> to vector<8x32xf32>
    %cst_64 = arith.constant dense<0.000000e+00> : vector<16x32xf32>
    %115 = tpu.matmul %112, %114, %cst_64 {dimension_numbers = #tpu.dot_dimension_numbers<[1], [0], [0], [1], [0, 0, 1, 1], [], []>} : vector<16x8xf32>, vector<8x32xf32>, vector<16x32xf32> -> vector<16x32xf32>
    %116 = arith.addf %91, %115 : vector<16x32xf32>
    %c0_65 = arith.constant 0 : index
    %c0_66 = arith.constant 0 : index
    %c0_67 = arith.constant 0 : index
    %117 = vector.load %arg8[%c0_65, %c0_66, %c0_67] : memref<1x1x32xf32, #tpu.memory_space<vmem>>, vector<1x1x32xf32>
    %118 = vector.shape_cast %117 : vector<1x1x32xf32> to vector<1x32xf32>
    %119 = vector.broadcast %118 : vector<1x32xf32> to vector<16x32xf32>
    %120 = arith.addf %116, %119 : vector<16x32xf32>
    %121 = arith.addf %3, %120 : vector<16x32xf32>
    %cst_68 = arith.constant dense<0.000000e+00> : vector<16xf32>
    %122 = vector.multi_reduction <add>, %121, %cst_68 [1] : vector<16x32xf32> to vector<16xf32>
    %123 = vector.shape_cast %122 : vector<16xf32> to vector<16x1xf32>
    %cst_69 = arith.constant 3.200000e+01 : f32
    %124 = vector.broadcast %cst_69 : f32 to vector<16x1xf32>
    %125 = arith.divf %123, %124 : vector<16x1xf32>
    %126 = vector.broadcast %125 : vector<16x1xf32> to vector<16x32xf32>
    %127 = arith.subf %121, %126 : vector<16x32xf32>
    %128 = arith.mulf %127, %127 : vector<16x32xf32>
    %cst_70 = arith.constant dense<0.000000e+00> : vector<16xf32>
    %129 = vector.multi_reduction <add>, %128, %cst_70 [1] : vector<16x32xf32> to vector<16xf32>
    %130 = vector.shape_cast %129 : vector<16xf32> to vector<16x1xf32>
    %cst_71 = arith.constant 3.200000e+01 : f32
    %131 = vector.broadcast %cst_71 : f32 to vector<16x1xf32>
    %132 = arith.divf %130, %131 : vector<16x1xf32>
    %133 = vector.broadcast %125 : vector<16x1xf32> to vector<16x32xf32>
    %134 = arith.subf %121, %133 : vector<16x32xf32>
    %cst_72 = arith.constant 9.99999996E-13 : f32
    %135 = vector.broadcast %cst_72 : f32 to vector<16x1xf32>
    %136 = arith.addf %132, %135 : vector<16x1xf32>
    %137 = math.rsqrt %136 : vector<16x1xf32>
    %138 = vector.broadcast %137 : vector<16x1xf32> to vector<16x32xf32>
    %139 = arith.mulf %134, %138 : vector<16x32xf32>
    %c0_73 = arith.constant 0 : index
    %c0_74 = arith.constant 0 : index
    %c0_75 = arith.constant 0 : index
    %140 = vector.load %arg19[%c0_73, %c0_74, %c0_75] : memref<1x3x32xf32, #tpu.memory_space<vmem>>, vector<1x1x32xf32>
    %141 = vector.shape_cast %140 : vector<1x1x32xf32> to vector<1x32xf32>
    %142 = vector.broadcast %141 : vector<1x32xf32> to vector<16x32xf32>
    %143 = arith.mulf %142, %139 : vector<16x32xf32>
    %c0_76 = arith.constant 0 : index
    %c0_77 = arith.constant 0 : index
    %c0_78 = arith.constant 0 : index
    %144 = vector.load %arg20[%c0_76, %c0_77, %c0_78] : memref<1x3x32xf32, #tpu.memory_space<vmem>>, vector<1x1x32xf32>
    %145 = vector.shape_cast %144 : vector<1x1x32xf32> to vector<1x32xf32>
    %146 = vector.broadcast %145 : vector<1x32xf32> to vector<16x32xf32>
    %147 = arith.addf %143, %146 : vector<16x32xf32>
    %c0_79 = arith.constant 0 : index
    %c0_80 = arith.constant 0 : index
    %c0_81 = arith.constant 0 : index
    %148 = vector.load %arg9[%c0_79, %c0_80, %c0_81] : memref<1x32x32xf32, #tpu.memory_space<vmem>>, vector<1x32x32xf32>
    %149 = vector.shape_cast %148 : vector<1x32x32xf32> to vector<32x32xf32>
    %cst_82 = arith.constant dense<0.000000e+00> : vector<16x32xf32>
    %150 = tpu.matmul %147, %149, %cst_82 {dimension_numbers = #tpu.dot_dimension_numbers<[1], [0], [0], [1], [0, 0, 1, 1], [], []>} : vector<16x32xf32>, vector<32x32xf32>, vector<16x32xf32> -> vector<16x32xf32>
    %c0_83 = arith.constant 0 : index
    %c0_84 = arith.constant 0 : index
    %c0_85 = arith.constant 0 : index
    %151 = vector.load %arg10[%c0_83, %c0_84, %c0_85] : memref<1x1x32xf32, #tpu.memory_space<vmem>>, vector<1x1x32xf32>
    %152 = vector.shape_cast %151 : vector<1x1x32xf32> to vector<1x32xf32>
    %153 = vector.broadcast %152 : vector<1x32xf32> to vector<16x32xf32>
    %154 = arith.addf %150, %153 : vector<16x32xf32>
    %c0_86 = arith.constant 0 : index
    %c0_87 = arith.constant 0 : index
    %c0_88 = arith.constant 0 : index
    %155 = vector.load %arg11[%c0_86, %c0_87, %c0_88] : memref<1x32x64xf32, #tpu.memory_space<vmem>>, vector<1x32x64xf32>
    %156 = vector.shape_cast %155 : vector<1x32x64xf32> to vector<32x64xf32>
    %cst_89 = arith.constant dense<0.000000e+00> : vector<16x64xf32>
    %157 = tpu.matmul %5, %156, %cst_89 {dimension_numbers = #tpu.dot_dimension_numbers<[1], [0], [0], [1], [0, 0, 1, 1], [], []>} : vector<16x32xf32>, vector<32x64xf32>, vector<16x64xf32> -> vector<16x64xf32>
    %c0_90 = arith.constant 0 : index
    %c0_91 = arith.constant 0 : index
    %c0_92 = arith.constant 0 : index
    %158 = vector.load %arg12[%c0_90, %c0_91, %c0_92] : memref<1x1x64xf32, #tpu.memory_space<vmem>>, vector<1x1x64xf32>
    %159 = vector.shape_cast %158 : vector<1x1x64xf32> to vector<1x64xf32>
    %160 = vector.broadcast %159 : vector<1x64xf32> to vector<16x64xf32>
    %161 = arith.addf %157, %160 : vector<16x64xf32>
    %c0_93 = arith.constant 0 : index
    %c0_94 = arith.constant 0 : index
    %c0_95 = arith.constant 0 : index
    %162 = vector.load %arg4[%c0_93, %c0_94, %c0_95] : memref<2x8x8xf32, #tpu.memory_space<vmem>>, vector<2x8x8xf32>
    %163 = vector.shape_cast %154 : vector<16x32xf32> to vector<2x8x32xf32>
    %164 = vector.shape_cast %161 : vector<16x64xf32> to vector<2x8x64xf32>
    %cst_96 = arith.constant 0.000000e+00 : f32
    %165 = vector.broadcast %cst_96 : f32 to vector<16x32xf32>
    %166 = vector.extract_strided_slice %163 {offsets = [0, 0, 0], sizes = [2, 8, 8], strides = [1, 1, 1]} : vector<2x8x32xf32> to vector<2x8x8xf32>
    %167 = vector.extract_strided_slice %164 {offsets = [0, 0, 0], sizes = [2, 8, 8], strides = [1, 1, 1]} : vector<2x8x64xf32> to vector<2x8x8xf32>
    %168 = vector.extract_strided_slice %164 {offsets = [0, 0, 32], sizes = [2, 8, 8], strides = [1, 1, 1]} : vector<2x8x64xf32> to vector<2x8x8xf32>
    "tpu.trace_start"() <{level = 10 : i32, message = "bqd,bkd->bqk"}> : () -> ()
    %cst_97 = arith.constant dense<0.000000e+00> : vector<2x8x8xf32>
    %169 = tpu.matmul %166, %167, %cst_97 {dimension_numbers = #tpu.dot_dimension_numbers<[2], [2], [1], [1], [0, 0, 0, 1, 1, 1], [0], [0]>} : vector<2x8x8xf32>, vector<2x8x8xf32>, vector<2x8x8xf32> -> vector<2x8x8xf32>
    "tpu.trace_stop"() : () -> ()
    %cst_98 = arith.constant 0.353553385 : f32
    %170 = vector.broadcast %cst_98 : f32 to vector<2x8x8xf32>
    %171 = arith.mulf %169, %170 : vector<2x8x8xf32>
    %172 = arith.addf %171, %162 : vector<2x8x8xf32>
    %cst_99 = arith.constant dense<0xFF800000> : vector<2x8xf32>
    %173 = vector.multi_reduction <maximumf>, %172, %cst_99 [2] : vector<2x8x8xf32> to vector<2x8xf32>
    %174 = vector.shape_cast %173 : vector<2x8xf32> to vector<2x8x1xf32>
    %175 = vector.broadcast %174 : vector<2x8x1xf32> to vector<2x8x8xf32>
    %176 = arith.subf %172, %175 : vector<2x8x8xf32>
    %177 = math.exp %176 : vector<2x8x8xf32>
    %cst_100 = arith.constant dense<0.000000e+00> : vector<2x8xf32>
    %178 = vector.multi_reduction <add>, %177, %cst_100 [2] : vector<2x8x8xf32> to vector<2x8xf32>
    %179 = vector.shape_cast %178 : vector<2x8xf32> to vector<2x8x1xf32>
    %180 = vector.broadcast %179 : vector<2x8x1xf32> to vector<2x8x8xf32>
    %181 = arith.divf %177, %180 : vector<2x8x8xf32>
    %c0_101 = arith.constant 0 : index
    %c0_102 = arith.constant 0 : index
    %c0_103 = arith.constant 0 : index
    %c0_104 = arith.constant 0 : index
    %c0_105 = arith.constant 0 : index
    %182 = vector.load %arg23[%c0_101, %c0_102, %c0_103, %c0_104, %c0_105] : memref<1x4x2x8x8xf32, #tpu.memory_space<vmem>>, vector<1x1x2x8x8xf32>
    %183 = vector.shape_cast %182 : vector<1x1x2x8x8xf32> to vector<2x8x8xf32>
    %184 = vector.shape_cast %181 : vector<2x8x8xf32> to vector<1x1x2x8x8xf32>
    tpu.vector_store %arg23[%c0_101, %c0_102, %c0_103, %c0_104, %c0_105], %184 {strides = array<i32>} : memref<1x4x2x8x8xf32, #tpu.memory_space<vmem>>, vector<1x1x2x8x8xf32>,
    "tpu.trace_start"() <{level = 10 : i32, message = "bqk,bkd->bqd"}> : () -> ()
    %cst_106 = arith.constant dense<0.000000e+00> : vector<2x8x8xf32>
    %185 = tpu.matmul %181, %168, %cst_106 {dimension_numbers = #tpu.dot_dimension_numbers<[2], [1], [1], [2], [0, 0, 0, 1, 1, 2], [0], [0]>} : vector<2x8x8xf32>, vector<2x8x8xf32>, vector<2x8x8xf32> -> vector<2x8x8xf32>
    "tpu.trace_stop"() : () -> ()
    %186 = vector.shape_cast %185 : vector<2x8x8xf32> to vector<16x8xf32>
    %c0_107 = arith.constant 0 : index
    %c0_108 = arith.constant 0 : index
    %c0_109 = arith.constant 0 : index
    %187 = vector.load %arg13[%c0_107, %c0_108, %c0_109] : memref<1x32x32xf32, #tpu.memory_space<vmem>>, vector<1x8x32xf32>
    %188 = vector.shape_cast %187 : vector<1x8x32xf32> to vector<8x32xf32>
    %cst_110 = arith.constant dense<0.000000e+00> : vector<16x32xf32>
    %189 = tpu.matmul %186, %188, %cst_110 {dimension_numbers = #tpu.dot_dimension_numbers<[1], [0], [0], [1], [0, 0, 1, 1], [], []>} : vector<16x8xf32>, vector<8x32xf32>, vector<16x32xf32> -> vector<16x32xf32>
    %190 = arith.addf %165, %189 : vector<16x32xf32>
    %191 = vector.extract_strided_slice %163 {offsets = [0, 0, 8], sizes = [2, 8, 8], strides = [1, 1, 1]} : vector<2x8x32xf32> to vector<2x8x8xf32>
    %192 = vector.extract_strided_slice %164 {offsets = [0, 0, 8], sizes = [2, 8, 8], strides = [1, 1, 1]} : vector<2x8x64xf32> to vector<2x8x8xf32>
    %193 = vector.extract_strided_slice %164 {offsets = [0, 0, 40], sizes = [2, 8, 8], strides = [1, 1, 1]} : vector<2x8x64xf32> to vector<2x8x8xf32>
    "tpu.trace_start"() <{level = 10 : i32, message = "bqd,bkd->bqk"}> : () -> ()
    %cst_111 = arith.constant dense<0.000000e+00> : vector<2x8x8xf32>
    %194 = tpu.matmul %191, %192, %cst_111 {dimension_numbers = #tpu.dot_dimension_numbers<[2], [2], [1], [1], [0, 0, 0, 1, 1, 1], [0], [0]>} : vector<2x8x8xf32>, vector<2x8x8xf32>, vector<2x8x8xf32> -> vector<2x8x8xf32>
    "tpu.trace_stop"() : () -> ()
    %cst_112 = arith.constant 0.353553385 : f32
    %195 = vector.broadcast %cst_112 : f32 to vector<2x8x8xf32>
    %196 = arith.mulf %194, %195 : vector<2x8x8xf32>
    %197 = arith.addf %196, %162 : vector<2x8x8xf32>
    %cst_113 = arith.constant dense<0xFF800000> : vector<2x8xf32>
    %198 = vector.multi_reduction <maximumf>, %197, %cst_113 [2] : vector<2x8x8xf32> to vector<2x8xf32>
    %199 = vector.shape_cast %198 : vector<2x8xf32> to vector<2x8x1xf32>
    %200 = vector.broadcast %199 : vector<2x8x1xf32> to vector<2x8x8xf32>
    %201 = arith.subf %197, %200 : vector<2x8x8xf32>
    %202 = math.exp %201 : vector<2x8x8xf32>
    %cst_114 = arith.constant dense<0.000000e+00> : vector<2x8xf32>
    %203 = vector.multi_reduction <add>, %202, %cst_114 [2] : vector<2x8x8xf32> to vector<2x8xf32>
    %204 = vector.shape_cast %203 : vector<2x8xf32> to vector<2x8x1xf32>
    %205 = vector.broadcast %204 : vector<2x8x1xf32> to vector<2x8x8xf32>
    %206 = arith.divf %202, %205 : vector<2x8x8xf32>
    %c0_115 = arith.constant 0 : index
    %c1_116 = arith.constant 1 : index
    %c0_117 = arith.constant 0 : index
    %c0_118 = arith.constant 0 : index
    %c0_119 = arith.constant 0 : index
    %207 = vector.load %arg23[%c0_115, %c1_116, %c0_117, %c0_118, %c0_119] : memref<1x4x2x8x8xf32, #tpu.memory_space<vmem>>, vector<1x1x2x8x8xf32>
    %208 = vector.shape_cast %207 : vector<1x1x2x8x8xf32> to vector<2x8x8xf32>
    %209 = vector.shape_cast %206 : vector<2x8x8xf32> to vector<1x1x2x8x8xf32>
    tpu.vector_store %arg23[%c0_115, %c1_116, %c0_117, %c0_118, %c0_119], %209 {strides = array<i32>} : memref<1x4x2x8x8xf32, #tpu.memory_space<vmem>>, vector<1x1x2x8x8xf32>,
    "tpu.trace_start"() <{level = 10 : i32, message = "bqk,bkd->bqd"}> : () -> ()
    %cst_120 = arith.constant dense<0.000000e+00> : vector<2x8x8xf32>
    %210 = tpu.matmul %206, %193, %cst_120 {dimension_numbers = #tpu.dot_dimension_numbers<[2], [1], [1], [2], [0, 0, 0, 1, 1, 2], [0], [0]>} : vector<2x8x8xf32>, vector<2x8x8xf32>, vector<2x8x8xf32> -> vector<2x8x8xf32>
    "tpu.trace_stop"() : () -> ()
    %211 = vector.shape_cast %210 : vector<2x8x8xf32> to vector<16x8xf32>
    %c0_121 = arith.constant 0 : index
    %c8_122 = arith.constant 8 : index
    %c0_123 = arith.constant 0 : index
    %212 = vector.load %arg13[%c0_121, %c8_122, %c0_123] : memref<1x32x32xf32, #tpu.memory_space<vmem>>, vector<1x8x32xf32>
    %213 = vector.shape_cast %212 : vector<1x8x32xf32> to vector<8x32xf32>
    %cst_124 = arith.constant dense<0.000000e+00> : vector<16x32xf32>
    %214 = tpu.matmul %211, %213, %cst_124 {dimension_numbers = #tpu.dot_dimension_numbers<[1], [0], [0], [1], [0, 0, 1, 1], [], []>} : vector<16x8xf32>, vector<8x32xf32>, vector<16x32xf32> -> vector<16x32xf32>
    %215 = arith.addf %190, %214 : vector<16x32xf32>
    %216 = vector.extract_strided_slice %163 {offsets = [0, 0, 16], sizes = [2, 8, 8], strides = [1, 1, 1]} : vector<2x8x32xf32> to vector<2x8x8xf32>
    %217 = vector.extract_strided_slice %164 {offsets = [0, 0, 16], sizes = [2, 8, 8], strides = [1, 1, 1]} : vector<2x8x64xf32> to vector<2x8x8xf32>
    %218 = vector.extract_strided_slice %164 {offsets = [0, 0, 48], sizes = [2, 8, 8], strides = [1, 1, 1]} : vector<2x8x64xf32> to vector<2x8x8xf32>
    "tpu.trace_start"() <{level = 10 : i32, message = "bqd,bkd->bqk"}> : () -> ()
    %cst_125 = arith.constant dense<0.000000e+00> : vector<2x8x8xf32>
    %219 = tpu.matmul %216, %217, %cst_125 {dimension_numbers = #tpu.dot_dimension_numbers<[2], [2], [1], [1], [0, 0, 0, 1, 1, 1], [0], [0]>} : vector<2x8x8xf32>, vector<2x8x8xf32>, vector<2x8x8xf32> -> vector<2x8x8xf32>
    "tpu.trace_stop"() : () -> ()
    %cst_126 = arith.constant 0.353553385 : f32
    %220 = vector.broadcast %cst_126 : f32 to vector<2x8x8xf32>
    %221 = arith.mulf %219, %220 : vector<2x8x8xf32>
    %222 = arith.addf %221, %162 : vector<2x8x8xf32>
    %cst_127 = arith.constant dense<0xFF800000> : vector<2x8xf32>
    %223 = vector.multi_reduction <maximumf>, %222, %cst_127 [2] : vector<2x8x8xf32> to vector<2x8xf32>
    %224 = vector.shape_cast %223 : vector<2x8xf32> to vector<2x8x1xf32>
    %225 = vector.broadcast %224 : vector<2x8x1xf32> to vector<2x8x8xf32>
    %226 = arith.subf %222, %225 : vector<2x8x8xf32>
    %227 = math.exp %226 : vector<2x8x8xf32>
    %cst_128 = arith.constant dense<0.000000e+00> : vector<2x8xf32>
    %228 = vector.multi_reduction <add>, %227, %cst_128 [2] : vector<2x8x8xf32> to vector<2x8xf32>
    %229 = vector.shape_cast %228 : vector<2x8xf32> to vector<2x8x1xf32>
    %230 = vector.broadcast %229 : vector<2x8x1xf32> to vector<2x8x8xf32>
    %231 = arith.divf %227, %230 : vector<2x8x8xf32>
    %c0_129 = arith.constant 0 : index
    %c2_130 = arith.constant 2 : index
    %c0_131 = arith.constant 0 : index
    %c0_132 = arith.constant 0 : index
    %c0_133 = arith.constant 0 : index
    %232 = vector.load %arg23[%c0_129, %c2_130, %c0_131, %c0_132, %c0_133] : memref<1x4x2x8x8xf32, #tpu.memory_space<vmem>>, vector<1x1x2x8x8xf32>
    %233 = vector.shape_cast %232 : vector<1x1x2x8x8xf32> to vector<2x8x8xf32>
    %234 = vector.shape_cast %231 : vector<2x8x8xf32> to vector<1x1x2x8x8xf32>
    tpu.vector_store %arg23[%c0_129, %c2_130, %c0_131, %c0_132, %c0_133], %234 {strides = array<i32>} : memref<1x4x2x8x8xf32, #tpu.memory_space<vmem>>, vector<1x1x2x8x8xf32>,
    "tpu.trace_start"() <{level = 10 : i32, message = "bqk,bkd->bqd"}> : () -> ()
    %cst_134 = arith.constant dense<0.000000e+00> : vector<2x8x8xf32>
    %235 = tpu.matmul %231, %218, %cst_134 {dimension_numbers = #tpu.dot_dimension_numbers<[2], [1], [1], [2], [0, 0, 0, 1, 1, 2], [0], [0]>} : vector<2x8x8xf32>, vector<2x8x8xf32>, vector<2x8x8xf32> -> vector<2x8x8xf32>
    "tpu.trace_stop"() : () -> ()
    %236 = vector.shape_cast %235 : vector<2x8x8xf32> to vector<16x8xf32>
    %c0_135 = arith.constant 0 : index
    %c16_136 = arith.constant 16 : index
    %c0_137 = arith.constant 0 : index
    %237 = vector.load %arg13[%c0_135, %c16_136, %c0_137] : memref<1x32x32xf32, #tpu.memory_space<vmem>>, vector<1x8x32xf32>
    %238 = vector.shape_cast %237 : vector<1x8x32xf32> to vector<8x32xf32>
    %cst_138 = arith.constant dense<0.000000e+00> : vector<16x32xf32>
    %239 = tpu.matmul %236, %238, %cst_138 {dimension_numbers = #tpu.dot_dimension_numbers<[1], [0], [0], [1], [0, 0, 1, 1], [], []>} : vector<16x8xf32>, vector<8x32xf32>, vector<16x32xf32> -> vector<16x32xf32>
    %240 = arith.addf %215, %239 : vector<16x32xf32>
    %241 = vector.extract_strided_slice %163 {offsets = [0, 0, 24], sizes = [2, 8, 8], strides = [1, 1, 1]} : vector<2x8x32xf32> to vector<2x8x8xf32>
    %242 = vector.extract_strided_slice %164 {offsets = [0, 0, 24], sizes = [2, 8, 8], strides = [1, 1, 1]} : vector<2x8x64xf32> to vector<2x8x8xf32>
    %243 = vector.extract_strided_slice %164 {offsets = [0, 0, 56], sizes = [2, 8, 8], strides = [1, 1, 1]} : vector<2x8x64xf32> to vector<2x8x8xf32>
    "tpu.trace_start"() <{level = 10 : i32, message = "bqd,bkd->bqk"}> : () -> ()
    %cst_139 = arith.constant dense<0.000000e+00> : vector<2x8x8xf32>
    %244 = tpu.matmul %241, %242, %cst_139 {dimension_numbers = #tpu.dot_dimension_numbers<[2], [2], [1], [1], [0, 0, 0, 1, 1, 1], [0], [0]>} : vector<2x8x8xf32>, vector<2x8x8xf32>, vector<2x8x8xf32> -> vector<2x8x8xf32>
    "tpu.trace_stop"() : () -> ()
    %cst_140 = arith.constant 0.353553385 : f32
    %245 = vector.broadcast %cst_140 : f32 to vector<2x8x8xf32>
    %246 = arith.mulf %244, %245 : vector<2x8x8xf32>
    %247 = arith.addf %246, %162 : vector<2x8x8xf32>
    %cst_141 = arith.constant dense<0xFF800000> : vector<2x8xf32>
    %248 = vector.multi_reduction <maximumf>, %247, %cst_141 [2] : vector<2x8x8xf32> to vector<2x8xf32>
    %249 = vector.shape_cast %248 : vector<2x8xf32> to vector<2x8x1xf32>
    %250 = vector.broadcast %249 : vector<2x8x1xf32> to vector<2x8x8xf32>
    %251 = arith.subf %247, %250 : vector<2x8x8xf32>
    %252 = math.exp %251 : vector<2x8x8xf32>
    %cst_142 = arith.constant dense<0.000000e+00> : vector<2x8xf32>
    %253 = vector.multi_reduction <add>, %252, %cst_142 [2] : vector<2x8x8xf32> to vector<2x8xf32>
    %254 = vector.shape_cast %253 : vector<2x8xf32> to vector<2x8x1xf32>
    %255 = vector.broadcast %254 : vector<2x8x1xf32> to vector<2x8x8xf32>
    %256 = arith.divf %252, %255 : vector<2x8x8xf32>
    %c0_143 = arith.constant 0 : index
    %c3_144 = arith.constant 3 : index
    %c0_145 = arith.constant 0 : index
    %c0_146 = arith.constant 0 : index
    %c0_147 = arith.constant 0 : index
    %257 = vector.load %arg23[%c0_143, %c3_144, %c0_145, %c0_146, %c0_147] : memref<1x4x2x8x8xf32, #tpu.memory_space<vmem>>, vector<1x1x2x8x8xf32>
    %258 = vector.shape_cast %257 : vector<1x1x2x8x8xf32> to vector<2x8x8xf32>
    %259 = vector.shape_cast %256 : vector<2x8x8xf32> to vector<1x1x2x8x8xf32>
    tpu.vector_store %arg23[%c0_143, %c3_144, %c0_145, %c0_146, %c0_147], %259 {strides = array<i32>} : memref<1x4x2x8x8xf32, #tpu.memory_space<vmem>>, vector<1x1x2x8x8xf32>,
    "tpu.trace_start"() <{level = 10 : i32, message = "bqk,bkd->bqd"}> : () -> ()
    %cst_148 = arith.constant dense<0.000000e+00> : vector<2x8x8xf32>
    %260 = tpu.matmul %256, %243, %cst_148 {dimension_numbers = #tpu.dot_dimension_numbers<[2], [1], [1], [2], [0, 0, 0, 1, 1, 2], [0], [0]>} : vector<2x8x8xf32>, vector<2x8x8xf32>, vector<2x8x8xf32> -> vector<2x8x8xf32>
    "tpu.trace_stop"() : () -> ()
    %261 = vector.shape_cast %260 : vector<2x8x8xf32> to vector<16x8xf32>
    %c0_149 = arith.constant 0 : index
    %c24_150 = arith.constant 24 : index
    %c0_151 = arith.constant 0 : index
    %262 = vector.load %arg13[%c0_149, %c24_150, %c0_151] : memref<1x32x32xf32, #tpu.memory_space<vmem>>, vector<1x8x32xf32>
    %263 = vector.shape_cast %262 : vector<1x8x32xf32> to vector<8x32xf32>
    %cst_152 = arith.constant dense<0.000000e+00> : vector<16x32xf32>
    %264 = tpu.matmul %261, %263, %cst_152 {dimension_numbers = #tpu.dot_dimension_numbers<[1], [0], [0], [1], [0, 0, 1, 1], [], []>} : vector<16x8xf32>, vector<8x32xf32>, vector<16x32xf32> -> vector<16x32xf32>
    %265 = arith.addf %240, %264 : vector<16x32xf32>
    %c0_153 = arith.constant 0 : index
    %c0_154 = arith.constant 0 : index
    %c0_155 = arith.constant 0 : index
    %266 = vector.load %arg14[%c0_153, %c0_154, %c0_155] : memref<1x1x32xf32, #tpu.memory_space<vmem>>, vector<1x1x32xf32>
    %267 = vector.shape_cast %266 : vector<1x1x32xf32> to vector<1x32xf32>
    %268 = vector.broadcast %267 : vector<1x32xf32> to vector<16x32xf32>
    %269 = arith.addf %265, %268 : vector<16x32xf32>
    %270 = arith.addf %147, %269 : vector<16x32xf32>
    %cst_156 = arith.constant dense<0.000000e+00> : vector<16xf32>
    %271 = vector.multi_reduction <add>, %270, %cst_156 [1] : vector<16x32xf32> to vector<16xf32>
    %272 = vector.shape_cast %271 : vector<16xf32> to vector<16x1xf32>
    %cst_157 = arith.constant 3.200000e+01 : f32
    %273 = vector.broadcast %cst_157 : f32 to vector<16x1xf32>
    %274 = arith.divf %272, %273 : vector<16x1xf32>
    %275 = vector.broadcast %274 : vector<16x1xf32> to vector<16x32xf32>
    %276 = arith.subf %270, %275 : vector<16x32xf32>
    %277 = arith.mulf %276, %276 : vector<16x32xf32>
    %cst_158 = arith.constant dense<0.000000e+00> : vector<16xf32>
    %278 = vector.multi_reduction <add>, %277, %cst_158 [1] : vector<16x32xf32> to vector<16xf32>
    %279 = vector.shape_cast %278 : vector<16xf32> to vector<16x1xf32>
    %cst_159 = arith.constant 3.200000e+01 : f32
    %280 = vector.broadcast %cst_159 : f32 to vector<16x1xf32>
    %281 = arith.divf %279, %280 : vector<16x1xf32>
    %282 = vector.broadcast %274 : vector<16x1xf32> to vector<16x32xf32>
    %283 = arith.subf %270, %282 : vector<16x32xf32>
    %cst_160 = arith.constant 9.99999996E-13 : f32
    %284 = vector.broadcast %cst_160 : f32 to vector<16x1xf32>
    %285 = arith.addf %281, %284 : vector<16x1xf32>
    %286 = math.rsqrt %285 : vector<16x1xf32>
    %287 = vector.broadcast %286 : vector<16x1xf32> to vector<16x32xf32>
    %288 = arith.mulf %283, %287 : vector<16x32xf32>
    %c0_161 = arith.constant 0 : index
    %c1_162 = arith.constant 1 : index
    %c0_163 = arith.constant 0 : index
    %289 = vector.load %arg19[%c0_161, %c1_162, %c0_163] : memref<1x3x32xf32, #tpu.memory_space<vmem>>, vector<1x1x32xf32>
    %290 = vector.shape_cast %289 : vector<1x1x32xf32> to vector<1x32xf32>
    %291 = vector.broadcast %290 : vector<1x32xf32> to vector<16x32xf32>
    %292 = arith.mulf %291, %288 : vector<16x32xf32>
    %c0_164 = arith.constant 0 : index
    %c1_165 = arith.constant 1 : index
    %c0_166 = arith.constant 0 : index
    %293 = vector.load %arg20[%c0_164, %c1_165, %c0_166] : memref<1x3x32xf32, #tpu.memory_space<vmem>>, vector<1x1x32xf32>
    %294 = vector.shape_cast %293 : vector<1x1x32xf32> to vector<1x32xf32>
    %295 = vector.broadcast %294 : vector<1x32xf32> to vector<16x32xf32>
    %296 = arith.addf %292, %295 : vector<16x32xf32>
    %c0_167 = arith.constant 0 : index
    %c0_168 = arith.constant 0 : index
    %c0_169 = arith.constant 0 : index
    %297 = vector.load %arg15[%c0_167, %c0_168, %c0_169] : memref<1x32x64xf32, #tpu.memory_space<vmem>>, vector<1x32x64xf32>
    %298 = vector.shape_cast %297 : vector<1x32x64xf32> to vector<32x64xf32>
    %cst_170 = arith.constant dense<0.000000e+00> : vector<16x64xf32>
    %299 = tpu.matmul %296, %298, %cst_170 {dimension_numbers = #tpu.dot_dimension_numbers<[1], [0], [0], [1], [0, 0, 1, 1], [], []>} : vector<16x32xf32>, vector<32x64xf32>, vector<16x64xf32> -> vector<16x64xf32>
    %c0_171 = arith.constant 0 : index
    %c0_172 = arith.constant 0 : index
    %c0_173 = arith.constant 0 : index
    %300 = vector.load %arg16[%c0_171, %c0_172, %c0_173] : memref<1x1x64xf32, #tpu.memory_space<vmem>>, vector<1x1x64xf32>
    %301 = vector.shape_cast %300 : vector<1x1x64xf32> to vector<1x64xf32>
    %302 = vector.broadcast %301 : vector<1x64xf32> to vector<16x64xf32>
    %303 = arith.addf %299, %302 : vector<16x64xf32>
    %cst_174 = arith.constant 0.000000e+00 : f32
    %304 = vector.broadcast %cst_174 : f32 to vector<16x64xf32>
    %305 = arith.maximumf %303, %304 : vector<16x64xf32>
    %c0_175 = arith.constant 0 : index
    %c0_176 = arith.constant 0 : index
    %c0_177 = arith.constant 0 : index
    %306 = vector.load %arg17[%c0_175, %c0_176, %c0_177] : memref<1x64x32xf32, #tpu.memory_space<vmem>>, vector<1x64x32xf32>
    %307 = vector.shape_cast %306 : vector<1x64x32xf32> to vector<64x32xf32>
    %cst_178 = arith.constant dense<0.000000e+00> : vector<16x32xf32>
    %308 = tpu.matmul %305, %307, %cst_178 {dimension_numbers = #tpu.dot_dimension_numbers<[1], [0], [0], [1], [0, 0, 1, 1], [], []>} : vector<16x64xf32>, vector<64x32xf32>, vector<16x32xf32> -> vector<16x32xf32>
    %c0_179 = arith.constant 0 : index
    %c0_180 = arith.constant 0 : index
    %c0_181 = arith.constant 0 : index
    %309 = vector.load %arg18[%c0_179, %c0_180, %c0_181] : memref<1x1x32xf32, #tpu.memory_space<vmem>>, vector<1x1x32xf32>
    %310 = vector.shape_cast %309 : vector<1x1x32xf32> to vector<1x32xf32>
    %311 = vector.broadcast %310 : vector<1x32xf32> to vector<16x32xf32>
    %312 = arith.addf %308, %311 : vector<16x32xf32>
    %313 = arith.addf %296, %312 : vector<16x32xf32>
    %cst_182 = arith.constant dense<0.000000e+00> : vector<16xf32>
    %314 = vector.multi_reduction <add>, %313, %cst_182 [1] : vector<16x32xf32> to vector<16xf32>
    %315 = vector.shape_cast %314 : vector<16xf32> to vector<16x1xf32>
    %cst_183 = arith.constant 3.200000e+01 : f32
    %316 = vector.broadcast %cst_183 : f32 to vector<16x1xf32>
    %317 = arith.divf %315, %316 : vector<16x1xf32>
    %318 = vector.broadcast %317 : vector<16x1xf32> to vector<16x32xf32>
    %319 = arith.subf %313, %318 : vector<16x32xf32>
    %320 = arith.mulf %319, %319 : vector<16x32xf32>
    %cst_184 = arith.constant dense<0.000000e+00> : vector<16xf32>
    %321 = vector.multi_reduction <add>, %320, %cst_184 [1] : vector<16x32xf32> to vector<16xf32>
    %322 = vector.shape_cast %321 : vector<16xf32> to vector<16x1xf32>
    %cst_185 = arith.constant 3.200000e+01 : f32
    %323 = vector.broadcast %cst_185 : f32 to vector<16x1xf32>
    %324 = arith.divf %322, %323 : vector<16x1xf32>
    %325 = vector.broadcast %317 : vector<16x1xf32> to vector<16x32xf32>
    %326 = arith.subf %313, %325 : vector<16x32xf32>
    %cst_186 = arith.constant 9.99999996E-13 : f32
    %327 = vector.broadcast %cst_186 : f32 to vector<16x1xf32>
    %328 = arith.addf %324, %327 : vector<16x1xf32>
    %329 = math.rsqrt %328 : vector<16x1xf32>
    %330 = vector.broadcast %329 : vector<16x1xf32> to vector<16x32xf32>
    %331 = arith.mulf %326, %330 : vector<16x32xf32>
    %c0_187 = arith.constant 0 : index
    %c2_188 = arith.constant 2 : index
    %c0_189 = arith.constant 0 : index
    %332 = vector.load %arg19[%c0_187, %c2_188, %c0_189] : memref<1x3x32xf32, #tpu.memory_space<vmem>>, vector<1x1x32xf32>
    %333 = vector.shape_cast %332 : vector<1x1x32xf32> to vector<1x32xf32>
    %334 = vector.broadcast %333 : vector<1x32xf32> to vector<16x32xf32>
    %335 = arith.mulf %334, %331 : vector<16x32xf32>
    %c0_190 = arith.constant 0 : index
    %c2_191 = arith.constant 2 : index
    %c0_192 = arith.constant 0 : index
    %336 = vector.load %arg20[%c0_190, %c2_191, %c0_192] : memref<1x3x32xf32, #tpu.memory_space<vmem>>, vector<1x1x32xf32>
    %337 = vector.shape_cast %336 : vector<1x1x32xf32> to vector<1x32xf32>
    %338 = vector.broadcast %337 : vector<1x32xf32> to vector<16x32xf32>
    %339 = arith.addf %335, %338 : vector<16x32xf32>
    %c0_193 = arith.constant 0 : index
    %c0_194 = arith.constant 0 : index
    %340 = vector.load %arg24[%c0_193, %c0_194] : memref<16x32xf32, #tpu.memory_space<vmem>>, vector<16x32xf32>
    tpu.vector_store %arg24[%c0_193, %c0_194], %339 {strides = array<i32>} : memref<16x32xf32, #tpu.memory_space<vmem>>, vector<16x32xf32>,
    %341 = vector.shape_cast %339 : vector<16x32xf32> to vector<2x8x32xf32>
    %c0_195 = arith.constant 0 : index
    %c0_196 = arith.constant 0 : index
    %c0_197 = arith.constant 0 : index
    %342 = vector.load %arg21[%c0_195, %c0_196, %c0_197] : memref<2x8x32xf32, #tpu.memory_space<vmem>>, vector<2x8x32xf32>
    tpu.vector_store %arg21[%c0_195, %c0_196, %c0_197], %341 {strides = array<i32>} : memref<2x8x32xf32, #tpu.memory_space<vmem>>, vector<2x8x32xf32>,
    return
  }
  func.func @transform_0(%arg0: i32) -> (i32, i32, i32) {
    %c0_i32 = arith.constant 0 : i32
    %c0_i32_0 = arith.constant 0 : i32
    %c0_i32_1 = arith.constant 0 : i32
    %c0_i32_2 = arith.constant 0 : i32
    return %c0_i32, %c0_i32_0, %c0_i32_1 : i32, i32, i32
  }
  func.func @transform_1(%arg0: i32) -> (i32, i32, i32) {
    %c0_i32 = arith.constant 0 : i32
    %c0_i32_0 = arith.constant 0 : i32
    %c0_i32_1 = arith.constant 0 : i32
    %c0_i32_2 = arith.constant 0 : i32
    return %c0_i32, %c0_i32_0, %c0_i32_1 : i32, i32, i32
  }
  func.func @transform_2(%arg0: i32) -> (i32, i32, i32) {
    %c0_i32 = arith.constant 0 : i32
    %c0_i32_0 = arith.constant 0 : i32
    %c0_i32_1 = arith.constant 0 : i32
    %c0_i32_2 = arith.constant 0 : i32
    return %c0_i32, %c0_i32_0, %c0_i32_1 : i32, i32, i32
  }
  func.func @transform_3(%arg0: i32) -> (i32, i32, i32) {
    %c0_i32 = arith.constant 0 : i32
    %c0_i32_0 = arith.constant 0 : i32
    %c0_i32_1 = arith.constant 0 : i32
    %c0_i32_2 = arith.constant 0 : i32
    return %c0_i32, %c0_i32_0, %c0_i32_1 : i32, i32, i32
  }
  func.func @transform_4(%arg0: i32) -> (i32, i32, i32) {
    %c0_i32 = arith.constant 0 : i32
    %c0_i32_0 = arith.constant 0 : i32
    %c0_i32_1 = arith.constant 0 : i32
    return %arg0, %c0_i32, %c0_i32_0 : i32, i32, i32
  }
  func.func @transform_5(%arg0: i32) -> (i32, i32, i32) {
    %c0_i32 = arith.constant 0 : i32
    %c0_i32_0 = arith.constant 0 : i32
    %c0_i32_1 = arith.constant 0 : i32
    return %arg0, %c0_i32, %c0_i32_0 : i32, i32, i32
  }
  func.func @transform_6(%arg0: i32) -> (i32, i32, i32) {
    %c0_i32 = arith.constant 0 : i32
    %c0_i32_0 = arith.constant 0 : i32
    %c0_i32_1 = arith.constant 0 : i32
    return %arg0, %c0_i32, %c0_i32_0 : i32, i32, i32
  }
  func.func @transform_7(%arg0: i32) -> (i32, i32, i32) {
    %c0_i32 = arith.constant 0 : i32
    %c0_i32_0 = arith.constant 0 : i32
    %c0_i32_1 = arith.constant 0 : i32
    return %arg0, %c0_i32, %c0_i32_0 : i32, i32, i32
  }
  func.func @transform_8(%arg0: i32) -> (i32, i32, i32) {
    %c0_i32 = arith.constant 0 : i32
    %c0_i32_0 = arith.constant 0 : i32
    %c0_i32_1 = arith.constant 0 : i32
    return %arg0, %c0_i32, %c0_i32_0 : i32, i32, i32
  }
  func.func @transform_9(%arg0: i32) -> (i32, i32, i32) {
    %c0_i32 = arith.constant 0 : i32
    %c0_i32_0 = arith.constant 0 : i32
    %c0_i32_1 = arith.constant 0 : i32
    return %arg0, %c0_i32, %c0_i32_0 : i32, i32, i32
  }
  func.func @transform_10(%arg0: i32) -> (i32, i32, i32) {
    %c0_i32 = arith.constant 0 : i32
    %c0_i32_0 = arith.constant 0 : i32
    %c0_i32_1 = arith.constant 0 : i32
    return %arg0, %c0_i32, %c0_i32_0 : i32, i32, i32
  }
  func.func @transform_11(%arg0: i32) -> (i32, i32, i32) {
    %c0_i32 = arith.constant 0 : i32
    %c0_i32_0 = arith.constant 0 : i32
    %c0_i32_1 = arith.constant 0 : i32
    return %arg0, %c0_i32, %c0_i32_0 : i32, i32, i32
  }
  func.func @transform_12(%arg0: i32) -> (i32, i32, i32) {
    %c0_i32 = arith.constant 0 : i32
    %c0_i32_0 = arith.constant 0 : i32
    %c0_i32_1 = arith.constant 0 : i32
    return %arg0, %c0_i32, %c0_i32_0 : i32, i32, i32
  }
  func.func @transform_13(%arg0: i32) -> (i32, i32, i32) {
    %c0_i32 = arith.constant 0 : i32
    %c0_i32_0 = arith.constant 0 : i32
    %c0_i32_1 = arith.constant 0 : i32
    return %arg0, %c0_i32, %c0_i32_0 : i32, i32, i32
  }
  func.func @transform_14(%arg0: i32) -> (i32, i32, i32) {
    %c0_i32 = arith.constant 0 : i32
    %c0_i32_0 = arith.constant 0 : i32
    %c0_i32_1 = arith.constant 0 : i32
    return %arg0, %c0_i32, %c0_i32_0 : i32, i32, i32
  }
  func.func @transform_15(%arg0: i32) -> (i32, i32, i32) {
    %c0_i32 = arith.constant 0 : i32
    %c0_i32_0 = arith.constant 0 : i32
    %c0_i32_1 = arith.constant 0 : i32
    return %arg0, %c0_i32, %c0_i32_0 : i32, i32, i32
  }
  func.func @transform_16(%arg0: i32) -> (i32, i32, i32) {
    %c0_i32 = arith.constant 0 : i32
    %c0_i32_0 = arith.constant 0 : i32
    %c0_i32_1 = arith.constant 0 : i32
    return %arg0, %c0_i32, %c0_i32_0 : i32, i32, i32
  }
  func.func @transform_17(%arg0: i32) -> (i32, i32, i32) {
    %c0_i32 = arith.constant 0 : i32
    %c0_i32_0 = arith.constant 0 : i32
    %c0_i32_1 = arith.constant 0 : i32
    return %arg0, %c0_i32, %c0_i32_0 : i32, i32, i32
  }
  func.func @transform_18(%arg0: i32) -> (i32, i32, i32) {
    %c0_i32 = arith.constant 0 : i32
    %c0_i32_0 = arith.constant 0 : i32
    %c0_i32_1 = arith.constant 0 : i32
    return %arg0, %c0_i32, %c0_i32_0 : i32, i32, i32
  }
  func.func @transform_19(%arg0: i32) -> (i32, i32, i32) {
    %c0_i32 = arith.constant 0 : i32
    %c0_i32_0 = arith.constant 0 : i32
    %c0_i32_1 = arith.constant 0 : i32
    return %arg0, %c0_i32, %c0_i32_0 : i32, i32, i32
  }
  func.func @transform_20(%arg0: i32) -> (i32, i32, i32) {
    %c0_i32 = arith.constant 0 : i32
    %c0_i32_0 = arith.constant 0 : i32
    %c0_i32_1 = arith.constant 0 : i32
    %c0_i32_2 = arith.constant 0 : i32
    return %c0_i32, %c0_i32_0, %c0_i32_1 : i32, i32, i32
  }
  func.func @transform_21(%arg0: i32) -> (i32, i32, i32, i32, i32) {
    %c0_i32 = arith.constant 0 : i32
    %c0_i32_0 = arith.constant 0 : i32
    %c0_i32_1 = arith.constant 0 : i32
    %c0_i32_2 = arith.constant 0 : i32
    %c0_i32_3 = arith.constant 0 : i32
    return %arg0, %c0_i32, %c0_i32_0, %c0_i32_1, %c0_i32_2 : i32, i32, i32, i32, i32
  }
  func.func @transform_22(%arg0: i32) -> (i32, i32, i32, i32, i32) {
    %c0_i32 = arith.constant 0 : i32
    %c0_i32_0 = arith.constant 0 : i32
    %c0_i32_1 = arith.constant 0 : i32
    %c0_i32_2 = arith.constant 0 : i32
    %c0_i32_3 = arith.constant 0 : i32
    return %arg0, %c0_i32, %c0_i32_0, %c0_i32_1, %c0_i32_2 : i32, i32, i32, i32, i32
  }
}

</mosaic_0001>

<bundles_post_ra>
// kernel: _decoder_stack.1
= control target key start
LH: loop header
LB: loop body
LE: loop exit
PB: predicated region body
PF: predicated region fallthrough
CT: control target
= control target key end

     0   :  { %s8714_s0 = inlined_call_operand.hbm [shape: f32[2,8,32], index: 0, kind: input, shape index: {}]   ;;  %s8715_s1 = inlined_call_operand.hbm [shape: f32[2,8,32], index: 1, kind: input, shape index: {}]   ;;  %s8716_s2 = inlined_call_operand.hbm [shape: f32[2,8,8], index: 2, kind: input, shape index: {}]   ;;  %s8717_s3 = inlined_call_operand.hbm [shape: f32[2,8,8], index: 3, kind: input, shape index: {}]   ;;  %s8718_s4 = inlined_call_operand.hbm [shape: f32[2,32,96], index: 4, kind: input, shape index: {}]   ;;  %s8719_s5 = inlined_call_operand.hbm [shape: f32[2,1,96], index: 5, kind: input, shape index: {}]   ;;  %s8720_s6 = inlined_call_operand.hbm [shape: f32[2,32,32], index: 6, kind: input, shape index: {}]   ;;  %s8721_s7 = inlined_call_operand.hbm [shape: f32[2,1,32], index: 7, kind: input, shape index: {}]   ;;  %s8722_s8 = inlined_call_operand.hbm [shape: f32[2,32,32], index: 8, kind: input, shape index: {}]   ;;  %s8723_s9 = inlined_call_operand.hbm [shape: f32[2,1,32], index: 9, kind: input, shape index: {}]   ;;  %s8724_s10 = inlined_call_operand.hbm [shape: f32[2,32,64], index: 10, kind: input, shape index: {}]   ;;  %s8725_s11 = inlined_call_operand.hbm [shape: f32[2,1,64], index: 11, kind: input, shape index: {}]   ;;  %s8726_s12 = inlined_call_operand.hbm [shape: f32[2,32,32], index: 12, kind: input, shape index: {}]   ;;  %s8727_s13 = inlined_call_operand.hbm [shape: f32[2,1,32], index: 13, kind: input, shape index: {}]   ;;  %s8728_s14 = inlined_call_operand.hbm [shape: f32[2,32,64], index: 14, kind: input, shape index: {}]   ;;  %s8729_s15 = inlined_call_operand.hbm [shape: f32[2,1,64], index: 15, kind: input, shape index: {}]   ;;  %s8730_s16 = inlined_call_operand.hbm [shape: f32[2,64,32], index: 16, kind: input, shape index: {}]   ;;  %s8731_s17 = inlined_call_operand.hbm [shape: f32[2,1,32], index: 17, kind: input, shape index: {}]   ;;  %s8732_s18 = inlined_call_operand.hbm [shape: f32[2,3,32], index: 18, kind: input, shape index: {}]   ;;  %s8733_s19 = inlined_call_operand.hbm [shape: f32[2,3,32], index: 19, kind: input, shape index: {}]   ;;  %s8734_s20 = inlined_call_operand.hbm [shape: f32[2,8,32], index: 20, kind: output, shape index: {0}]   ;;  %s8735_s21 = inlined_call_operand.hbm [shape: f32[2,4,2,8,8], index: 21, kind: output, shape index: {1}]   ;;  %s8736_s22 = inlined_call_operand.hbm [shape: f32[2,4,2,8,8], index: 22, kind: output, shape index: {2}]  }
   0x1   :  { %8790 = sst [smem:[#allocation47_spill]] %s8714_s0 }
   0x2   :  { %8791 = sst [smem:[#allocation48_spill]] %s8715_s1 }
   0x3   :  { %8792 = sst [smem:[#allocation49_spill]] %s8716_s2 }
   0x4   :  { %8793 = sst [smem:[#allocation50_spill]] %s8717_s3 }
   0x5   :  { %8794 = sst [smem:[#allocation51_spill]] %s8718_s4 }
   0x6   :  { %8795 = sst [smem:[#allocation52_spill]] %s8719_s5 }
   0x7   :  { %8796 = sst [smem:[#allocation53_spill]] %s8720_s6 }
   0x8   :  { %8797 = sst [smem:[#allocation54_spill]] %s8721_s7 }
   0x9   :  { %8798 = sst [smem:[#allocation55_spill]] %s8722_s8 }
   0xa   :  { %8799 = sst [smem:[#allocation56_spill]] %s8730_s16 }
   0xb   :  { %8800 = sst [smem:[#allocation57_spill]] %s8731_s17 }
   0xc   :  { %8801 = sst [smem:[#allocation58_spill]] %s8732_s18 }
   0xd   :  { %8802 = sst [smem:[#allocation59_spill]] %s8733_s19 }
   0xe   :  { %8803 = sst [smem:[#allocation60_spill]] %s8734_s20 }
   0xf   :  { %8804 = sst [smem:[#allocation61_spill]] %s8735_s21 }
  0x10   :  { %8805 = sst [smem:[#allocation62_spill]] %s8736_s22 }
  0x11   :  { %28 = vsyncpa [#allocation4], 0 }
  0x12   :  { %29 = vsyncpa [#allocation7], 0 }
  0x13   :  { %30 = vsyncpa [#allocation10], 0 }
  0x14   :  { %31 = vsyncpa [#allocation5], 0 }
  0x15   :  { %32 = vsyncpa [#allocation29], 0 }
  0x16   :  { %34 = vsyncpa [#allocation29 + $0x1], 0  ;;  %s7431_s3 = smov 0   ;;  %s7433_s28 = smov 0  }
  0x17   :  { %s7435_s29 = smov 0   ;;  %s7437_s30 = smov 0  }
  0x18 LB: > { %8806 = sst [smem:[#allocation37_spill]] %s7264_s28  ;;  %s7450_s4 = sadd.s32 4294967295, %s7272_s30   ;;  %s7272_s30 = sphi %s7437_s30, %s8878_s30   ;;  %s7268_s29 = sphi %s7435_s29, %s8881_s29   ;;  %s7264_s28 = sphi %s7433_s28, %s8880_s28   ;;  %s7260_s3 = sphi %s7431_s3, %s8879_s3  }
  0x19   : > { %8807 = sst [smem:[#allocation38_spill]] %s7268_s29  ;;  %s8745_s0 = sadd.s32 4294967294, %s7272_s30  }
  0x1a   : > { %8808 = sst [smem:[#allocation39_spill]] %s7272_s30  ;;  %s7454_s23 = sadd.s32 1, %s7272_s30  }
  0x1b   : > { %8809 = sst [smem:[#allocation40_spill]] %s7450_s4  ;;  %s131_s1 = sadd.s32 1, %s7268_s29 }
  0x1c   : > { %8810 = sst [smem:[#allocation41_spill]] %s7454_s23  ;;  %s128_s5 = ssub.s32 %s7272_s30, %s7454_s23 }
  0x1d   : > { %p138_p0 = scmp.ne.s32.totalorder %s7268_s29, %s7264_s28  ;;  %p129_p1 = scmp.eq.s32.totalorder %s128_s5, 0 }
  0x1e   : > { %p139_p2 = scmp.eq.s32.totalorder %s7272_s30, 0  ;;  %p144_p3 = scmp.ne.s32.totalorder %s7264_s28, %s7260_s3 }
  0x1f   : > { %p8757_p4 = scmp.eq.s32.totalorder %s7450_s4, 0  ;;  %p8756_p7 = scmp.eq.s32.totalorder %s7450_s4, 1 }
  0x20   : > { %s7465_s24 = scalar_select %p129_p1, %s7268_s29, %s131_s1  }
  0x21   : > { %p7467_p5 = por %p139_p2, %p138_p0  ;;  %p7473_p6 = por %p8757_p4, %p144_p3 }
  0x22   : > { %8811 = sst [smem:[#allocation42_spill]] %s7465_s24  ;;  %p585_p8 = scmp.eq.s32.totalorder %s8745_s0, 1 }
  0x23   : > { %s8812_s6 = scalar_select %p7467_p5, 1, 0 }
  0x24   : > { %s8813_s25 = scalar_select %p7473_p6, 1, 0 }
  0x25   : > { %p5739_p9 = scmp.ge.s32.totalorder %s7272_s30, 1  ;;  %p618_p10 = scmp.lt.s32.totalorder %s7272_s30, 3 }
  0x26   : > { %8814 = sst [smem:[#allocation43_spill]] %s8813_s25  ;;  %p7484_p11 = por %p8756_p7, %p138_p0 }
  0x27   : > { %p7488_p12 = por %p585_p8, %p144_p3  ;;  %p7492_p13 = pnand %p5739_p9, %p618_p10 }
  0x28   : > { %s8815_s26 = scalar_select %p7484_p11, 1, 0 }
  0x29   : > { %s8817_s2 = scalar_select %p7488_p12, 1, 0 }
  0x2a   : > { %8816 = sst [smem:[#allocation44_spill]] %s8815_s26  ;;  %p6413_p2 = pneg %p7492_p13 }
  0x2b   : > { %8818 = sst [smem:[#allocation45_spill]] %s8817_s2  ;;  %s7274_s3 = smov [#allocation6]  }
  0x2c   : > { %s8819_s27 = scalar_select %p7492_p13, 1, 0 }
  0x2d   : > { %s643_s1 = sshll.u32 %s7274_s3, 4  ;;  %p7501_p6 = pnand %p6413_p2, %p8757_p4  ;;  %s644_s1 = int_to_ptr.vmem [resolvable:$true] %s643_s1 }
  0x2e   : > { %8820 = sst [smem:[#allocation46_spill]] %s8819_s27  ;;  %s7275_s0 = smov [#allocation3]  }
  0x2f   : > { %s630_s24 = sshll.u32 %s7275_s0, 4  ;;  %s8822_s20 = sld [smem:[#allocation48_spill]]  ;;  %s7505_s24 = int_to_ptr.vmem [resolvable:$true] %s630_s24 }
  0x30   : > { %p7515_p3 = pneg %p7501_p6 }
  0x35   : > { %s6576_s22 = scalar_lea.hbm %s8822_s20, 256 }
  0x36   : > { %p6577_p0 = scmp.ne.s32.totalorder %s8822_s20, %s6576_s22  ;;  %p6583_p10 = scmp.lt.u32.totalorder %s6576_s22, %s8822_s20 }
  0x38   : > { %p6579_p8 = pnand %p7515_p3, %p6577_p0 }
  0x3a   : > { %p6580_p9 = pneg %p6579_p8 }
  0x3c   : > { %p6585_p2 = pnand %p6583_p10, %p6580_p9 }
  0x3e   : > { %6588 = shalt.err (!%p6585_p2)
}
  0x3f   : > { %s6589_s23 = scalar_lea.vmem %s644_s1, 256  ;;  %p6597_p12 = scmp.lt.s32.totalorder %s644_s1, %s644_s1 }
  0x40   : > { %p6590_p7 = scmp.ne.s32.totalorder %s644_s1, %s6589_s23  ;;  %p6598_p11 = scmp.lt.s32.totalorder %s6589_s23, %s6589_s23 }
  0x42   : > { %p6592_p1 = pnand %p6590_p7, %p7515_p3  ;;  %p6599_p13 = por %p6598_p11, %p6597_p12 }
  0x44   : > { %p6593_p4 = pneg %p6592_p1 }
  0x46   : > { %p6600_p5 = pnand %p6599_p13, %p6593_p4 }
  0x48   : > { %6603 = shalt.err (!%p6600_p5)
}
  0x49   : > { %s7276_s21 = smov 128   ;;  %s7277_s26 = smov 8  }
  0x4a   : > { %6419 = dma.hbm_to_vmem [thread:$0]  (!%p7501_p6), %s8822_s20, 256, %s644_s1, [#allocation7], %s7276_s21, %s7276_s21, %s7277_s26  }
  0x4b   : > { %s8824_s28 = sld [smem:[#allocation47_spill]] }
  0x51   : > { %s8825_s4 = smov %s8824_s28  ;;  %s6604_s27 = scalar_lea.hbm %s8824_s28, 256 }
  0x52   : > { %p6605_p4 = scmp.ne.s32.totalorder %s8825_s4, %s6604_s27  ;;  %p6611_p11 = scmp.lt.u32.totalorder %s6604_s27, %s8825_s4 }
  0x54   : > { %p6607_p5 = pnand %p6605_p4, %p7515_p3 }
  0x56   : > { %p6608_p7 = pneg %p6607_p5 }
  0x58   : > { %p6613_p12 = pnand %p6611_p11, %p6608_p7 }
  0x5a   : > { %6616 = shalt.err (!%p6613_p12)
}
  0x5b   : > { %s6617_s1 = scalar_lea.vmem %s7505_s24, 256  ;;  %p6625_p8 = scmp.lt.s32.totalorder %s7505_s24, %s7505_s24 }
  0x5c   : > { %p6618_p13 = scmp.ne.s32.totalorder %s7505_s24, %s6617_s1  ;;  %p6626_p9 = scmp.lt.s32.totalorder %s6617_s1, %s6617_s1 }
  0x5e   : > { %p6620_p1 = pnand %p6618_p13, %p7515_p3  ;;  %p6627_p10 = por %p6626_p9, %p6625_p8 }
  0x60   : > { %p6621_p0 = pneg %p6620_p1 }
  0x62   : > { %p6628_p2 = pnand %p6627_p10, %p6621_p0 }
  0x64   : > { %6631 = shalt.err (!%p6628_p2)
}
  0x65   : > { %6416 = dma.hbm_to_vmem [thread:$0]  (!%p7501_p6), %s8825_s4, 256, %s7505_s24, [#allocation4], %s7276_s21, %s7276_s21, %s7277_s26  }
  0x66   : > { %s7278_s19 = smov [#allocation8]   ;;  %s7279_s27 = smov [#allocation9]  }
  0x67   : > { %s656_s28 = sshll.u32 %s7278_s19, 4  ;;  %s669_s22 = sshll.u32 %s7279_s27, 4  ;;  %s657_s28 = int_to_ptr.vmem [resolvable:$true] %s656_s28  ;;  %s670_s22 = int_to_ptr.vmem [resolvable:$true] %s669_s22 }
  0x68   : > { %s8826_s0 = sld [smem:[#allocation49_spill]] }
  0x6e   : > { %s6632_s23 = scalar_lea.hbm %s8826_s0, 256 }
  0x6f   : > { %p6633_p4 = scmp.ne.s32.totalorder %s8826_s0, %s6632_s23  ;;  %p6639_p11 = scmp.lt.u32.totalorder %s6632_s23, %s8826_s0 }
  0x71   : > { %p6635_p5 = pnand %p6633_p4, %p7515_p3 }
  0x73   : > { %p6636_p7 = pneg %p6635_p5 }
  0x75   : > { %p6641_p12 = pnand %p6639_p11, %p6636_p7 }
  0x77   : > { %6644 = shalt.err (!%p6641_p12)
}
  0x78   : > { %s6645_s24 = scalar_lea.vmem %s657_s28, 256  ;;  %p6653_p8 = scmp.lt.s32.totalorder %s657_s28, %s657_s28 }
  0x79   : > { %p6646_p13 = scmp.ne.s32.totalorder %s657_s28, %s6645_s24  ;;  %p6654_p9 = scmp.lt.s32.totalorder %s6645_s24, %s6645_s24 }
  0x7b   : > { %p6648_p1 = pnand %p6646_p13, %p7515_p3  ;;  %p6655_p10 = por %p6654_p9, %p6653_p8 }
  0x7d   : > { %p6649_p0 = pneg %p6648_p1 }
  0x7f   : > { %p6656_p2 = pnand %p6655_p10, %p6649_p0 }
  0x81   : > { %6659 = shalt.err (!%p6656_p2)
}
  0x82   : > { %6422 = dma.hbm_to_vmem [thread:$0]  (!%p7501_p6), %s8826_s0, 256, %s657_s28, [#allocation7], %s7276_s21, %s7276_s21, %s7277_s26  }
  0x83   : > { %s8827_s27 = sld [smem:[#allocation50_spill]] }
  0x89   : > { %s6660_s25 = scalar_lea.hbm %s8827_s27, 256 }
  0x8a   : > { %p6661_p4 = scmp.ne.s32.totalorder %s8827_s27, %s6660_s25  ;;  %p6667_p11 = scmp.lt.u32.totalorder %s6660_s25, %s8827_s27 }
  0x8c   : > { %p6663_p5 = pnand %p6661_p4, %p7515_p3 }
  0x8e   : > { %p6664_p7 = pneg %p6663_p5 }
  0x90   : > { %p6669_p12 = pnand %p6667_p11, %p6664_p7 }
  0x92   : > { %6672 = shalt.err (!%p6669_p12)
}
  0x93   : > { %s6673_s24 = scalar_lea.vmem %s670_s22, 256  ;;  %p6681_p8 = scmp.lt.s32.totalorder %s670_s22, %s670_s22 }
  0x94   : > { %p6674_p13 = scmp.ne.s32.totalorder %s670_s22, %s6673_s24  ;;  %p6682_p9 = scmp.lt.s32.totalorder %s6673_s24, %s6673_s24 }
  0x96   : > { %p6676_p1 = pnand %p6674_p13, %p7515_p3  ;;  %p6683_p10 = por %p6682_p9, %p6681_p8 }
  0x98   : > { %p6677_p0 = pneg %p6676_p1 }
  0x9a   : > { %p6684_p2 = pnand %p6683_p10, %p6677_p0 }
  0x9c   : > { %6687 = shalt.err (!%p6684_p2)
}
  0x9d   : > { %6425 = dma.hbm_to_vmem [thread:$0]  (!%p7501_p6), %s8827_s27, 256, %s670_s22, [#allocation10], %s7276_s21, %s7276_s21, %s7277_s26  }
  0x9e   : > { %p8775_p4 = scmp.ge.s32.totalorder %s7272_s30, 2 }
  0x9f   : > { %s683_s3 = sand.u32 (!%p8775_p4), 1, %s7272_s30   ;;  %s7607_s20 = sand.u32 (!%p8775_p4), 1, %s7268_s29  }
  0xa0   : > { %679 = sbr.rel (%p8775_p4) target bundleno = 571 (0x23b), region = 32  ;;  %s7610_s5 = sshll.u32 (!%p8775_p4), %s7607_s20, 5 }
  0xa1   : > { %s7613_s18 = sshll.u32 (!%p8775_p4), %s7272_s30, 9  ;;  %s8828_s22 = sld [smem:[#allocation51_spill]] (!%p8775_p4) }
  0xa2   : > { %s687_s25 = scalar_lea.vmem (!%p8775_p4), [#allocation11], %s7610_s5  ;;  %s7624_s23 = scalar_lea.sflag (!%p8775_p4), [#allocation4], %s683_s3 }
  0xa3   : > { %s694_s2 = sshll.u32 (!%p8775_p4), %s687_s25, 4  ;;  %p8829_p3 = scmp.ne.s32.totalorder (!%p8775_p4), %s8812_s6, 0  ;;  %s7622_s2 = int_to_ptr.vmem [resolvable:$true] %s694_s2 }
  0xa7   : > { %s7619_s19 = scalar_lea.hbm %s8828_s22, %s7613_s18  ;;  %s6692_s28 = scalar_lea.hbm %s8828_s22, 1024 }
  0xa8   : > { %s6688_s1 = scalar_lea.hbm %s7619_s19, 512  ;;  %p6693_p11 = scmp.lt.u32.totalorder %s7619_s19, %s8828_s22 }
  0xa9   : > { %p6689_p6 = scmp.ne.s32.totalorder %s7619_s19, %s6688_s1  ;;  %p6694_p12 = scmp.lt.u32.totalorder %s6692_s28, %s6688_s1 }
  0xaa   : > { %p6696_p1 = scmp.lt.u32.totalorder %s6688_s1, %s7619_s19 }
  0xab   : > { %p6690_p5 = pnand %p6689_p6, %p8829_p3  ;;  %p6695_p13 = por %p6694_p12, %p6693_p11 }
  0xad   : > { %p6691_p7 = pneg %p6690_p5  ;;  %p6697_p0 = por %p6696_p1, %p6695_p13 }
  0xaf   : > { %p6698_p8 = pnand %p6697_p0, %p6691_p7 }
  0xb1   : > { %6701 = shalt.err (!%p6698_p8)
}
  0xb2   : > { %s6702_s3 = scalar_lea.vmem %s7622_s2, 512  ;;  %s7280_s26 = smov [#allocation11]  }
  0xb3   : > { %p6703_p9 = scmp.ne.s32.totalorder %s7622_s2, %s6702_s3  ;;  %s6706_s25 = sshll.u32 %s7280_s26, 4  ;;  %s6707_s25 = int_to_ptr.vmem [resolvable:$false] %s6706_s25 }
  0xb4   : > { %s6708_s17 = scalar_lea.vmem %s6707_s25, 1024  ;;  %p6709_p6 = scmp.lt.s32.totalorder %s7622_s2, %s6707_s25 }
  0xb5   : > { %p6704_p10 = pnand %p6703_p9, %p8829_p3  ;;  %p6710_p5 = scmp.lt.s32.totalorder %s6708_s17, %s6702_s3 }
  0xb7   : > { %p6705_p2 = pneg %p6704_p10  ;;  %p6711_p11 = por %p6710_p5, %p6709_p6 }
  0xb9   : > { %p6712_p12 = pnand %p6711_p11, %p6705_p2 }
  0xbb   : > { %6715 = shalt.err (!%p6712_p12)
}
  0xbc   : > { %s8776_s1 = smov 128   ;;  %s8778_s24 = smov 8  }
  0xbd   : > { %6365 = dma.hbm_to_vmem [thread:$0]  (%p8829_p3), %s7619_s19, 512, %s7622_s2, %s7624_s23, %s8776_s1, %s8776_s1, %s8778_s24  }
  0xbe   : > { %s7652_s28 = sshll.u32 %s7272_s30, 4  ;;  %s707_s16 = scalar_lea.vmem [#allocation12], %s7607_s20 }
  0xbf   : > { %s714_s21 = sshll.u32 %s707_s16, 4  ;;  %s8830_s25 = sld [smem:[#allocation52_spill]]  ;;  %s715_s21 = int_to_ptr.vmem [resolvable:$true] %s714_s21 }
  0xc5   : > { %s712_s17 = scalar_lea.hbm %s8830_s25, %s7652_s28  ;;  %s6720_s27 = scalar_lea.hbm %s8830_s25, 32 }
  0xc6   : > { %s6716_s0 = scalar_lea.hbm %s712_s17, 16  ;;  %p6721_p0 = scmp.lt.u32.totalorder %s712_s17, %s8830_s25 }
  0xc7   : > { %p6717_p7 = scmp.ne.s32.totalorder %s712_s17, %s6716_s0  ;;  %p6722_p8 = scmp.lt.u32.totalorder %s6720_s27, %s6716_s0 }
  0xc8   : > { %p6724_p10 = scmp.lt.u32.totalorder %s6716_s0, %s712_s17 }
  0xc9   : > { %p6718_p13 = pnand %p6717_p7, %p8829_p3  ;;  %p6723_p9 = por %p6722_p8, %p6721_p0 }
  0xcb   : > { %p6719_p1 = pneg %p6718_p13  ;;  %p6725_p2 = por %p6724_p10, %p6723_p9 }
  0xcd   : > { %p6726_p6 = pnand %p6725_p2, %p6719_p1 }
  0xcf   : > { %6729 = shalt.err (!%p6726_p6)
}
  0xd0   : > { %s6730_s16 = scalar_lea.vmem %s715_s21, 16  ;;  %s7283_s3 = smov [#allocation12]  }
  0xd1   : > { %p6731_p5 = scmp.ne.s32.totalorder %s715_s21, %s6730_s16  ;;  %s6734_s26 = sshll.u32 %s7283_s3, 4  ;;  %s6735_s26 = int_to_ptr.vmem [resolvable:$false] %s6734_s26 }
  0xd2   : > { %s6736_s4 = scalar_lea.vmem %s6735_s26, 32  ;;  %p6737_p7 = scmp.lt.s32.totalorder %s715_s21, %s6735_s26 }
  0xd3   : > { %p6732_p11 = pnand %p6731_p5, %p8829_p3  ;;  %p6738_p13 = scmp.lt.s32.totalorder %s6736_s4, %s6730_s16 }
  0xd5   : > { %p6733_p12 = pneg %p6732_p11  ;;  %p6739_p4 = por %p6738_p13, %p6737_p7 }
  0xd7   : > { %p6740_p0 = pnand %p6739_p4, %p6733_p12 }
  0xd9   : > { %6743 = shalt.err (!%p6740_p0)
}
  0xda   : > { %6366 = dma.hbm_to_vmem [thread:$0]  (%p8829_p3), %s712_s17, 16, %s715_s21, %s7624_s23  }
  0xdb   : > { %s8831_s22 = sld [smem:[#allocation53_spill]]  ;;  %s725_s2 = scalar_lea.vmem [#allocation13], %s7610_s5 }
  0xdc   : > { %s732_s16 = sshll.u32 %s725_s2, 4  ;;  %s8832_s7 = sld [smem:[#allocation54_spill]]  ;;  %s7679_s16 = int_to_ptr.vmem [resolvable:$true] %s732_s16 }
  0xe1   : > { %s7676_s19 = scalar_lea.hbm %s8831_s22, %s7613_s18  ;;  %s6748_s0 = scalar_lea.hbm %s8831_s22, 1024 }
  0xe2   : > { %s7685_s4 = scalar_lea.hbm %s8832_s7, %s7652_s28  ;;  %s6744_s1 = scalar_lea.hbm %s7676_s19, 512 }
  0xe3   : > { %p6745_p4 = scmp.ne.s32.totalorder %s7676_s19, %s6744_s1  ;;  %p6749_p9 = scmp.lt.u32.totalorder %s7676_s19, %s8831_s22 }
  0xe4   : > { %p6750_p10 = scmp.lt.u32.totalorder %s6748_s0, %s6744_s1  ;;  %p6752_p6 = scmp.lt.u32.totalorder %s6744_s1, %s7676_s19 }
  0xe5   : > { %p6746_p1 = pnand %p6745_p4, %p8829_p3 }
  0xe6   : > { %p6751_p2 = por %p6750_p10, %p6749_p9 }
  0xe7   : > { %p6747_p8 = pneg %p6746_p1 }
  0xe8   : > { %p6753_p5 = por %p6752_p6, %p6751_p2 }
  0xea   : > { %p6754_p11 = pnand %p6753_p5, %p6747_p8 }
  0xec   : > { %6757 = shalt.err (!%p6754_p11)
}
  0xed   : > { %s6758_s2 = scalar_lea.vmem %s7679_s16, 512  ;;  %s7284_s3 = smov [#allocation13]  }
  0xee   : > { %p6759_p12 = scmp.ne.s32.totalorder %s7679_s16, %s6758_s2  ;;  %s6762_s26 = sshll.u32 %s7284_s3, 4  ;;  %s6763_s26 = int_to_ptr.vmem [resolvable:$false] %s6762_s26 }
  0xef   : > { %s6764_s24 = scalar_lea.vmem %s6763_s26, 1024  ;;  %p6765_p0 = scmp.lt.s32.totalorder %s7679_s16, %s6763_s26 }
  0xf0   : > { %p6760_p7 = pnand %p6759_p12, %p8829_p3  ;;  %p6766_p4 = scmp.lt.s32.totalorder %s6764_s24, %s6758_s2 }
  0xf2   : > { %p6761_p13 = pneg %p6760_p7  ;;  %p6767_p1 = por %p6766_p4, %p6765_p0 }
  0xf4   : > { %p6768_p9 = pnand %p6767_p1, %p6761_p13 }
  0xf6   : > { %6771 = shalt.err (!%p6768_p9)
}
  0xf7   : > { %s8833_s1 = smov 8   ;;  %s8834_s21 = smov 128  }
  0xf8   : > { %6367 = dma.hbm_to_vmem [thread:$0]  (%p8829_p3), %s7676_s19, 512, %s7679_s16, %s7624_s23, %s8834_s21, %s8834_s21, %s8833_s1  }
  0xf9   : > { %s745_s17 = scalar_lea.vmem [#allocation14], %s7607_s20  ;;  %s8835_s8 = sld [smem:[#allocation55_spill]] }
  0xfa   : > { %s752_s0 = sshll.u32 %s745_s17, 4  ;;  %s6772_s26 = scalar_lea.hbm %s7685_s4, 16  ;;  %s753_s0 = int_to_ptr.vmem [resolvable:$true] %s752_s0 }
  0xfb   : > { %p6773_p8 = scmp.ne.s32.totalorder %s7685_s4, %s6772_s26  ;;  %s6776_s25 = scalar_lea.hbm %s8832_s7, 32 }
  0xfc   : > { %p6777_p6 = scmp.lt.u32.totalorder %s7685_s4, %s8832_s7  ;;  %p6778_p5 = scmp.lt.u32.totalorder %s6776_s25, %s6772_s26 }
  0xfd   : > { %p6774_p10 = pnand %p6773_p8, %p8829_p3  ;;  %p6780_p12 = scmp.lt.u32.totalorder %s6772_s26, %s7685_s4 }
  0xfe   : > { %p6779_p11 = por %p6778_p5, %p6777_p6 }
  0xff   : > { %s7717_s3 = scalar_lea.hbm %s8835_s8, %s7613_s18  ;;  %p6775_p2 = pneg %p6774_p10 }
 0x100   : > { %p6781_p7 = por %p6780_p12, %p6779_p11 }
 0x102   : > { %p6782_p13 = pnand %p6781_p7, %p6775_p2 }
 0x104   : > { %6785 = shalt.err (!%p6782_p13)
}
 0x105   : > { %s6786_s19 = scalar_lea.vmem %s753_s0, 16  ;;  %s7285_s16 = smov [#allocation14]  }
 0x106   : > { %p6787_p0 = scmp.ne.s32.totalorder %s753_s0, %s6786_s19  ;;  %s6790_s17 = sshll.u32 %s7285_s16, 4  ;;  %s6791_s17 = int_to_ptr.vmem [resolvable:$false] %s6790_s17 }
 0x107   : > { %s6792_s22 = scalar_lea.vmem %s6791_s17, 32  ;;  %p6793_p9 = scmp.lt.s32.totalorder %s753_s0, %s6791_s17 }
 0x108   : > { %p6788_p4 = pnand %p6787_p0, %p8829_p3  ;;  %p6794_p8 = scmp.lt.s32.totalorder %s6792_s22, %s6786_s19 }
 0x10a   : > { %p6789_p1 = pneg %p6788_p4  ;;  %p6795_p10 = por %p6794_p8, %p6793_p9 }
 0x10c   : > { %p6796_p5 = pnand %p6795_p10, %p6789_p1 }
 0x10e   : > { %6799 = shalt.err (!%p6796_p5)
}
 0x10f   : > { %6368 = dma.hbm_to_vmem [thread:$0]  (%p8829_p3), %s7685_s4, 16, %s753_s0, %s7624_s23  }
 0x110   : > { %s763_s29 = scalar_lea.vmem [#allocation15], %s7610_s5  ;;  %s7744_s2 = scalar_lea.hbm %s8723_s9, %s7652_s28 }
 0x111   : > { %s770_s30 = sshll.u32 %s763_s29, 4  ;;  %s6800_s26 = scalar_lea.hbm %s7717_s3, 512  ;;  %s7738_s30 = int_to_ptr.vmem [resolvable:$true] %s770_s30 }
 0x112   : > { %p6801_p2 = scmp.ne.s32.totalorder %s7717_s3, %s6800_s26  ;;  %s6804_s16 = scalar_lea.hbm %s8835_s8, 1024 }
 0x113   : > { %p6805_p12 = scmp.lt.u32.totalorder %s7717_s3, %s8835_s8  ;;  %p6806_p7 = scmp.lt.u32.totalorder %s6804_s16, %s6800_s26 }
 0x114   : > { %p6802_p6 = pnand %p6801_p2, %p8829_p3  ;;  %p6808_p0 = scmp.lt.u32.totalorder %s6800_s26, %s7717_s3 }
 0x115   : > { %p6807_p13 = por %p6806_p7, %p6805_p12 }
 0x116   : > { %p6803_p11 = pneg %p6802_p6 }
 0x117   : > { %p6809_p4 = por %p6808_p0, %p6807_p13 }
 0x119   : > { %p6810_p1 = pnand %p6809_p4, %p6803_p11 }
 0x11b   : > { %6813 = shalt.err (!%p6810_p1)
}
 0x11c   : > { %s6814_s0 = scalar_lea.vmem %s7738_s30, 512  ;;  %s7286_s22 = smov [#allocation15]  }
 0x11d   : > { %p6815_p9 = scmp.ne.s32.totalorder %s7738_s30, %s6814_s0  ;;  %s6818_s29 = sshll.u32 %s7286_s22, 4  ;;  %s6819_s29 = int_to_ptr.vmem [resolvable:$false] %s6818_s29 }
 0x11e   : > { %s6820_s25 = scalar_lea.vmem %s6819_s29, 1024  ;;  %p6821_p5 = scmp.lt.s32.totalorder %s7738_s30, %s6819_s29 }
 0x11f   : > { %p6816_p8 = pnand %p6815_p9, %p8829_p3  ;;  %p6822_p2 = scmp.lt.s32.totalorder %s6820_s25, %s6814_s0 }
 0x121   : > { %p6817_p10 = pneg %p6816_p8  ;;  %p6823_p6 = por %p6822_p2, %p6821_p5 }
 0x123   : > { %p6824_p12 = pnand %p6823_p6, %p6817_p10 }
 0x125   : > { %6827 = shalt.err (!%p6824_p12)
}
 0x126   : > { %6369 = dma.hbm_to_vmem [thread:$0]  (%p8829_p3), %s7717_s3, 512, %s7738_s30, %s7624_s23, %s8834_s21, %s8834_s21, %s8833_s1  }
 0x127   : > { %s783_s27 = scalar_lea.vmem [#allocation16], %s7607_s20  ;;  %s7776_s16 = scalar_lea.hbm %s8724_s10, %s7613_s18 }
 0x128   : > { %s790_s26 = sshll.u32 %s783_s27, 4  ;;  %s6828_s17 = scalar_lea.hbm %s7744_s2, 16  ;;  %s791_s26 = int_to_ptr.vmem [resolvable:$true] %s790_s26 }
 0x129   : > { %p6829_p11 = scmp.ne.s32.totalorder %s7744_s2, %s6828_s17  ;;  %s6832_s22 = scalar_lea.hbm %s8723_s9, 32 }
 0x12a   : > { %p6833_p0 = scmp.lt.u32.totalorder %s7744_s2, %s8723_s9  ;;  %p6834_p4 = scmp.lt.u32.totalorder %s6832_s22, %s6828_s17 }
 0x12b   : > { %p6830_p7 = pnand %p6829_p11, %p8829_p3  ;;  %p6836_p9 = scmp.lt.u32.totalorder %s6828_s17, %s7744_s2 }
 0x12c   : > { %p6835_p1 = por %p6834_p4, %p6833_p0 }
 0x12d   : > { %p6831_p13 = pneg %p6830_p7 }
 0x12e   : > { %p6837_p8 = por %p6836_p9, %p6835_p1 }
 0x130   : > { %p6838_p10 = pnand %p6837_p8, %p6831_p13 }
 0x132   : > { %6841 = shalt.err (!%p6838_p10)
}
 0x133   : > { %s6842_s3 = scalar_lea.vmem %s791_s26, 16  ;;  %s7287_s30 = smov [#allocation16]  }
 0x134   : > { %p6843_p5 = scmp.ne.s32.totalorder %s791_s26, %s6842_s3  ;;  %s6846_s27 = sshll.u32 %s7287_s30, 4  ;;  %s6847_s27 = int_to_ptr.vmem [resolvable:$false] %s6846_s27 }
 0x135   : > { %s6848_s24 = scalar_lea.vmem %s6847_s27, 32  ;;  %p6849_p12 = scmp.lt.s32.totalorder %s791_s26, %s6847_s27 }
 0x136   : > { %p6844_p2 = pnand %p6843_p5, %p8829_p3  ;;  %p6850_p11 = scmp.lt.s32.totalorder %s6848_s24, %s6842_s3 }
 0x138   : > { %p6845_p6 = pneg %p6844_p2  ;;  %p6851_p7 = por %p6850_p11, %p6849_p12 }
 0x13a   : > { %p6852_p0 = pnand %p6851_p7, %p6845_p6 }
 0x13c   : > { %6855 = shalt.err (!%p6852_p0)
}
 0x13d   : > { %6370 = dma.hbm_to_vmem [thread:$0]  (%p8829_p3), %s7744_s2, 16, %s791_s26, %s7624_s23  }
 0x13e   : > { %s801_s19 = scalar_lea.vmem [#allocation17], %s7610_s5  ;;  %s7803_s22 = scalar_lea.hbm %s8725_s11, %s7652_s28 }
 0x13f   : > { %s808_s17 = sshll.u32 %s801_s19, 4  ;;  %s6856_s29 = scalar_lea.hbm %s7776_s16, 512  ;;  %s7797_s17 = int_to_ptr.vmem [resolvable:$true] %s808_s17 }
 0x140   : > { %p6857_p13 = scmp.ne.s32.totalorder %s7776_s16, %s6856_s29  ;;  %s6860_s30 = scalar_lea.hbm %s8724_s10, 1024 }
 0x141   : > { %p6861_p9 = scmp.lt.u32.totalorder %s7776_s16, %s8724_s10  ;;  %p6862_p8 = scmp.lt.u32.totalorder %s6860_s30, %s6856_s29 }
 0x142   : > { %p6858_p4 = pnand %p6857_p13, %p8829_p3  ;;  %p6864_p5 = scmp.lt.u32.totalorder %s6856_s29, %s7776_s16 }
 0x143   : > { %p6863_p10 = por %p6862_p8, %p6861_p9 }
 0x144   : > { %p6859_p1 = pneg %p6858_p4 }
 0x145   : > { %p6865_p2 = por %p6864_p5, %p6863_p10 }
 0x147   : > { %p6866_p6 = pnand %p6865_p2, %p6859_p1 }
 0x149   : > { %6869 = shalt.err (!%p6866_p6)
}
 0x14a   : > { %s6870_s26 = scalar_lea.vmem %s7797_s17, 512  ;;  %s7288_s24 = smov [#allocation17]  }
 0x14b   : > { %p6871_p12 = scmp.ne.s32.totalorder %s7797_s17, %s6870_s26  ;;  %s6874_s19 = sshll.u32 %s7288_s24, 4  ;;  %s6875_s19 = int_to_ptr.vmem [resolvable:$false] %s6874_s19 }
 0x14c   : > { %s6876_s4 = scalar_lea.vmem %s6875_s19, 1024  ;;  %p6877_p0 = scmp.lt.s32.totalorder %s7797_s17, %s6875_s19 }
 0x14d   : > { %p6872_p11 = pnand %p6871_p12, %p8829_p3  ;;  %p6878_p13 = scmp.lt.s32.totalorder %s6876_s4, %s6870_s26 }
 0x14f   : > { %p6873_p7 = pneg %p6872_p11  ;;  %p6879_p4 = por %p6878_p13, %p6877_p0 }
 0x151   : > { %p6880_p9 = pnand %p6879_p4, %p6873_p7 }
 0x153   : > { %6883 = shalt.err (!%p6880_p9)
}
 0x154   : > { %6371 = dma.hbm_to_vmem [thread:$0]  (%p8829_p3), %s7776_s16, 512, %s7797_s17, %s7624_s23, %s8834_s21, %s8834_s21, %s8833_s1  }
 0x155   : > { %s821_s0 = scalar_lea.vmem [#allocation18], %s7607_s20  ;;  %s7835_s30 = scalar_lea.hbm %s8726_s12, %s7613_s18 }
 0x156   : > { %s828_s29 = sshll.u32 %s821_s0, 4  ;;  %s6884_s27 = scalar_lea.hbm %s7803_s22, 16  ;;  %s829_s29 = int_to_ptr.vmem [resolvable:$true] %s828_s29 }
 0x157   : > { %p6885_p1 = scmp.ne.s32.totalorder %s7803_s22, %s6884_s27  ;;  %s6888_s24 = scalar_lea.hbm %s8725_s11, 32 }
 0x158   : > { %p6889_p5 = scmp.lt.u32.totalorder %s7803_s22, %s8725_s11  ;;  %p6890_p2 = scmp.lt.u32.totalorder %s6888_s24, %s6884_s27 }
 0x159   : > { %p6886_p8 = pnand %p6885_p1, %p8829_p3  ;;  %p6892_p12 = scmp.lt.u32.totalorder %s6884_s27, %s7803_s22 }
 0x15a   : > { %p6891_p6 = por %p6890_p2, %p6889_p5 }
 0x15b   : > { %p6887_p10 = pneg %p6886_p8 }
 0x15c   : > { %p6893_p11 = por %p6892_p12, %p6891_p6 }
 0x15e   : > { %p6894_p7 = pnand %p6893_p11, %p6887_p10 }
 0x160   : > { %6897 = shalt.err (!%p6894_p7)
}
 0x161   : > { %s6898_s16 = scalar_lea.vmem %s829_s29, 16  ;;  %s7289_s17 = smov [#allocation18]  }
 0x162   : > { %p6899_p0 = scmp.ne.s32.totalorder %s829_s29, %s6898_s16  ;;  %s6902_s0 = sshll.u32 %s7289_s17, 4  ;;  %s6903_s0 = int_to_ptr.vmem [resolvable:$false] %s6902_s0 }
 0x163   : > { %s6904_s25 = scalar_lea.vmem %s6903_s0, 32  ;;  %p6905_p9 = scmp.lt.s32.totalorder %s829_s29, %s6903_s0 }
 0x164   : > { %p6900_p13 = pnand %p6899_p0, %p8829_p3  ;;  %p6906_p1 = scmp.lt.s32.totalorder %s6904_s25, %s6898_s16 }
 0x166   : > { %p6901_p4 = pneg %p6900_p13  ;;  %p6907_p8 = por %p6906_p1, %p6905_p9 }
 0x168   : > { %p6908_p2 = pnand %p6907_p8, %p6901_p4 }
 0x16a   : > { %6911 = shalt.err (!%p6908_p2)
}
 0x16b   : > { %6372 = dma.hbm_to_vmem [thread:$0]  (%p8829_p3), %s7803_s22, 16, %s829_s29, %s7624_s23  }
 0x16c   : > { %s839_s3 = scalar_lea.vmem [#allocation19], %s7610_s5  ;;  %s7862_s24 = scalar_lea.hbm %s8727_s13, %s7652_s28 }
 0x16d   : > { %s846_s27 = sshll.u32 %s839_s3, 4  ;;  %s6912_s19 = scalar_lea.hbm %s7835_s30, 512  ;;  %s7856_s27 = int_to_ptr.vmem [resolvable:$true] %s846_s27 }
 0x16e   : > { %p6913_p10 = scmp.ne.s32.totalorder %s7835_s30, %s6912_s19  ;;  %s6916_s17 = scalar_lea.hbm %s8726_s12, 1024 }
 0x16f   : > { %p6917_p12 = scmp.lt.u32.totalorder %s7835_s30, %s8726_s12  ;;  %p6918_p11 = scmp.lt.u32.totalorder %s6916_s17, %s6912_s19 }
 0x170   : > { %p6914_p5 = pnand %p6913_p10, %p8829_p3  ;;  %p6920_p0 = scmp.lt.u32.totalorder %s6912_s19, %s7835_s30 }
 0x171   : > { %p6919_p7 = por %p6918_p11, %p6917_p12 }
 0x172   : > { %p6915_p6 = pneg %p6914_p5 }
 0x173   : > { %p6921_p13 = por %p6920_p0, %p6919_p7 }
 0x175   : > { %p6922_p4 = pnand %p6921_p13, %p6915_p6 }
 0x177   : > { %6925 = shalt.err (!%p6922_p4)
}
 0x178   : > { %s6926_s29 = scalar_lea.vmem %s7856_s27, 512  ;;  %s7290_s25 = smov [#allocation19]  }
 0x179   : > { %p6927_p9 = scmp.ne.s32.totalorder %s7856_s27, %s6926_s29  ;;  %s6930_s3 = sshll.u32 %s7290_s25, 4  ;;  %s6931_s3 = int_to_ptr.vmem [resolvable:$false] %s6930_s3 }
 0x17a   : > { %s6932_s2 = scalar_lea.vmem %s6931_s3, 1024  ;;  %p6933_p2 = scmp.lt.s32.totalorder %s7856_s27, %s6931_s3 }
 0x17b   : > { %p6928_p1 = pnand %p6927_p9, %p8829_p3  ;;  %p6934_p10 = scmp.lt.s32.totalorder %s6932_s2, %s6926_s29 }
 0x17d   : > { %p6929_p8 = pneg %p6928_p1  ;;  %p6935_p5 = por %p6934_p10, %p6933_p2 }
 0x17f   : > { %p6936_p12 = pnand %p6935_p5, %p6929_p8 }
 0x181   : > { %6939 = shalt.err (!%p6936_p12)
}
 0x182   : > { %6373 = dma.hbm_to_vmem [thread:$0]  (%p8829_p3), %s7835_s30, 512, %s7856_s27, %s7624_s23, %s8834_s21, %s8834_s21, %s8833_s1  }
 0x183   : > { %s859_s26 = scalar_lea.vmem [#allocation20], %s7607_s20  ;;  %s7894_s17 = scalar_lea.hbm %s8728_s14, %s7613_s18 }
 0x184   : > { %s866_s19 = sshll.u32 %s859_s26, 4  ;;  %s6940_s0 = scalar_lea.hbm %s7862_s24, 16  ;;  %s867_s19 = int_to_ptr.vmem [resolvable:$true] %s866_s19 }
 0x185   : > { %p6941_p6 = scmp.ne.s32.totalorder %s7862_s24, %s6940_s0  ;;  %s6944_s25 = scalar_lea.hbm %s8727_s13, 32 }
 0x186   : > { %p6945_p0 = scmp.lt.u32.totalorder %s7862_s24, %s8727_s13  ;;  %p6946_p13 = scmp.lt.u32.totalorder %s6944_s25, %s6940_s0 }
 0x187   : > { %p6942_p11 = pnand %p6941_p6, %p8829_p3  ;;  %p6948_p9 = scmp.lt.u32.totalorder %s6940_s0, %s7862_s24 }
 0x188   : > { %p6947_p4 = por %p6946_p13, %p6945_p0 }
 0x189   : > { %p6943_p7 = pneg %p6942_p11 }
 0x18a   : > { %p6949_p1 = por %p6948_p9, %p6947_p4 }
 0x18c   : > { %p6950_p8 = pnand %p6949_p1, %p6943_p7 }
 0x18e   : > { %6953 = shalt.err (!%p6950_p8)
}
 0x18f   : > { %s6954_s18 = scalar_lea.vmem %s867_s19, 16  ;;  %s7291_s30 = smov [#allocation20]  }
 0x190   : > { %p6955_p2 = scmp.ne.s32.totalorder %s867_s19, %s6954_s18  ;;  %s6958_s27 = sshll.u32 %s7291_s30, 4  ;;  %s6959_s27 = int_to_ptr.vmem [resolvable:$false] %s6958_s27 }
 0x191   : > { %s6960_s26 = scalar_lea.vmem %s6959_s27, 32  ;;  %p6961_p12 = scmp.lt.s32.totalorder %s867_s19, %s6959_s27 }
 0x192   : > { %p6956_p10 = pnand %p6955_p2, %p8829_p3  ;;  %p6962_p6 = scmp.lt.s32.totalorder %s6960_s26, %s6954_s18 }
 0x194   : > { %p6957_p5 = pneg %p6956_p10  ;;  %p6963_p11 = por %p6962_p6, %p6961_p12 }
 0x196   : > { %p6964_p0 = pnand %p6963_p11, %p6957_p5 }
 0x198   : > { %6967 = shalt.err (!%p6964_p0)
}
 0x199   : > { %6374 = dma.hbm_to_vmem [thread:$0]  (%p8829_p3), %s7862_s24, 16, %s867_s19, %s7624_s23  }
 0x19a   : > { %s877_s4 = scalar_lea.vmem [#allocation21], %s7610_s5  ;;  %s7921_s29 = scalar_lea.hbm %s8729_s15, %s7652_s28 }
 0x19b   : > { %s884_s16 = sshll.u32 %s877_s4, 4  ;;  %s6968_s25 = scalar_lea.hbm %s7894_s17, 512  ;;  %s7915_s16 = int_to_ptr.vmem [resolvable:$true] %s884_s16 }
 0x19c   : > { %p6969_p7 = scmp.ne.s32.totalorder %s7894_s17, %s6968_s25  ;;  %s6972_s18 = scalar_lea.hbm %s8728_s14, 1024 }
 0x19d   : > { %p6973_p9 = scmp.lt.u32.totalorder %s7894_s17, %s8728_s14  ;;  %p6974_p1 = scmp.lt.u32.totalorder %s6972_s18, %s6968_s25 }
 0x19e   : > { %p6970_p13 = pnand %p6969_p7, %p8829_p3  ;;  %p6976_p2 = scmp.lt.u32.totalorder %s6968_s25, %s7894_s17 }
 0x19f   : > { %p6975_p8 = por %p6974_p1, %p6973_p9 }
 0x1a0   : > { %p6971_p4 = pneg %p6970_p13 }
 0x1a1   : > { %p6977_p10 = por %p6976_p2, %p6975_p8 }
 0x1a3   : > { %p6978_p5 = pnand %p6977_p10, %p6971_p4 }
 0x1a5   : > { %6981 = shalt.err (!%p6978_p5)
}
 0x1a6   : > { %s6982_s5 = scalar_lea.vmem %s7915_s16, 512  ;;  %s7292_s19 = smov [#allocation21]  }
 0x1a7   : > { %p6983_p12 = scmp.ne.s32.totalorder %s7915_s16, %s6982_s5  ;;  %s6986_s27 = sshll.u32 %s7292_s19, 4  ;;  %s6987_s27 = int_to_ptr.vmem [resolvable:$false] %s6986_s27 }
 0x1a8   : > { %s6988_s26 = scalar_lea.vmem %s6987_s27, 1024  ;;  %p6989_p0 = scmp.lt.s32.totalorder %s7915_s16, %s6987_s27 }
 0x1a9   : > { %p6984_p6 = pnand %p6983_p12, %p8829_p3  ;;  %p6990_p7 = scmp.lt.s32.totalorder %s6988_s26, %s6982_s5 }
 0x1ab   : > { %p6985_p11 = pneg %p6984_p6  ;;  %p6991_p13 = por %p6990_p7, %p6989_p0 }
 0x1ad   : > { %p6992_p9 = pnand %p6991_p13, %p6985_p11 }
 0x1af   : > { %6995 = shalt.err (!%p6992_p9)
}
 0x1b0   : > { %6375 = dma.hbm_to_vmem [thread:$0]  (%p8829_p3), %s7894_s17, 512, %s7915_s16, %s7624_s23, %s8834_s21, %s8834_s21, %s8833_s1  }
 0x1b1   : > { %s897_s4 = scalar_lea.vmem [#allocation22], %s7607_s20  ;;  %s5769_s22 = sshll.u32 %s7607_s20, 6 }
 0x1b2   : > { %s904_s0 = sshll.u32 %s897_s4, 4  ;;  %s6996_s25 = scalar_lea.hbm %s7921_s29, 16  ;;  %s905_s0 = int_to_ptr.vmem [resolvable:$true] %s904_s0 }
 0x1b3   : > { %p6997_p4 = scmp.ne.s32.totalorder %s7921_s29, %s6996_s25  ;;  %s7000_s18 = scalar_lea.hbm %s8729_s15, 32 }
 0x1b4   : > { %p7001_p2 = scmp.lt.u32.totalorder %s7921_s29, %s8729_s15  ;;  %p7002_p10 = scmp.lt.u32.totalorder %s7000_s18, %s6996_s25 }
 0x1b5   : > { %p6998_p1 = pnand %p6997_p4, %p8829_p3  ;;  %p7004_p12 = scmp.lt.u32.totalorder %s6996_s25, %s7921_s29 }
 0x1b6   : > { %p7003_p5 = por %p7002_p10, %p7001_p2 }
 0x1b7   : > { %p6999_p8 = pneg %p6998_p1 }
 0x1b8   : > { %p7005_p6 = por %p7004_p12, %p7003_p5 }
 0x1ba   : > { %p7006_p11 = pnand %p7005_p6, %p6999_p8 }
 0x1bc   : > { %7009 = shalt.err (!%p7006_p11)
}
 0x1bd   : > { %s7010_s17 = scalar_lea.vmem %s905_s0, 16  ;;  %s7293_s16 = smov [#allocation22]  }
 0x1be   : > { %p7011_p0 = scmp.ne.s32.totalorder %s905_s0, %s7010_s17  ;;  %s7014_s5 = sshll.u32 %s7293_s16, 4  ;;  %s7015_s5 = int_to_ptr.vmem [resolvable:$false] %s7014_s5 }
 0x1bf   : > { %s7016_s19 = scalar_lea.vmem %s7015_s5, 32  ;;  %p7017_p9 = scmp.lt.s32.totalorder %s905_s0, %s7015_s5 }
 0x1c0   : > { %p7012_p7 = pnand %p7011_p0, %p8829_p3  ;;  %p7018_p4 = scmp.lt.s32.totalorder %s7016_s19, %s7010_s17 }
 0x1c2   : > { %p7013_p13 = pneg %p7012_p7  ;;  %p7019_p1 = por %p7018_p4, %p7017_p9 }
 0x1c4   : > { %p7020_p2 = pnand %p7019_p1, %p7013_p13 }
 0x1c6   : > { %7023 = shalt.err (!%p7020_p2)
}
 0x1c7   : > { %s8836_s27 = sld [smem:[#allocation39_spill]]  ;;  %s915_s4 = scalar_lea.vmem [#allocation23], %s5769_s22 }
 0x1c8   : > { %6376 = dma.hbm_to_vmem [thread:$0]  (%p8829_p3), %s7921_s29, 16, %s905_s0, %s7624_s23  }
 0x1c9   : > { %s922_s25 = sshll.u32 %s915_s4, 4  ;;  %s8837_s18 = sld [smem:[#allocation56_spill]]  ;;  %s7976_s25 = int_to_ptr.vmem [resolvable:$true] %s922_s25 }
 0x1cd   : > { %s5909_s26 = sshll.u32 %s8836_s27, 10 }
 0x1cf   : > { %s7974_s30 = scalar_lea.hbm %s8837_s18, %s5909_s26  ;;  %s7028_s22 = scalar_lea.hbm %s8837_s18, 2048 }
 0x1d0   : > { %s7024_s24 = scalar_lea.hbm %s7974_s30, 1024  ;;  %p7029_p12 = scmp.lt.u32.totalorder %s7974_s30, %s8837_s18 }
 0x1d1   : > { %p7025_p8 = scmp.ne.s32.totalorder %s7974_s30, %s7024_s24  ;;  %p7030_p6 = scmp.lt.u32.totalorder %s7028_s22, %s7024_s24 }
 0x1d2   : > { %p7032_p0 = scmp.lt.u32.totalorder %s7024_s24, %s7974_s30 }
 0x1d3   : > { %p7026_p10 = pnand %p7025_p8, %p8829_p3  ;;  %p7031_p11 = por %p7030_p6, %p7029_p12 }
 0x1d5   : > { %p7027_p5 = pneg %p7026_p10  ;;  %p7033_p7 = por %p7032_p0, %p7031_p11 }
 0x1d7   : > { %p7034_p13 = pnand %p7033_p7, %p7027_p5 }
 0x1d9   : > { %7037 = shalt.err (!%p7034_p13)
}
 0x1da   : > { %s7038_s5 = scalar_lea.vmem %s7976_s25, 1024  ;;  %s7294_s19 = smov [#allocation23]  }
 0x1db   : > { %p7039_p9 = scmp.ne.s32.totalorder %s7976_s25, %s7038_s5  ;;  %s7042_s26 = sshll.u32 %s7294_s19, 4  ;;  %s7043_s26 = int_to_ptr.vmem [resolvable:$false] %s7042_s26 }
 0x1dc   : > { %s7044_s4 = scalar_lea.vmem %s7043_s26, 2048  ;;  %p7045_p2 = scmp.lt.s32.totalorder %s7976_s25, %s7043_s26 }
 0x1dd   : > { %p7040_p4 = pnand %p7039_p9, %p8829_p3  ;;  %p7046_p8 = scmp.lt.s32.totalorder %s7044_s4, %s7038_s5 }
 0x1df   : > { %p7041_p1 = pneg %p7040_p4  ;;  %p7047_p10 = por %p7046_p8, %p7045_p2 }
 0x1e1   : > { %p7048_p12 = pnand %p7047_p10, %p7041_p1 }
 0x1e3   : > { %7051 = shalt.err (!%p7048_p12)
}
 0x1e4   : > { %6377 = dma.hbm_to_vmem [thread:$0]  (%p8829_p3), %s7974_s30, 1024, %s7976_s25, %s7624_s23, %s8834_s21, %s8834_s21, %s8833_s1  }
 0x1e5   : > { %s8838_s24 = sld [smem:[#allocation57_spill]]  ;;  %s935_s0 = scalar_lea.vmem [#allocation24], %s7607_s20 }
 0x1e6   : > { %s942_s22 = sshll.u32 %s935_s0, 4  ;;  %s5773_s17 = sshll.u32 %s7607_s20, 2  ;;  %s943_s22 = int_to_ptr.vmem [resolvable:$true] %s942_s22 }
 0x1eb   : > { %s8007_s29 = scalar_lea.hbm %s8838_s24, %s7652_s28  ;;  %s7056_s21 = scalar_lea.hbm %s8838_s24, 32 }
 0x1ec   : > { %s7052_s16 = scalar_lea.hbm %s8007_s29, 16  ;;  %p7057_p0 = scmp.lt.u32.totalorder %s8007_s29, %s8838_s24 }
 0x1ed   : > { %p7053_p5 = scmp.ne.s32.totalorder %s8007_s29, %s7052_s16  ;;  %p7058_p7 = scmp.lt.u32.totalorder %s7056_s21, %s7052_s16 }
 0x1ee   : > { %p7060_p9 = scmp.lt.u32.totalorder %s7052_s16, %s8007_s29 }
 0x1ef   : > { %p7054_p6 = pnand %p7053_p5, %p8829_p3  ;;  %p7059_p13 = por %p7058_p7, %p7057_p0 }
 0x1f1   : > { %p7055_p11 = pneg %p7054_p6  ;;  %p7061_p4 = por %p7060_p9, %p7059_p13 }
 0x1f3   : > { %p7062_p1 = pnand %p7061_p4, %p7055_p11 }
 0x1f5   : > { %7065 = shalt.err (!%p7062_p1)
}
 0x1f6   : > { %s7066_s30 = scalar_lea.vmem %s943_s22, 16  ;;  %s7295_s19 = smov [#allocation24]  }
 0x1f7   : > { %p7067_p2 = scmp.ne.s32.totalorder %s943_s22, %s7066_s30  ;;  %s7070_s26 = sshll.u32 %s7295_s19, 4  ;;  %s7071_s26 = int_to_ptr.vmem [resolvable:$false] %s7070_s26 }
 0x1f8   : > { %s7072_s4 = scalar_lea.vmem %s7071_s26, 32  ;;  %p7073_p12 = scmp.lt.s32.totalorder %s943_s22, %s7071_s26 }
 0x1f9   : > { %p7068_p8 = pnand %p7067_p2, %p8829_p3  ;;  %p7074_p5 = scmp.lt.s32.totalorder %s7072_s4, %s7066_s30 }
 0x1fb   : > { %p7069_p10 = pneg %p7068_p8  ;;  %p7075_p6 = por %p7074_p5, %p7073_p12 }
 0x1fd   : > { %p7076_p0 = pnand %p7075_p6, %p7069_p10 }
 0x1ff   : > { %7079 = shalt.err (!%p7076_p0)
}
 0x200   : > { %6378 = dma.hbm_to_vmem [thread:$0]  (%p8829_p3), %s8007_s29, 16, %s943_s22, %s7624_s23  }
 0x201   : > { %s5774_s3 = sshll.u32 %s8836_s27, 6  ;;  %s953_s2 = scalar_lea.vmem [#allocation25], %s5773_s17 }
 0x202   : > { %s960_s0 = sshll.u32 %s953_s2, 4  ;;  %s8839_s1 = sld [smem:[#allocation58_spill]]  ;;  %s961_s0 = int_to_ptr.vmem [resolvable:$true] %s960_s0 }
 0x208   : > { %s958_s21 = scalar_lea.hbm %s8839_s1, %s5774_s3  ;;  %s7084_s19 = scalar_lea.hbm %s8839_s1, 128 }
 0x209   : > { %s7080_s25 = scalar_lea.hbm %s958_s21, 64  ;;  %p7085_p9 = scmp.lt.u32.totalorder %s958_s21, %s8839_s1 }
 0x20a   : > { %p7081_p11 = scmp.ne.s32.totalorder %s958_s21, %s7080_s25  ;;  %p7086_p4 = scmp.lt.u32.totalorder %s7084_s19, %s7080_s25 }
 0x20b   : > { %p7088_p2 = scmp.lt.u32.totalorder %s7080_s25, %s958_s21 }
 0x20c   : > { %p7082_p7 = pnand %p7081_p11, %p8829_p3  ;;  %p7087_p1 = por %p7086_p4, %p7085_p9 }
 0x20e   : > { %p7083_p13 = pneg %p7082_p7  ;;  %p7089_p8 = por %p7088_p2, %p7087_p1 }
 0x210   : > { %p7090_p10 = pnand %p7089_p8, %p7083_p13 }
 0x212   : > { %7093 = shalt.err (!%p7090_p10)
}
 0x213   : > { %s7094_s26 = scalar_lea.vmem %s961_s0, 64  ;;  %s7296_s4 = smov [#allocation25]  }
 0x214   : > { %p7095_p12 = scmp.ne.s32.totalorder %s961_s0, %s7094_s26  ;;  %s7098_s2 = sshll.u32 %s7296_s4, 4  ;;  %s7099_s2 = int_to_ptr.vmem [resolvable:$false] %s7098_s2 }
 0x215   : > { %s7100_s16 = scalar_lea.vmem %s7099_s2, 128  ;;  %p7101_p0 = scmp.lt.s32.totalorder %s961_s0, %s7099_s2 }
 0x216   : > { %p7096_p5 = pnand %p7095_p12, %p8829_p3  ;;  %p7102_p11 = scmp.lt.s32.totalorder %s7100_s16, %s7094_s26 }
 0x218   : > { %p7097_p6 = pneg %p7096_p5  ;;  %p7103_p7 = por %p7102_p11, %p7101_p0 }
 0x21a   : > { %p7104_p4 = pnand %p7103_p7, %p7097_p6 }
 0x21c   : > { %7107 = shalt.err (!%p7104_p4)
}
 0x21d   : > { %6379 = dma.hbm_to_vmem [thread:$0]  (%p8829_p3), %s958_s21, 64, %s961_s0, %s7624_s23  }
 0x21e   : > { %s8840_s28 = sld [smem:[#allocation59_spill]]  ;;  %s971_s29 = scalar_lea.vmem [#allocation26], %s5773_s17 }
 0x21f   : > { %s978_s22 = sshll.u32 %s971_s29, 4  ;;  %s979_s22 = int_to_ptr.vmem [resolvable:$true] %s978_s22 }
 0x224   : > { %s8841_s19 = smov %s8840_s28  ;;  %s8055_s30 = scalar_lea.hbm %s8840_s28, %s5774_s3 }
 0x225   : > { %s7108_s26 = scalar_lea.hbm %s8055_s30, 64  ;;  %s7112_s21 = scalar_lea.hbm %s8841_s19, 128 }
 0x226   : > { %p7109_p13 = scmp.ne.s32.totalorder %s8055_s30, %s7108_s26  ;;  %p7113_p2 = scmp.lt.u32.totalorder %s8055_s30, %s8841_s19 }
 0x227   : > { %p7114_p8 = scmp.lt.u32.totalorder %s7112_s21, %s7108_s26  ;;  %p7116_p12 = scmp.lt.u32.totalorder %s7108_s26, %s8055_s30 }
 0x228   : > { %p7110_p9 = pnand %p7109_p13, %p8829_p3 }
 0x229   : > { %p7115_p10 = por %p7114_p8, %p7113_p2 }
 0x22a   : > { %p7111_p1 = pneg %p7110_p9 }
 0x22b   : > { %p7117_p5 = por %p7116_p12, %p7115_p10 }
 0x22d   : > { %p7118_p6 = pnand %p7117_p5, %p7111_p1 }
 0x22f   : > { %7121 = shalt.err (!%p7118_p6)
}
 0x230   : > { %s7122_s20 = scalar_lea.vmem %s979_s22, 64  ;;  %s7297_s17 = smov [#allocation26]  }
 0x231   : > { %p7123_p0 = scmp.ne.s32.totalorder %s979_s22, %s7122_s20  ;;  %s7126_s2 = sshll.u32 %s7297_s17, 4  ;;  %s7127_s2 = int_to_ptr.vmem [resolvable:$false] %s7126_s2 }
 0x232   : > { %s7128_s16 = scalar_lea.vmem %s7127_s2, 128  ;;  %p7129_p4 = scmp.lt.s32.totalorder %s979_s22, %s7127_s2 }
 0x233   : > { %p7124_p11 = pnand %p7123_p0, %p8829_p3  ;;  %p7130_p13 = scmp.lt.s32.totalorder %s7128_s16, %s7122_s20 }
 0x235   : > { %p7125_p7 = pneg %p7124_p11  ;;  %p7131_p9 = por %p7130_p13, %p7129_p4 }
 0x237   : > { %p7132_p2 = pnand %p7131_p9, %p7125_p7 }
 0x239   : > { %7135 = shalt.err (!%p7132_p2)
}
 0x23a   : > { %6380 = dma.hbm_to_vmem [thread:$0]  (%p8829_p3), %s8055_s30, 64, %s979_s22, %s7624_s23  }
 0x23b PF: > { %s8842_s5 = sld [smem:[#allocation46_spill]] }
 0x241   : > { %p8843_p1 = scmp.ne.s32.totalorder %s8842_s5, 0 }
 0x242   : > { %s8844_s25 = sld [smem:[#allocation40_spill]] (!%p8843_p1) }
 0x243   : > { %987 = sbr.rel (%p8843_p1) target bundleno = 8142 (0x1fce), region = 100 }
 0x248   : > { %p8845_p8 = scmp.eq.s32.totalorder (!%p8843_p1), %s8844_s25, 0 }
 0x24a   : > { %7235 = dma.done.wait (%p8845_p8), [#allocation4], 256   ;;  %p8846_p10 = pmov %p8845_p8 }
 0x24b   : > { %p8847_p12 = pmov %p8845_p8 }
 0x24c   : > { %7237 = vsyncadd (%p8846_p10), [#allocation4], 4294967040 }
 0x24d   : > { %7239 = dma.done.wait (%p8847_p12), [#allocation7], 512   ;;  %p8848_p5 = pmov %p8845_p8 }
 0x24f   : > { %7241 = vsyncadd (%p8848_p5), [#allocation7], 4294966784  ;;  %p8849_p6 = pmov %p8848_p5 }
 0x250   : > { %p8850_p3 = pmov %p8848_p5 }
 0x251   : > { %7243 = dma.done.wait (%p8849_p6), [#allocation10], 256  }
 0x252   : > { %7245 = vsyncadd (%p8850_p3), [#allocation10], 4294967040  ;;  %s8851_s6 = sld [smem:[#allocation37_spill]]  ;;  %s8852_s23 = sld [smem:[#allocation43_spill]] }
 0x253   : > { %s8786_s28 = sand.u32 1, %s8844_s25  }
 0x254   : > { %s1006_s22 = scalar_lea.sflag [#allocation4], %s8786_s28 }
 0x258   : > { %s8093_s30 = sand.u32 1, %s8851_s6   ;;  %p8853_p0 = scmp.ne.s32.totalorder %s8852_s23, 0 }
 0x259   : > { %s5782_s29 = sshll.u32 %s8093_s30, 5 }
 0x25a   : > { %s8098_s26 = scalar_lea.vmem [#allocation11], %s5782_s29 }
 0x25b   : > { %7247 = dma.done.wait (%p8853_p0), %s1006_s22, 4336  }
 0x25c   : > { %7249 = vsyncadd (%p8853_p0), %s1006_s22, 4294962960  ;;  %s5788_s0 = sshll.u32 %s8093_s30, 6  ;;  %s5789_s27 = sshll.u32 %s8093_s30, 2 }
 0x25d   : > { %s8107_s4 = scalar_lea.vmem [#allocation13], %s5782_s29  ;;  %s8110_s20 = scalar_lea.vmem [#allocation15], %s5782_s29 }
 0x25e   : > { %s1051_s17 = scalar_lea.vmem [#allocation16], %s8093_s30  ;;  %s8113_s2 = scalar_lea.vmem [#allocation17], %s5782_s29 }
 0x25f   : > { %s1068_s16 = scalar_lea.vmem [#allocation18], %s8093_s30  ;;  %s8116_s5 = scalar_lea.vmem [#allocation19], %s5782_s29 }
 0x260   : > { %s8119_s23 = scalar_lea.vmem [#allocation21], %s5782_s29  ;;  %s8122_s28 = scalar_lea.vmem [#allocation23], %s5788_s0 }
 0x261   : > { %s8125_s7 = scalar_lea.vmem [#allocation25], %s5789_s27  ;;  %s8127_s21 = scalar_lea.vmem [#allocation26], %s5789_s27 }
 0x262   : > { %s8129_s3 = scalar_lea.vmem [#allocation28], %s5788_s0  ;;  %s8131_s8 = scalar_lea.vmem [#allocation30], %s5788_s0 }
 0x263   : > { %p8854_p11 = scmp.ne.s32.totalorder %s8844_s25, 0 }
 0x264   : > { %v1275_v0 = vld [vmem:[#allocation3] sm:$0xff] (!%p8854_p11)  ;;  %vm1277_vm0 = vcmask (!%p8854_p11), 261120   ;;  %v1276_v1 = vld [vmem:[#allocation3 + $0x8] sm:$0xff] (!%p8854_p11) }
 0x265   : > { %1274 = sbr.rel (%p8854_p11) target bundleno = 620 (0x26c), region = 184  ;;  %1278 = vst.msk [vmem:[#allocation2] sm:$0xff] (!%p8854_p11), %vm1277_vm0, %v1275_v0  ;;  %1279 = vst.msk [vmem:[#allocation2 + $0x8] sm:$0xff] (!%p8854_p11), %vm1277_vm0, %v1276_v1 }
 0x26c PF: > { %v1284_v2 = vld [vmem:[%s8098_s26] sm:$0xff]  ;;  %v1285_v3 = vld [vmem:[%s8098_s26 + $0x8] sm:$0xff]  ;;  %v1286_v4 = vld [vmem:[%s8098_s26 + $0x10] sm:$0xff]  ;;  %vm1295_vm1 = vcmask 261120   ;;  %v7298_v10 = vmov 0.0   ;;  %vm7299_vm2 = vmmov 0  }
 0x26d   : > { %v6297_v5 = vpack.c.bf16 %v1285_v3, %v1284_v2  ;;  %v1287_v6 = vld [vmem:[%s8098_s26 + $0x18] sm:$0xff]  ;;  %v8139_v7 = vld [vmem:[#allocation2] sm:$0xff]  ;;  %6055 = vmatprep.subr.mxu0 %v7298_v10  ;;  %6057 = vmatprep.mubr.msk.f32.mxu0 %vm7299_vm2, %v7298_v10  ;;  %s8855_s25 = scalar_lea.vmem [#allocation12], %s8093_s30  ;;  %s7300_s29 = smov 96   ;;  %vm1382_vm3 = vcmask 64512   ;;  %v8180_v20 = vld [vmem:[#allocation8] sm:$0xff] }
 0x26e   : > { %v6301_v8 = vpack.c.bf16 %v1287_v6, %v1286_v4  ;;  %6042 = vmatprep.mubr.msk.f32.mxu1 %vm1295_vm1, %v8139_v7  ;;  %v8143_v9 = vld [vmem:[#allocation2 + $0x8] sm:$0xff]  ;;  %v5794_v11 = vld [vmem:[%s8855_s25] ss:$0 sm:$0xff]  ;;  %s7301_s26 = smov 64   ;;  %s7302_s0 = smov 120   ;;  %v8183_v25 = vld [vmem:[#allocation8 + $0x8] sm:$0xff] }
 0x26f   : > { %6298 = vmatprep.subr.bf16.mxu1 %v6297_v5  ;;  %s7303_s27 = smov 88   ;;  %s8788_s25 = smov 80   ;;  %vm5130_vm4 = vcmask 523264  }
 0x270   : > { %6300 = vmatpush3.bf16.msra.mxu1 %v6297_v5  ;;  %s7306_s1 = smov 112   ;;  %s7307_s22 = smov 48  }
 0x271   : > { %6302 = vmatprep.subr.bf16.mxu1 %v6301_v8  ;;  %s7308_s6 = smov 72  }
 0x274   : > { %6304 = vmatpush3.bf16.msra.mxu1 %v6301_v8 }
 0x275   : > { %6045 = vmatprep.subr.mxu1 %v7298_v10 }
 0x277   : > { %6043 = vmatmul.mubr.msk.f32.vlgmr.msra.gmra.mrb[0].mxu1 %vm1295_vm1, %v8143_v9 }
 0x278   : > { %6047 = vmatprep.mubr.msk.f32.mxu1 %vm7299_vm2, %v7298_v10 }
 0x34a   : > { %v6044_v12 = vpop.f32.mrb[0].mxu1 }
 0x34b   : > { %v1368_v13 = vpop.f32.mrb[1].mxu1  ;;  %v8159_v15 = vadd.f32 %v6044_v12, %v5794_v11 }
 0x34c   : > { %v8155_v14 = vadd.f32 %v5794_v11, %v1368_v13 }
 0x34e   : > { %1380 = vrot.lane.b32.xlu0 %v8155_v14, %s7300_s29 }
 0x352   : > { %1458 = vrot.lane.b32.xlu0 %v8159_v15, %s7300_s29 }
 0x356   : > { %1638 = vrot.lane.b32.xlu0 %v8159_v15, %s7301_s26 }
 0x35a   : > { %1793 = vrot.lane.b32.xlu0 %v8159_v15, %s7302_s0 }
 0x3c0   : > { %v1381_v16 = vpop.permute.xlu0 %1380 }
 0x3c1   : > { %6046 = vmatpush3.xpose.msk.msra.mxu1 %vm1382_vm3, %v1381_v16 }
 0x3c2   : > { %6050 = vmatprep.subr.mxu1 %v7298_v10 }
 0x3c4   : > { %6048 = vmatmul.mubr.msk.f32.vlgmr.msra.gmra.mrb[2].mxu1 %vm1382_vm3, %v8155_v14  ;;  %v1459_v17 = vpop.permute.xlu0 %1458 }
 0x3c5   : > { %6051 = vmatpush3.xpose.msk.msra.mxu1 %vm1382_vm3, %v1459_v17  ;;  %6052 = vmatprep.mubr.msk.f32.mxu1 %vm7299_vm2, %v7298_v10 }
 0x3c6   : > { %6060 = vmatprep.subr.mxu1 %v7298_v10 }
 0x3c8   : > { %6053 = vmatmul.mubr.msk.f32.vlgmr.msra.gmra.mrb[4].mxu1 %vm1382_vm3, %v8159_v15  ;;  %v1639_v18 = vpop.permute.xlu0 %1638 }
 0x3c9   : > { %6061 = vmatpush3.msra.mxu1 %v1639_v18  ;;  %6062 = vmatprep.mubr.msk.f32.mxu1 %vm7299_vm2, %v7298_v10 }
 0x3ca   : > { %6070 = vmatprep.subr.mxu1 %v7298_v10 }
 0x3cc   : > { %v1794_v31 = vpop.permute.xlu0 %1793 }
 0x497   : > { %v1453_v19 = vpop.f32.mrb[2].mxu1 }
 0x498   : > { %v1534_v21 = vmul.f32 0.35355338, %v1453_v19  ;;  %v6049_v22 = vpop.f32.mrb[3].mxu1 }
 0x49a   : > { %v1536_v23 = vadd.f32 %v1534_v21, %v8180_v20 }
 0x49b   : > { %v1530_v24 = vpop.f32.mrb[4].mxu1 }
 0x49c   : > { %v1535_v26 = vmul.f32 0.35355338, %v1530_v24  ;;  %v6054_v27 = vpop.f32.mrb[5].mxu1  ;;  %v1538_v28 = vsel %vm1382_vm3, %v1536_v23, -inf }
 0x49d   : > { %1539 = vmax.xlane.f32.xlu0 %v1538_v28 }
 0x49e   : > { %v1537_v29 = vadd.f32 %v1535_v26, %v8183_v25 }
 0x4a0   : > { %v1541_v30 = vsel %vm1382_vm3, %v1537_v29, -inf }
 0x4a1   : > { %1542 = vmax.xlane.f32.xlu1 %v1541_v30 }
 0x4b3   : > { %1562 = vrot.lane.b32.xlu0 %v8155_v14, %s7301_s26  ;;  %s7305_s26 = smov 56  }
 0x4b7   : > { %1715 = vrot.lane.b32.xlu0 %v8155_v14, %s7302_s0 }
 0x52a   : > { %v1540_v32 = vpop.xlane.xlu0 %1539 }
 0x52b   : > { %v1544_v39 = vsub.f32 %v1536_v23, %v1540_v32  ;;  %v1714_v32 = vld [vmem:[%s8107_s4] sm:$0xff] }
 0x52d   : > { %v1546_v40 = vmul.f32 1.442695, %v1544_v39 }
 0x52e   : > { %v1543_v33 = vpop.xlane.xlu1 %1542  ;;  %v1563_v34 = vpop.permute.xlu0 %1562 }
 0x52f   : > { %v1545_v35 = vsub.f32 %v1537_v29, %v1543_v33  ;;  %6056 = vmatpush3.msra.mxu0 %v1563_v34 }
 0x530   : > { %6065 = vmatprep.subr.mxu0 %v7298_v10 }
 0x531   : > { %v1548_v36 = vmul.f32 1.442695, %v1545_v35 }
 0x532   : > { %v1716_v51 = vpop.permute.xlu0 %1715 }
 0x533   : > { %6500 = vpow2.f32 %v1548_v36 }
 0x534   : > { %6502 = vpow2.f32 %v1546_v40 }
 0x53d   : > { %v6501_v37 = vpop.eup %6500 }
 0x53e   : > { %v1553_v38 = vsel %vm1382_vm3, %v6501_v37, 0.0  ;;  %v6503_v41 = vpop.eup %6502 }
 0x53f   : > { %1554 = vadd.xlane.f32.xlu1 %v1553_v38  ;;  %v1550_v42 = vsel %vm1382_vm3, %v6503_v41, 0.0 }
 0x550   : > { %1795 = vrot.lane.b32.xlu1 %v8159_v15, %s7303_s27 }
 0x574   : > { %1551 = vadd.xlane.f32.xlu1 %v1550_v42 }
 0x585   : > { %1717 = vrot.lane.b32.xlu1 %v8155_v14, %s7303_s27 }
 0x589   : > { %2217 = vrot.lane.b32.xlu1 %v8155_v14, %s8788_s25 }
 0x5cc   : > { %v1555_v43 = vpop.xlane.xlu1 %1554 }
 0x5cd   : > { %6504 = vrcp.f32 %v1555_v43 }
 0x5d0   : > { %v1796_v46 = vpop.permute.xlu1 %1795 }
 0x5d7   : > { %v6505_v44 = vpop.eup %6504 }
 0x5d8   : > { %v1559_v45 = vmul.f32 %v6505_v44, %v6501_v37 }
 0x5da   : > { %1561 = vst.msk [vmem:[%s8129_s3 + $0x8] sm:$0xff] %vm1382_vm3, %v1559_v45  ;;  %6063 = vmatmul.mubr.msk.f32.vlgmr.msra.gmra.mrb[6].mxu1 %vm1382_vm3, %v1559_v45 }
 0x5db   : > { %6071 = vmatpush3.xpose.msk.msra.mxu1 %vm1382_vm3, %v1796_v46  ;;  %6072 = vmatprep.mubr.msk.f32.mxu1 %vm7299_vm2, %v7298_v10 }
 0x5dc   : > { %6080 = vmatprep.subr.mxu1 %v7298_v10 }
 0x5de   : > { %6073 = vmatmul.mubr.msk.f32.vlgmr.msra.gmra.mrb[8].mxu1 %vm1382_vm3, %v1794_v31  ;;  %v2052_v31 = vld [vmem:[%s8107_s4 + $0x8] sm:$0xff] }
 0x5df   : > { %6082 = vmatprep.mubr.msk.f32.mxu1 %vm7299_vm2, %v7298_v10 }
 0x601   : > { %v1552_v47 = vpop.xlane.xlu1 %1551 }
 0x602   : > { %6506 = vrcp.f32 %v1552_v47 }
 0x605   : > { %v1718_v50 = vpop.permute.xlu1 %1717 }
 0x609   : > { %v2218_v22 = vpop.permute.xlu1 %2217 }
 0x60c   : > { %v6507_v48 = vpop.eup %6506 }
 0x60d   : > { %v1557_v49 = vmul.f32 %v6507_v48, %v6503_v41 }
 0x60f   : > { %1560 = vst.msk [vmem:[%s8129_s3] sm:$0xff] %vm1382_vm3, %v1557_v49  ;;  %6058 = vmatmul.mubr.msk.f32.vlgmr.msra.gmra.mrb[0].mxu0 %vm1382_vm3, %v1557_v49 }
 0x610   : > { %6066 = vmatpush3.xpose.msk.msra.mxu0 %vm1382_vm3, %v1718_v50  ;;  %6067 = vmatprep.mubr.msk.f32.mxu0 %vm7299_vm2, %v7298_v10 }
 0x611   : > { %6075 = vmatprep.subr.mxu0 %v7298_v10 }
 0x613   : > { %6068 = vmatmul.mubr.msk.f32.vlgmr.msra.gmra.mrb[2].mxu0 %vm1382_vm3, %v1716_v51 }
 0x614   : > { %6077 = vmatprep.mubr.msk.f32.mxu0 %vm7299_vm2, %v7298_v10 }
 0x6ad   : > { %v8221_v52 = vpop.f32.mrb[6].mxu1 }
 0x6ae   : > { %v6064_v53 = vpop.f32.mrb[7].mxu1 }
 0x6b1   : > { %v1867_v54 = vpop.f32.mrb[8].mxu1 }
 0x6b2   : > { %v1872_v55 = vmul.f32 0.35355338, %v1867_v54  ;;  %v6074_v56 = vpop.f32.mrb[9].mxu1 }
 0x6b4   : > { %v1874_v57 = vadd.f32 %v1872_v55, %v8183_v25 }
 0x6b6   : > { %v1878_v58 = vsel %vm1382_vm3, %v1874_v57, -inf }
 0x6b7   : > { %1879 = vmax.xlane.f32.xlu0 %v1878_v58  ;;  %v2552_v58 = vld [vmem:[%s8107_s4 + $0x10] sm:$0xff] }
 0x6cd   : > { %1976 = vrot.lane.b32.xlu0 %v8159_v15, %s7305_s26 }
 0x6d1   : > { %2215 = vrot.lane.b32.xlu0 %v8155_v14, %s7306_s1 }
 0x6d5   : > { %2295 = vrot.lane.b32.xlu0 %v8159_v15, %s8788_s25  ;;  %s7309_s25 = smov 104  }
 0x6e2   : > { %v8230_v59 = vpop.f32.mrb[0].mxu0 }
 0x6e3   : > { %v6059_v60 = vpop.f32.mrb[1].mxu0 }
 0x6e6   : > { %v1789_v61 = vpop.f32.mrb[2].mxu0 }
 0x6e7   : > { %v6069_v62 = vpop.f32.mrb[3].mxu0  ;;  %v1871_v63 = vmul.f32 0.35355338, %v1789_v61 }
 0x6e9   : > { %v1873_v0 = vadd.f32 %v1871_v63, %v8180_v20 }
 0x6eb   : > { %v1875_v1 = vsel %vm1382_vm3, %v1873_v0, -inf }
 0x6f4   : > { %1876 = vmax.xlane.f32.xlu0 %v1875_v1 }
 0x70a   : > { %1900 = vrot.lane.b32.xlu0 %v8155_v14, %s7305_s26  ;;  %s8856_s26 = scalar_lea.vmem [#allocation14], %s8093_s30 }
 0x70e   : > { %2400 = vrot.lane.b32.xlu0 %v8155_v14, %s7307_s22 }
 0x712   : > { %2638 = vrot.lane.b32.xlu0 %v8155_v14, %s7308_s6 }
 0x716   : > { %2716 = vrot.lane.b32.xlu0 %v8159_v15, %s7308_s6 }
 0x71a   : > { %2636 = vrot.lane.b32.xlu0 %v8155_v14, %s7309_s25 }
 0x71e   : > { %2714 = vrot.lane.b32.xlu0 %v8159_v15, %s7309_s25 }
 0x744   : > { %v1880_v2 = vpop.xlane.xlu0 %1879 }
 0x745   : > { %v1882_v3 = vsub.f32 %v1874_v57, %v1880_v2 }
 0x747   : > { %v1885_v4 = vmul.f32 1.442695, %v1882_v3 }
 0x748   : > { %v1977_v5 = vpop.permute.xlu0 %1976 }
 0x749   : > { %6508 = vpow2.f32 %v1885_v4  ;;  %6081 = vmatpush3.msra.mxu1 %v1977_v5 }
 0x74a   : > { %6095 = vmatprep.subr.mxu1 %v7298_v10 }
 0x74c   : > { %v2216_v11 = vpop.permute.xlu0 %2215 }
 0x750   : > { %v2296_v12 = vpop.permute.xlu0 %2295 }
 0x753   : > { %v6509_v6 = vpop.eup %6508 }
 0x754   : > { %v1890_v8 = vsel %vm1382_vm3, %v6509_v6, 0.0 }
 0x755   : > { %1891 = vadd.xlane.f32.xlu1 %v1890_v8 }
 0x766   : > { %2293 = vrot.lane.b32.xlu1 %v8159_v15, %s7306_s1 }
 0x781   : > { %v1877_v13 = vpop.xlane.xlu0 %1876 }
 0x782   : > { %v1881_v16 = vsub.f32 %v1873_v0, %v1877_v13 }
 0x784   : > { %v1883_v17 = vmul.f32 1.442695, %v1881_v16 }
 0x785   : > { %v1901_v18 = vpop.permute.xlu0 %1900 }
 0x786   : > { %6510 = vpow2.f32 %v1883_v17  ;;  %6076 = vmatpush3.msra.mxu0 %v1901_v18 }
 0x787   : > { %6085 = vmatprep.subr.mxu0 %v2052_v31 }
 0x789   : > { %v2401_v47 = vpop.permute.xlu0 %2400 }
 0x78d   : > { %v2639_v62 = vpop.permute.xlu0 %2638 }
 0x790   : > { %v6511_v19 = vpop.eup %6510 }
 0x791   : > { %v1887_v21 = vsel %vm1382_vm3, %v6511_v19, 0.0  ;;  %v2717_v2 = vpop.permute.xlu0 %2716 }
 0x792   : > { %1888 = vadd.xlane.f32.xlu1 %v1887_v21 }
 0x795   : > { %v2637_v4 = vpop.permute.xlu0 %2636 }
 0x7e2   : > { %v1892_v23 = vpop.xlane.xlu1 %1891 }
 0x7e3   : > { %6512 = vrcp.f32 %v1892_v23 }
 0x7e6   : > { %v2294_v27 = vpop.permute.xlu1 %2293 }
 0x7ed   : > { %v6513_v24 = vpop.eup %6512 }
 0x7ee   : > { %v1896_v26 = vmul.f32 %v6513_v24, %v6509_v6 }
 0x7f0   : > { %5808 = vst.msk [vmem:[%s8129_s3 + $0x18] sm:$0xff] %vm1382_vm3, %v1896_v26  ;;  %6083 = vmatmul.mubr.msk.f32.vlgmr.msra.gmra.mrb[10].mxu1 %vm1382_vm3, %v1896_v26 }
 0x7f1   : > { %6096 = vmatpush3.xpose.msk.msra.mxu1 %vm1382_vm3, %v2218_v22  ;;  %6097 = vmatprep.mubr.msk.f32.mxu1 %vm7299_vm2, %v7298_v10 }
 0x7f2   : > { %6100 = vmatprep.subr.mxu1 %v7298_v10 }
 0x7f4   : > { %6098 = vmatmul.mubr.msk.f32.vlgmr.msra.gmra.mrb[12].mxu1 %vm1382_vm3, %v2216_v11 }
 0x7f5   : > { %6101 = vmatpush3.xpose.msk.msra.mxu1 %vm1382_vm3, %v2296_v12  ;;  %6102 = vmatprep.mubr.msk.f32.mxu1 %vm7299_vm2, %v7298_v10  ;;  %v2715_v12 = vpop.permute.xlu0 %2714 }
 0x7f6   : > { %6110 = vmatprep.subr.mxu1 %v7298_v10 }
 0x7f8   : > { %6103 = vmatmul.mubr.msk.f32.vlgmr.msra.gmra.mrb[14].mxu1 %vm1382_vm3, %v2294_v27 }
 0x7f9   : > { %6112 = vmatprep.mubr.msk.f32.mxu1 %vm7299_vm2, %v7298_v10 }
 0x81f   : > { %v1889_v28 = vpop.xlane.xlu1 %1888 }
 0x820   : > { %6514 = vrcp.f32 %v1889_v28 }
 0x82a   : > { %v6515_v29 = vpop.eup %6514 }
 0x82b   : > { %v1894_v30 = vmul.f32 %v6515_v29, %v6511_v19 }
 0x82d   : > { %5807 = vst.msk [vmem:[%s8129_s3 + $0x10] sm:$0xff] %vm1382_vm3, %v1894_v30  ;;  %6078 = vmatmul.mubr.msk.f32.vlgmr.msra.gmra.mrb[4].mxu0 %vm1382_vm3, %v1894_v30 }
 0x82e   : > { %6086 = vmatpush3.msra.mxu0 %v2052_v31 }
 0x82f   : > { %6090 = vmatprep.subr.mxu0 %v1714_v32 }
 0x8c3   : > { %v2048_v33 = vpop.f32.mrb[10].mxu1 }
 0x8c4   : > { %v6084_v34 = vpop.f32.mrb[11].mxu1 }
 0x8c7   : > { %v2289_v35 = vpop.f32.mrb[12].mxu1 }
 0x8c8   : > { %v2371_v36 = vmul.f32 0.35355338, %v2289_v35  ;;  %v6099_v37 = vpop.f32.mrb[13].mxu1 }
 0x8ca   : > { %v2373_v38 = vadd.f32 %v2371_v36, %v8180_v20 }
 0x8cb   : > { %v2367_v39 = vpop.f32.mrb[14].mxu1 }
 0x8cc   : > { %v2372_v40 = vmul.f32 0.35355338, %v2367_v39  ;;  %v6104_v41 = vpop.f32.mrb[15].mxu1  ;;  %v2375_v42 = vsel %vm1382_vm3, %v2373_v38, -inf  ;;  %v2973_v39 = vld [vmem:[%s8107_s4 + $0x18] sm:$0xff]  ;;  %s8857_s4 = smov 80  }
 0x8cd   : > { %2376 = vmax.xlane.f32.xlu1 %v2375_v42 }
 0x8ce   : > { %v2374_v43 = vadd.f32 %v2372_v40, %v8183_v25 }
 0x8d0   : > { %v2378_v44 = vsel %vm1382_vm3, %v2374_v43, -inf }
 0x8d1   : > { %2379 = vmax.xlane.f32.xlu1 %v2378_v44 }
 0x900   : > { %v1972_v45 = vpop.f32.mrb[4].mxu0 }
 0x901   : > { %v6079_v46 = vpop.f32.mrb[5].mxu0  ;;  %6087 = vmatprep.mubr.msk.f32.mxu0 %vm1382_vm3, %v1972_v45 }
 0x902   : > { %6088 = vmatmul.mubr.msk.f32.vlgmr.msra.gmra.mrb[6].mxu0 %vm1382_vm3, %v2048_v33  ;;  %v5835_v46 = vld [vmem:[%s8856_s26] ss:$0 sm:$0xff] }
 0x903   : > { %6092 = vmatprep.mubr.msk.f32.mxu0 %vm1382_vm3, %v8230_v59  ;;  %6091 = vmatpush3.msra.mxu0 %v1714_v32 }
 0x904   : > { %6105 = vmatprep.subr.mxu0 %v7298_v10 }
 0x90a   : > { %6093 = vmatmul.mubr.msk.f32.vlgmr.msra.gmra.mrb[6].mxu0 %vm1382_vm3, %v8221_v52 }
 0x90b   : > { %6106 = vmatpush3.msra.mxu0 %v2401_v47  ;;  %6107 = vmatprep.mubr.msk.f32.mxu0 %vm7299_vm2, %v7298_v10 }
 0x90c   : > { %6115 = vmatprep.subr.mxu0 %v2552_v58 }
 0x95a   : > { %v2377_v48 = vpop.xlane.xlu1 %2376 }
 0x95b   : > { %v2381_v49 = vsub.f32 %v2373_v38, %v2377_v48 }
 0x95d   : > { %v2383_v50 = vmul.f32 1.442695, %v2381_v49 }
 0x95e   : > { %v2380_v51 = vpop.xlane.xlu1 %2379 }
 0x95f   : > { %6516 = vpow2.f32 %v2383_v50  ;;  %v2382_v53 = vsub.f32 %v2374_v43, %v2380_v51 }
 0x961   : > { %v2385_v54 = vmul.f32 1.442695, %v2382_v53 }
 0x963   : > { %6518 = vpow2.f32 %v2385_v54 }
 0x969   : > { %v6517_v55 = vpop.eup %6516 }
 0x96a   : > { %v2387_v56 = vsel %vm1382_vm3, %v6517_v55, 0.0 }
 0x96b   : > { %2388 = vadd.xlane.f32.xlu1 %v2387_v56 }
 0x96d   : > { %v6519_v57 = vpop.eup %6518 }
 0x96e   : > { %v2390_v52 = vsel %vm1382_vm3, %v6519_v57, 0.0 }
 0x96f   : > { %2391 = vadd.xlane.f32.xlu1 %v2390_v52 }
 0x980   : > { %2476 = vrot.lane.b32.xlu1 %v8159_v15, %s7307_s22  ;;  %s7310_s22 = smov 40  }
 0x9f8   : > { %v2389_v59 = vpop.xlane.xlu1 %2388 }
 0x9f9   : > { %6520 = vrcp.f32 %v2389_v59 }
 0x9fc   : > { %v2392_v60 = vpop.xlane.xlu1 %2391 }
 0x9fd   : > { %6522 = vrcp.f32 %v2392_v60 }
 0xa00   : > { %v2477_v61 = vpop.permute.xlu1 %2476 }
 0xa01   : > { %6111 = vmatpush3.msra.mxu1 %v2477_v61 }
 0xa02   : > { %6120 = vmatprep.subr.mxu1 %v7298_v10 }
 0xa03   : > { %v6521_v63 = vpop.eup %6520 }
 0xa04   : > { %v2394_v0 = vmul.f32 %v6521_v63, %v6517_v55  ;;  %v3201_v63 = vld [vmem:[%s8113_s2] sm:$0xff] }
 0xa06   : > { %5819 = vst.msk [vmem:[%s8129_s3 + $0x20] sm:$0xff] %vm1382_vm3, %v2394_v0  ;;  %6108 = vmatmul.mubr.msk.f32.vlgmr.msra.gmra.mrb[8].mxu0 %vm1382_vm3, %v2394_v0  ;;  %v3202_v0 = vld [vmem:[%s8113_s2 + $0x8] sm:$0xff] }
 0xa07   : > { %v6523_v1 = vpop.eup %6522  ;;  %6116 = vmatpush3.msra.mxu0 %v2552_v58 }
 0xa08   : > { %v2396_v3 = vmul.f32 %v6523_v1, %v6519_v57  ;;  %6125 = vmatprep.subr.mxu0 %v7298_v10  ;;  %v6313_v1 = vpack.c.bf16 %v3202_v0, %v3201_v63 }
 0xa0a   : > { %5820 = vst.msk [vmem:[%s8129_s3 + $0x28] sm:$0xff] %vm1382_vm3, %v2396_v3  ;;  %6113 = vmatmul.mubr.msk.f32.vlgmr.msra.gmra.mrb[16].mxu1 %vm1382_vm3, %v2396_v3  ;;  %v3110_v3 = vld [vmem:[%s8110_s20 + $0x8] sm:$0xff] }
 0xa0b   : > { %6121 = vmatpush3.xpose.msk.msra.mxu1 %vm1382_vm3, %v2639_v62  ;;  %6122 = vmatprep.mubr.msk.f32.mxu1 %vm7299_vm2, %v7298_v10 }
 0xa0c   : > { %6130 = vmatprep.subr.mxu1 %v7298_v10 }
 0xa0e   : > { %6123 = vmatmul.mubr.msk.f32.vlgmr.msra.gmra.mrb[18].mxu1 %vm1382_vm3, %v2637_v4  ;;  %v3203_v4 = vld [vmem:[%s8113_s2 + $0x10] sm:$0xff] }
 0xa0f   : > { %6132 = vmatprep.mubr.msk.f32.mxu1 %vm7299_vm2, %v7298_v10 }
 0xad9   : > { %v2472_v5 = vpop.f32.mrb[8].mxu0 }
 0xada   : > { %v6109_v6 = vpop.f32.mrb[9].mxu0  ;;  %6117 = vmatprep.mubr.msk.f32.mxu0 %vm1382_vm3, %v2472_v5 }
 0xadb   : > { %v3204_v6 = vld [vmem:[%s8113_s2 + $0x18] sm:$0xff] }
 0xadd   : > { %v2548_v8 = vpop.f32.mrb[16].mxu1 }
 0xade   : > { %v6114_v11 = vpop.f32.mrb[17].mxu1  ;;  %6118 = vmatmul.mubr.msk.f32.vlgmr.msra.gmra.mrb[6].mxu0 %vm1382_vm3, %v2548_v8  ;;  %v6317_v8 = vpack.c.bf16 %v3204_v6, %v3203_v4 }
 0xadf   : > { %6126 = vmatpush3.xpose.msk.msra.mxu0 %vm1382_vm3, %v2717_v2  ;;  %6127 = vmatprep.mubr.msk.f32.mxu0 %vm7299_vm2, %v7298_v10  ;;  %v3109_v2 = vld [vmem:[%s8110_s20] sm:$0xff]  ;;  %v1282_v11 = vld [vmem:[#allocation6] sm:$0xff] }
 0xae0   : > { %6135 = vmatprep.subr.mxu0 %v7298_v10  ;;  %v6305_v5 = vpack.c.bf16 %v3110_v3, %v3109_v2 }
 0xae1   : > { %v2710_v13 = vpop.f32.mrb[18].mxu1 }
 0xae2   : > { %v2792_v16 = vmul.f32 0.35355338, %v2710_v13  ;;  %v6124_v17 = vpop.f32.mrb[19].mxu1  ;;  %6128 = vmatmul.mubr.msk.f32.vlgmr.msra.gmra.mrb[10].mxu0 %vm1382_vm3, %v2715_v12  ;;  %v3111_v12 = vld [vmem:[%s8110_s20 + $0x10] sm:$0xff]  ;;  %v3112_v13 = vld [vmem:[%s8110_s20 + $0x18] sm:$0xff]  ;;  %s8859_s20 = scalar_lea.vmem [#allocation22], %s8093_s30 }
 0xae3   : > { %6137 = vmatprep.mubr.msk.f32.mxu0 %vm7299_vm2, %v7298_v10  ;;  %v1283_v17 = vld [vmem:[#allocation6 + $0x8] sm:$0xff] }
 0xae4   : > { %v2794_v18 = vadd.f32 %v2792_v16, %v8180_v20  ;;  %v6309_v16 = vpack.c.bf16 %v3112_v13, %v3111_v12 }
 0xae6   : > { %v2796_v19 = vsel %vm1382_vm3, %v2794_v18, -inf }
 0xae7   : > { %2797 = vmax.xlane.f32.xlu1 %v2796_v19 }
 0xb74   : > { %v2798_v21 = vpop.xlane.xlu1 %2797 }
 0xb75   : > { %v2802_v22 = vsub.f32 %v2794_v18, %v2798_v21 }
 0xb77   : > { %v2804_v23 = vmul.f32 1.442695, %v2802_v22 }
 0xb79   : > { %6524 = vpow2.f32 %v2804_v23 }
 0xb83   : > { %v6525_v30 = vpop.eup %6524 }
 0xb84   : > { %v2808_v31 = vsel %vm1382_vm3, %v6525_v30, 0.0 }
 0xbb5   : > { %v2788_v24 = vpop.f32.mrb[10].mxu0 }
 0xbb6   : > { %v2793_v26 = vmul.f32 0.35355338, %v2788_v24  ;;  %v6129_v27 = vpop.f32.mrb[11].mxu0 }
 0xbb7   : > { %v5836_v27 = vld [vmem:[%s8125_s7] ss:$0 sm:$0xff] }
 0xbb8   : > { %v2795_v28 = vadd.f32 %v2793_v26, %v8183_v25 }
 0xbba   : > { %v2799_v29 = vsel %vm1382_vm3, %v2795_v28, -inf }
 0xbbb   : > { %2800 = vmax.xlane.f32.xlu0 %v2799_v29 }
 0xbbf   : > { %2809 = vadd.xlane.f32.xlu0 %v2808_v31 }
 0xbd5   : > { %2821 = vrot.lane.b32.xlu0 %v8155_v14, %s7310_s22 }
 0xc48   : > { %v2801_v20 = vpop.xlane.xlu0 %2800 }
 0xc49   : > { %v2803_v32 = vsub.f32 %v2795_v28, %v2801_v20  ;;  %v5837_v20 = vld [vmem:[%s8127_s21] ss:$0 sm:$0xff] }
 0xc4b   : > { %v2806_v33 = vmul.f32 1.442695, %v2803_v32 }
 0xc4c   : > { %v2810_v34 = vpop.xlane.xlu0 %2809 }
 0xc4d   : > { %6526 = vpow2.f32 %v2806_v33 }
 0xc4e   : > { %6528 = vrcp.f32 %v2810_v34 }
 0xc50   : > { %v2822_v35 = vpop.permute.xlu0 %2821 }
 0xc51   : > { %6131 = vmatpush3.msra.mxu1 %v2822_v35  ;;  %v5841_v35 = vld [vmem:[%s1068_s16] ss:$0 sm:$0xff] }
 0xc52   : > { %6306 = vmatprep.subr.bf16.mxu1 %v6305_v5 }
 0xc57   : > { %v6527_v25 = vpop.eup %6526 }
 0xc58   : > { %v6529_v36 = vpop.eup %6528  ;;  %v2811_v37 = vsel %vm1382_vm3, %v6527_v25, 0.0 }
 0xc59   : > { %v2815_v38 = vmul.f32 %v6529_v36, %v6525_v30  ;;  %2812 = vadd.xlane.f32.xlu1 %v2811_v37 }
 0xc5b   : > { %5829 = vst.msk [vmem:[%s8129_s3 + $0x30] sm:$0xff] %vm1382_vm3, %v2815_v38  ;;  %6133 = vmatmul.mubr.msk.f32.vlgmr.msra.gmra.mrb[20].mxu1 %vm1382_vm3, %v2815_v38 }
 0xc5c   : > { %6308 = vmatpush3.bf16.msra.mxu1 %v6305_v5 }
 0xc5d   : > { %6310 = vmatprep.subr.bf16.mxu1 %v6309_v16 }
 0xc60   : > { %6312 = vmatpush3.bf16.msra.mxu1 %v6309_v16 }
 0xc61   : > { %6167 = vmatprep.subr.mxu1 %v7298_v10 }
 0xc6a   : > { %2897 = vrot.lane.b32.xlu1 %v8159_v15, %s7310_s22  ;;  %s7311_s22 = smov [#allocation28]  }
 0xc6b   : > { %s7140_s26 = sshll.u32 %s7311_s22, 4  ;;  %s7141_s26 = int_to_ptr.vmem [resolvable:$false] %s7140_s26 }
 0xce6   : > { %v2813_v14 = vpop.xlane.xlu1 %2812 }
 0xce7   : > { %6530 = vrcp.f32 %v2813_v14  ;;  %v5838_v14 = vld [vmem:[%s1051_s17] ss:$0 sm:$0xff]  ;;  %s8860_s17 = scalar_lea.vmem [#allocation24], %s8093_s30 }
 0xcea   : > { %v2898_v40 = vpop.permute.xlu1 %2897 }
 0xceb   : > { %6136 = vmatpush3.msra.mxu0 %v2898_v40 }
 0xcec   : > { %6140 = vmatprep.subr.mxu0 %v2973_v39 }
 0xcf1   : > { %v6531_v41 = vpop.eup %6530 }
 0xcf2   : > { %v2817_v42 = vmul.f32 %v6531_v41, %v6527_v25 }
 0xcf4   : > { %5830 = vst.msk [vmem:[%s8129_s3 + $0x38] sm:$0xff] %vm1382_vm3, %v2817_v42  ;;  %6138 = vmatmul.mubr.msk.f32.vlgmr.msra.gmra.mrb[12].mxu0 %vm1382_vm3, %v2817_v42 }
 0xcf5   : > { %6141 = vmatpush3.msra.mxu0 %v2973_v39 }
 0xcf6   : > { %6314 = vmatprep.subr.bf16.mxu0 %v6313_v1 }
 0xd2e   : > { %v2893_v43 = vpop.f32.mrb[20].mxu1 }
 0xd2f   : > { %v6134_v44 = vpop.f32.mrb[21].mxu1  ;;  %6142 = vmatprep.mubr.msk.f32.mxu0 %vm1382_vm3, %v2893_v43 }
 0xdc7   : > { %v2969_v45 = vpop.f32.mrb[12].mxu0 }
 0xdc8   : > { %v6139_v15 = vpop.f32.mrb[13].mxu0  ;;  %6143 = vmatmul.mubr.msk.f32.vlgmr.msra.gmra.mrb[6].mxu0 %vm1382_vm3, %v2969_v45 }
 0xdc9   : > { %6316 = vmatpush3.bf16.msra.mxu0 %v6313_v1  ;;  %6164 = vmatprep.mubr.msk.f32.mxu0 %vm1295_vm1, %v1282_v11  ;;  %v8391_v15 = vld [vmem:[#allocation9 + $0x8] sm:$0xff] }
 0xdca   : > { %6318 = vmatprep.subr.bf16.mxu0 %v6317_v8 }
 0xdcd   : > { %6320 = vmatpush3.bf16.msra.mxu0 %v6317_v8 }
 0xdce   : > { %6177 = vmatprep.subr.mxu0 %v7298_v10 }
 0xdd0   : > { %6165 = vmatmul.mubr.msk.f32.vlgmr.msra.gmra.mrb[14].mxu0 %vm1295_vm1, %v1283_v17 }
 0xdd1   : > { %6179 = vmatprep.mubr.msk.f32.mxu0 %vm7299_vm2, %v7298_v10 }
 0xe9b   : > { %v6144_v47 = vpop.f32.mrb[6].mxu0 }
 0xe9c   : > { %v3065_v48 = vadd.f32 %v6144_v47, %v5835_v46  ;;  %v3046_v49 = vpop.f32.mrb[7].mxu0 }
 0xe9d   : > { %v3064_v50 = vadd.f32 %v5835_v46, %v3046_v49 }
 0xe9e   : > { %v3067_v51 = vadd.f32 %v3065_v48, %v8143_v9 }
 0xe9f   : > { %v3066_v53 = vadd.f32 %v3064_v50, %v8139_v7 }
 0xea0   : > { %v3071_v54 = vsel %vm1295_vm1, %v3067_v51, 0.0 }
 0xea1   : > { %3072 = vadd.xlane.f32.xlu0 %v3071_v54  ;;  %v3068_v55 = vsel %vm1295_vm1, %v3066_v53, 0.0 }
 0xea2   : > { %3069 = vadd.xlane.f32.xlu1 %v3068_v55 }
 0xea3   : > { %v6166_v25 = vpop.f32.mrb[14].mxu0 }
 0xea4   : > { %v8365_v36 = vadd.f32 %v6166_v25, %v5841_v35  ;;  %v3284_v37 = vpop.f32.mrb[15].mxu0 }
 0xea5   : > { %v8367_v38 = vadd.f32 %v5841_v35, %v3284_v37 }
 0xf2e   : > { %v3073_v56 = vpop.xlane.xlu0 %3072 }
 0xf2f   : > { %v3076_v57 = vmul.f32 0.03125, %v3073_v56  ;;  %v3070_v52 = vpop.xlane.xlu1 %3069 }
 0xf30   : > { %v3075_v58 = vmul.f32 0.03125, %v3070_v52 }
 0xf31   : > { %v3078_v59 = vsub.f32 %v3067_v51, %v3076_v57  ;;  %v8397_v51 = vld [vmem:[#allocation9] sm:$0xff] }
 0xf32   : > { %v3077_v60 = vsub.f32 %v3066_v53, %v3075_v58 }
 0xf33   : > { %v3080_v9 = vmul.f32 %v3078_v59, %v3078_v59 }
 0xf34   : > { %v3079_v7 = vmul.f32 %v3077_v60, %v3077_v60 }
 0xf35   : > { %v3084_v61 = vsel %vm1295_vm1, %v3080_v9, 0.0 }
 0xf36   : > { %3085 = vadd.xlane.f32.xlu1 %v3084_v61  ;;  %v3081_v62 = vsel %vm1295_vm1, %v3079_v7, 0.0 }
 0xf37   : > { %3082 = vadd.xlane.f32.xlu0 %v3081_v62 }
 0xf47   : > { %3708 = vrot.lane.b32.xlu1 %v8365_v36, %s7302_s0 }
 0xfc3   : > { %v3086_v18 = vpop.xlane.xlu1 %3085 }
 0xfc4   : > { %v3088_v19 = vmul.f32 0.03125, %v3086_v18  ;;  %v3083_v21 = vpop.xlane.xlu0 %3082 }
 0xfc5   : > { %v3087_v22 = vmul.f32 0.03125, %v3083_v21 }
 0xfc6   : > { %v3090_v23 = vadd.f32 1e-12, %v3088_v19 }
 0xfc7   : > { %v3089_v24 = vadd.f32 1e-12, %v3087_v22  ;;  %v3709_v0 = vpop.permute.xlu1 %3708 }
 0xfc8   : > { %6532 = vrsqrt.f32 %v3090_v23 }
 0xfc9   : > { %6534 = vrsqrt.f32 %v3089_v24 }
 0xfd2   : > { %v6533_v26 = vpop.eup %6532 }
 0xfd3   : > { %v6535_v28 = vpop.eup %6534  ;;  %v3094_v29 = vmul.f32 %v6533_v26, %v3078_v59 }
 0xfd4   : > { %v3093_v30 = vmul.f32 %v6535_v28, %v3077_v60 }
 0xfd5   : > { %v3101_v31 = vmul.f32 %v5836_v27, %v3094_v29 }
 0xfd6   : > { %v3100_v32 = vmul.f32 %v5836_v27, %v3093_v30 }
 0xfd7   : > { %v8355_v34 = vadd.f32 %v5837_v20, %v3101_v31 }
 0xfd8   : > { %v8353_v33 = vadd.f32 %v5837_v20, %v3100_v32 }
 0xfda   : > { %6153 = vmatprep.mubr.msk.f32.mxu1 %vm1295_vm1, %v8353_v33 }
 0xfdb   : > { %6154 = vmatmul.mubr.msk.f32.vlgmr.msra.gmra.mrb[22].mxu1 %vm1295_vm1, %v8355_v34 }
 0xfdc   : > { %6169 = vmatprep.mubr.msk.f32.mxu1 %vm7299_vm2, %v7298_v10  ;;  %6168 = vmatpush3.xpose.msk.msra.mxu1 %vm1382_vm3, %v8367_v38 }
 0xfdd   : > { %6172 = vmatprep.subr.mxu1 %v7298_v10 }
0x10ae   : > { %v6155_v39 = vpop.f32.mrb[22].mxu1 }
0x10af   : > { %v3192_v40 = vpop.f32.mrb[23].mxu1  ;;  %v8384_v42 = vadd.f32 %v6155_v39, %v5838_v14 }
0x10b0   : > { %v8376_v41 = vadd.f32 %v5838_v14, %v3192_v40 }
0x10b2   : > { %6170 = vmatmul.mubr.msk.f32.vlgmr.msra.gmra.mrb[24].mxu1 %vm1382_vm3, %v8376_v41 }
0x10b3   : > { %6173 = vmatpush3.xpose.msk.msra.mxu1 %vm1382_vm3, %v8365_v36  ;;  %6174 = vmatprep.mubr.msk.f32.mxu1 %vm7299_vm2, %v7298_v10 }
0x10b4   : > { %6182 = vmatprep.subr.mxu1 %v7298_v10 }
0x10b6   : > { %6175 = vmatmul.mubr.msk.f32.vlgmr.msra.gmra.mrb[26].mxu1 %vm1382_vm3, %v8384_v42 }
0x10b7   : > { %6184 = vmatprep.mubr.msk.f32.mxu1 %vm7299_vm2, %v7298_v10 }
0x1185   : > { %v3367_v43 = vpop.f32.mrb[24].mxu1 }
0x1186   : > { %v6171_v44 = vpop.f32.mrb[25].mxu1  ;;  %v3447_v50 = vmul.f32 0.35355338, %v3367_v43 }
0x1188   : > { %v3449_v53 = vadd.f32 %v3447_v50, %v8397_v51 }
0x1189   : > { %v3443_v45 = vpop.f32.mrb[26].mxu1 }
0x118a   : > { %v3448_v46 = vmul.f32 0.35355338, %v3443_v45  ;;  %v6176_v47 = vpop.f32.mrb[27].mxu1  ;;  %v3451_v54 = vsel %vm1382_vm3, %v3449_v53, -inf }
0x118c   : > { %v3450_v48 = vadd.f32 %v3448_v46, %v8391_v15 }
0x118e   : > { %v3454_v49 = vsel %vm1382_vm3, %v3450_v48, -inf }
0x118f   : > { %3455 = vmax.xlane.f32.xlu0 %v3454_v49 }
0x11a5   : > { %3551 = vrot.lane.b32.xlu0 %v8365_v36, %s7300_s29 }
0x11c4   : > { %3452 = vmax.xlane.f32.xlu0 %v3451_v54 }
0x11da   : > { %3475 = vrot.lane.b32.xlu0 %v8367_v38, %s7300_s29  ;;  %s5290_s29 = sshll.u32 %s8129_s3, 4  ;;  %s8596_s29 = int_to_ptr.vmem [resolvable:$true] %s5290_s29 }
0x11db   : > { %p7143_p2 = scmp.lt.s32.totalorder %s8596_s29, %s7141_s26 }
0x11de   : > { %3628 = vrot.lane.b32.xlu0 %v8376_v41, %s7302_s0 }
0x121c   : > { %v3456_v55 = vpop.xlane.xlu0 %3455 }
0x121d   : > { %v3458_v56 = vsub.f32 %v3450_v48, %v3456_v55 }
0x121f   : > { %v3461_v57 = vmul.f32 1.442695, %v3458_v56 }
0x1220   : > { %v3552_v52 = vpop.permute.xlu0 %3551 }
0x1221   : > { %6536 = vpow2.f32 %v3461_v57  ;;  %6183 = vmatpush3.msra.mxu1 %v3552_v52 }
0x1222   : > { %6192 = vmatprep.subr.mxu1 %v7298_v10 }
0x122b   : > { %v6537_v58 = vpop.eup %6536 }
0x122c   : > { %v3466_v59 = vsel %vm1382_vm3, %v6537_v58, 0.0 }
0x122d   : > { %3467 = vadd.xlane.f32.xlu1 %v3466_v59 }
0x123e   : > { %3706 = vrot.lane.b32.xlu1 %v8384_v42, %s7302_s0 }
0x1251   : > { %v3453_v60 = vpop.xlane.xlu0 %3452 }
0x1252   : > { %v3457_v9 = vsub.f32 %v3449_v53, %v3453_v60 }
0x1254   : > { %v3459_v7 = vmul.f32 1.442695, %v3457_v9 }
0x1255   : > { %v3476_v61 = vpop.permute.xlu0 %3475 }
0x1256   : > { %6538 = vpow2.f32 %v3459_v7  ;;  %6178 = vmatpush3.msra.mxu0 %v3476_v61 }
0x1257   : > { %6187 = vmatprep.subr.mxu0 %v7298_v10 }
0x1259   : > { %v3629_v12 = vpop.permute.xlu0 %3628 }
0x1260   : > { %v6539_v62 = vpop.eup %6538 }
0x1261   : > { %v3463_v63 = vsel %vm1382_vm3, %v6539_v62, 0.0 }
0x1262   : > { %3464 = vadd.xlane.f32.xlu1 %v3463_v63 }
0x1273   : > { %3630 = vrot.lane.b32.xlu1 %v8367_v38, %s7302_s0 }
0x12ba   : > { %v3468_v1 = vpop.xlane.xlu1 %3467 }
0x12bb   : > { %6540 = vrcp.f32 %v3468_v1  ;;  %v3965_v1 = vld [vmem:[%s8116_s5 + $0x8] sm:$0xff] }
0x12be   : > { %v3707_v4 = vpop.permute.xlu1 %3706 }
0x12c5   : > { %v6541_v2 = vpop.eup %6540 }
0x12c6   : > { %v3472_v3 = vmul.f32 %v6541_v2, %v6537_v58  ;;  %v3627_v2 = vld [vmem:[%s8116_s5] sm:$0xff] }
0x12c8   : > { %3474 = vst.msk [vmem:[%s8131_s8 + $0x8] sm:$0xff] %vm1382_vm3, %v3472_v3  ;;  %6185 = vmatmul.mubr.msk.f32.vlgmr.msra.gmra.mrb[28].mxu1 %vm1382_vm3, %v3472_v3 }
0x12c9   : > { %6193 = vmatpush3.xpose.msk.msra.mxu1 %vm1382_vm3, %v3709_v0  ;;  %6194 = vmatprep.mubr.msk.f32.mxu1 %vm7299_vm2, %v7298_v10 }
0x12ca   : > { %6202 = vmatprep.subr.mxu1 %v7298_v10 }
0x12cc   : > { %6195 = vmatmul.mubr.msk.f32.vlgmr.msra.gmra.mrb[30].mxu1 %vm1382_vm3, %v3707_v4 }
0x12cd   : > { %6204 = vmatprep.mubr.msk.f32.mxu1 %vm7299_vm2, %v7298_v10 }
0x12ef   : > { %v3465_v5 = vpop.xlane.xlu1 %3464 }
0x12f0   : > { %6542 = vrcp.f32 %v3465_v5 }
0x12f3   : > { %v3631_v11 = vpop.permute.xlu1 %3630 }
0x12fa   : > { %v6543_v6 = vpop.eup %6542 }
0x12fb   : > { %v3470_v8 = vmul.f32 %v6543_v6, %v6539_v62 }
0x12fd   : > { %3473 = vst.msk [vmem:[%s8131_s8] sm:$0xff] %vm1382_vm3, %v3470_v8  ;;  %6180 = vmatmul.mubr.msk.f32.vlgmr.msra.gmra.mrb[16].mxu0 %vm1382_vm3, %v3470_v8 }
0x12fe   : > { %6188 = vmatpush3.xpose.msk.msra.mxu0 %vm1382_vm3, %v3631_v11  ;;  %6189 = vmatprep.mubr.msk.f32.mxu0 %vm7299_vm2, %v7298_v10 }
0x12ff   : > { %6197 = vmatprep.subr.mxu0 %v7298_v10 }
0x1301   : > { %6190 = vmatmul.mubr.msk.f32.vlgmr.msra.gmra.mrb[18].mxu0 %vm1382_vm3, %v3629_v12 }
0x1302   : > { %6199 = vmatprep.mubr.msk.f32.mxu0 %vm7299_vm2, %v7298_v10 }
0x139b   : > { %v8433_v13 = vpop.f32.mrb[28].mxu1 }
0x139c   : > { %v6186_v16 = vpop.f32.mrb[29].mxu1 }
0x139f   : > { %v3780_v17 = vpop.f32.mrb[30].mxu1 }
0x13a0   : > { %v3785_v18 = vmul.f32 0.35355338, %v3780_v17  ;;  %v6196_v19 = vpop.f32.mrb[31].mxu1 }
0x13a2   : > { %v3787_v21 = vadd.f32 %v3785_v18, %v8391_v15 }
0x13a4   : > { %v3791_v22 = vsel %vm1382_vm3, %v3787_v21, -inf }
0x13a5   : > { %3792 = vmax.xlane.f32.xlu1 %v3791_v22  ;;  %v4465_v22 = vld [vmem:[%s8116_s5 + $0x10] sm:$0xff] }
0x13b6   : > { %4130 = vrot.lane.b32.xlu1 %v8367_v38, %s7306_s1 }
0x13ba   : > { %4128 = vrot.lane.b32.xlu1 %v8376_v41, %s7306_s1 }
0x13be   : > { %4206 = vrot.lane.b32.xlu1 %v8384_v42, %s7306_s1 }
0x13d0   : > { %v8443_v23 = vpop.f32.mrb[16].mxu0 }
0x13d1   : > { %v6181_v24 = vpop.f32.mrb[17].mxu0 }
0x13d4   : > { %v3702_v26 = vpop.f32.mrb[18].mxu0 }
0x13d5   : > { %v6191_v27 = vpop.f32.mrb[19].mxu0  ;;  %v3784_v32 = vmul.f32 0.35355338, %v3702_v26 }
0x13d7   : > { %v3786_v35 = vadd.f32 %v3784_v32, %v8397_v51 }
0x13d9   : > { %v3788_v25 = vsel %vm1382_vm3, %v3786_v35, -inf }
0x1432   : > { %v3793_v28 = vpop.xlane.xlu1 %3792 }
0x1433   : > { %v3795_v29 = vsub.f32 %v3787_v21, %v3793_v28 }
0x1435   : > { %v3798_v30 = vmul.f32 1.442695, %v3795_v29 }
0x1436   : > { %v4131_v39 = vpop.permute.xlu1 %4130 }
0x1437   : > { %6544 = vpow2.f32 %v3798_v30 }
0x143a   : > { %v4129_v44 = vpop.permute.xlu1 %4128 }
0x1441   : > { %v6545_v31 = vpop.eup %6544 }
0x1442   : > { %v3803_v20 = vsel %vm1382_vm3, %v6545_v31, 0.0 }
0x1443   : > { %3804 = vadd.xlane.f32.xlu0 %v3803_v20 }
0x1459   : > { %3889 = vrot.lane.b32.xlu0 %v8365_v36, %s7303_s27 }
0x145d   : > { %4208 = vrot.lane.b32.xlu0 %v8365_v36, %s7306_s1  ;;  %s8858_s1 = scalar_lea.vmem [#allocation20], %s8093_s30  ;;  %s8862_s30 = sld [smem:[#allocation44_spill]] }
0x1463   : > { %p8865_p4 = scmp.ne.s32.totalorder %s8862_s30, 0 }
0x147c   : > { %3789 = vmax.xlane.f32.xlu0 %v3788_v25 }
0x1492   : > { %3813 = vrot.lane.b32.xlu0 %v8367_v38, %s7303_s27 }
0x1496   : > { %4313 = vrot.lane.b32.xlu0 %v8367_v38, %s8857_s4 }
0x149a   : > { %4551 = vrot.lane.b32.xlu0 %v8367_v38, %s7309_s25 }
0x149e   : > { %4629 = vrot.lane.b32.xlu0 %v8365_v36, %s7309_s25 }
0x14a2   : > { %4549 = vrot.lane.b32.xlu0 %v8376_v41, %s7309_s25 }
0x14a6   : > { %4627 = vrot.lane.b32.xlu0 %v8384_v42, %s7309_s25  ;;  %v4207_v42 = vpop.permute.xlu1 %4206  ;;  %s7136_s25 = scalar_lea.vmem %s8596_s29, 1024 }
0x14a7   : > { %p7137_p7 = scmp.ne.s32.totalorder %s8596_s29, %s7136_s25 }
0x14a9   : > { %p7138_p13 = pnand %p7137_p7, %p8865_p4 }
0x14ab   : > { %p7139_p9 = pneg %p7138_p13 }
0x14d0   : > { %v3805_v37 = vpop.xlane.xlu0 %3804 }
0x14d1   : > { %6546 = vrcp.f32 %v3805_v37 }
0x14d4   : > { %v3890_v14 = vpop.permute.xlu0 %3889 }
0x14d5   : > { %6203 = vmatpush3.msra.mxu1 %v3890_v14 }
0x14d6   : > { %6217 = vmatprep.subr.mxu1 %v7298_v10 }
0x14d8   : > { %v4209_v41 = vpop.permute.xlu0 %4208 }
0x14db   : > { %v6547_v40 = vpop.eup %6546 }
0x14dc   : > { %v3809_v43 = vmul.f32 %v6547_v40, %v6545_v31 }
0x14de   : > { %5855 = vst.msk [vmem:[%s8131_s8 + $0x18] sm:$0xff] %vm1382_vm3, %v3809_v43  ;;  %6205 = vmatmul.mubr.msk.f32.vlgmr.msra.gmra.mrb[32].mxu1 %vm1382_vm3, %v3809_v43 }
0x14df   : > { %6218 = vmatpush3.xpose.msk.msra.mxu1 %vm1382_vm3, %v4131_v39  ;;  %6219 = vmatprep.mubr.msk.f32.mxu1 %vm7299_vm2, %v7298_v10 }
0x14e0   : > { %6222 = vmatprep.subr.mxu1 %v7298_v10 }
0x14e2   : > { %6220 = vmatmul.mubr.msk.f32.vlgmr.msra.gmra.mrb[34].mxu1 %vm1382_vm3, %v4129_v44 }
0x14e3   : > { %6223 = vmatpush3.xpose.msk.msra.mxu1 %vm1382_vm3, %v4209_v41  ;;  %6224 = vmatprep.mubr.msk.f32.mxu1 %vm7299_vm2, %v7298_v10 }
0x14e4   : > { %6232 = vmatprep.subr.mxu1 %v7298_v10 }
0x14e6   : > { %6225 = vmatmul.mubr.msk.f32.vlgmr.msra.gmra.mrb[36].mxu1 %vm1382_vm3, %v4207_v42 }
0x14e7   : > { %6234 = vmatprep.mubr.msk.f32.mxu1 %vm7299_vm2, %v7298_v10 }
0x1509   : > { %v3790_v45 = vpop.xlane.xlu0 %3789 }
0x150a   : > { %v3794_v46 = vsub.f32 %v3786_v35, %v3790_v45 }
0x150c   : > { %v3796_v47 = vmul.f32 1.442695, %v3794_v46 }
0x150d   : > { %v3814_v48 = vpop.permute.xlu0 %3813 }
0x150e   : > { %6548 = vpow2.f32 %v3796_v47  ;;  %6198 = vmatpush3.msra.mxu0 %v3814_v48 }
0x150f   : > { %6207 = vmatprep.subr.mxu0 %v3965_v1 }
0x1511   : > { %v4314_v24 = vpop.permute.xlu0 %4313 }
0x1515   : > { %v4552_v28 = vpop.permute.xlu0 %4551 }
0x1518   : > { %v6549_v49 = vpop.eup %6548 }
0x1519   : > { %v3800_v50 = vsel %vm1382_vm3, %v6549_v49, 0.0  ;;  %v4630_v31 = vpop.permute.xlu0 %4629 }
0x151a   : > { %3801 = vadd.xlane.f32.xlu1 %v3800_v50 }
0x151d   : > { %v4550_v32 = vpop.permute.xlu0 %4549 }
0x1521   : > { %v4628_v39 = vpop.permute.xlu0 %4627 }
0x15a7   : > { %v3802_v53 = vpop.xlane.xlu1 %3801 }
0x15a8   : > { %6550 = vrcp.f32 %v3802_v53 }
0x15b1   : > { %v3961_v54 = vpop.f32.mrb[32].mxu1 }
0x15b2   : > { %v6551_v55 = vpop.eup %6550  ;;  %v6206_v56 = vpop.f32.mrb[33].mxu1 }
0x15b3   : > { %v3807_v57 = vmul.f32 %v6551_v55, %v6549_v49 }
0x15b5   : > { %5854 = vst.msk [vmem:[%s8131_s8 + $0x10] sm:$0xff] %vm1382_vm3, %v3807_v57  ;;  %6200 = vmatmul.mubr.msk.f32.vlgmr.msra.gmra.mrb[20].mxu0 %vm1382_vm3, %v3807_v57  ;;  %v4202_v52 = vpop.f32.mrb[34].mxu1 }
0x15b6   : > { %v4284_v58 = vmul.f32 0.35355338, %v4202_v52  ;;  %v6221_v59 = vpop.f32.mrb[35].mxu1  ;;  %6208 = vmatpush3.msra.mxu0 %v3965_v1 }
0x15b7   : > { %6212 = vmatprep.subr.mxu0 %v3627_v2 }
0x15b8   : > { %v4286_v60 = vadd.f32 %v4284_v58, %v8397_v51 }
0x15b9   : > { %v4280_v9 = vpop.f32.mrb[36].mxu1 }
0x15ba   : > { %v4285_v7 = vmul.f32 0.35355338, %v4280_v9  ;;  %v6226_v61 = vpop.f32.mrb[37].mxu1  ;;  %v4288_v62 = vsel %vm1382_vm3, %v4286_v60, -inf }
0x15bb   : > { %4289 = vmax.xlane.f32.xlu1 %v4288_v62 }
0x15bc   : > { %v4287_v63 = vadd.f32 %v4285_v7, %v8391_v15  ;;  %v4886_v7 = vld [vmem:[%s8116_s5 + $0x18] sm:$0xff] }
0x15be   : > { %v4291_v0 = vsel %vm1382_vm3, %v4287_v63, -inf }
0x15bf   : > { %4292 = vmax.xlane.f32.xlu1 %v4291_v0 }
0x1648   : > { %v4290_v3 = vpop.xlane.xlu1 %4289 }
0x1649   : > { %v4294_v4 = vsub.f32 %v4286_v60, %v4290_v3  ;;  %v5882_v3 = vld [vmem:[%s8858_s1] ss:$0 sm:$0xff] }
0x164b   : > { %v4296_v5 = vmul.f32 1.442695, %v4294_v4 }
0x164c   : > { %v4293_v6 = vpop.xlane.xlu1 %4292 }
0x164d   : > { %6552 = vpow2.f32 %v4296_v5  ;;  %v4295_v8 = vsub.f32 %v4287_v63, %v4293_v6 }
0x164f   : > { %v4298_v11 = vmul.f32 1.442695, %v4295_v8 }
0x1651   : > { %6554 = vpow2.f32 %v4298_v11 }
0x1657   : > { %v6553_v12 = vpop.eup %6552 }
0x1658   : > { %v4300_v16 = vsel %vm1382_vm3, %v6553_v12, 0.0 }
0x1659   : > { %4301 = vadd.xlane.f32.xlu1 %v4300_v16 }
0x165b   : > { %v6555_v17 = vpop.eup %6554 }
0x165c   : > { %v4303_v18 = vsel %vm1382_vm3, %v6555_v17, 0.0 }
0x165d   : > { %4304 = vadd.xlane.f32.xlu1 %v4303_v18 }
0x166e   : > { %4389 = vrot.lane.b32.xlu1 %v8365_v36, %s8857_s4  ;;  %s7142_s4 = scalar_lea.vmem %s7141_s26, 2048 }
0x166f   : > { %p7144_p1 = scmp.lt.s32.totalorder %s7142_s4, %s7136_s25 }
0x1671   : > { %p7145_p8 = por %p7144_p1, %p7143_p2 }
0x1673   : > { %p7146_p10 = pnand %p7145_p8, %p7139_p9 }
0x1688   : > { %v3885_v19 = vpop.f32.mrb[20].mxu0 }
0x1689   : > { %v6201_v21 = vpop.f32.mrb[21].mxu0  ;;  %6209 = vmatprep.mubr.msk.f32.mxu0 %vm1382_vm3, %v3885_v19 }
0x168a   : > { %6210 = vmatmul.mubr.msk.f32.vlgmr.msra.gmra.mrb[22].mxu0 %vm1382_vm3, %v3961_v54 }
0x168b   : > { %6214 = vmatprep.mubr.msk.f32.mxu0 %vm1382_vm3, %v8443_v23  ;;  %6213 = vmatpush3.msra.mxu0 %v3627_v2 }
0x168c   : > { %6227 = vmatprep.subr.mxu0 %v7298_v10 }
0x1692   : > { %6215 = vmatmul.mubr.msk.f32.vlgmr.msra.gmra.mrb[22].mxu0 %vm1382_vm3, %v8433_v13 }
0x1693   : > { %6228 = vmatpush3.msra.mxu0 %v4314_v24  ;;  %6229 = vmatprep.mubr.msk.f32.mxu0 %vm7299_vm2, %v7298_v10 }
0x1694   : > { %6237 = vmatprep.subr.mxu0 %v4465_v22 }
0x16e6   : > { %v4302_v26 = vpop.xlane.xlu1 %4301 }
0x16e7   : > { %6556 = vrcp.f32 %v4302_v26 }
0x16ea   : > { %v4305_v27 = vpop.xlane.xlu1 %4304 }
0x16eb   : > { %6558 = vrcp.f32 %v4305_v27 }
0x16ee   : > { %v4390_v23 = vpop.permute.xlu1 %4389 }
0x16ef   : > { %6233 = vmatpush3.msra.mxu1 %v4390_v23 }
0x16f0   : > { %6242 = vmatprep.subr.mxu1 %v7298_v10 }
0x16f1   : > { %v6557_v29 = vpop.eup %6556 }
0x16f2   : > { %v4307_v30 = vmul.f32 %v6557_v29, %v6553_v12  ;;  %v5022_v29 = vld [vmem:[%s8119_s23 + $0x8] sm:$0xff] }
0x16f4   : > { %5866 = vst.msk [vmem:[%s8131_s8 + $0x20] sm:$0xff] %vm1382_vm3, %v4307_v30  ;;  %6230 = vmatmul.mubr.msk.f32.vlgmr.msra.gmra.mrb[24].mxu0 %vm1382_vm3, %v4307_v30 }
0x16f5   : > { %v6559_v13 = vpop.eup %6558  ;;  %6238 = vmatpush3.msra.mxu0 %v4465_v22 }
0x16f6   : > { %v4309_v20 = vmul.f32 %v6559_v13, %v6555_v17  ;;  %6247 = vmatprep.subr.mxu0 %v7298_v10  ;;  %v5023_v13 = vld [vmem:[%s8119_s23 + $0x10] sm:$0xff] }
0x16f8   : > { %5867 = vst.msk [vmem:[%s8131_s8 + $0x28] sm:$0xff] %vm1382_vm3, %v4309_v20  ;;  %6235 = vmatmul.mubr.msk.f32.vlgmr.msra.gmra.mrb[38].mxu1 %vm1382_vm3, %v4309_v20 }
0x16f9   : > { %6243 = vmatpush3.xpose.msk.msra.mxu1 %vm1382_vm3, %v4552_v28  ;;  %6244 = vmatprep.mubr.msk.f32.mxu1 %vm7299_vm2, %v7298_v10  ;;  %v5021_v28 = vld [vmem:[%s8119_s23] sm:$0xff] }
0x16fa   : > { %6252 = vmatprep.subr.mxu1 %v7298_v10  ;;  %v6321_v30 = vpack.c.bf16 %v5022_v29, %v5021_v28 }
0x16fc   : > { %6245 = vmatmul.mubr.msk.f32.vlgmr.msra.gmra.mrb[40].mxu1 %vm1382_vm3, %v4550_v32  ;;  %v5115_v32 = vld [vmem:[%s8122_s28] sm:$0xff] }
0x16fd   : > { %6254 = vmatprep.mubr.msk.f32.mxu1 %vm7299_vm2, %v7298_v10 }
0x17c7   : > { %v4385_v35 = vpop.f32.mrb[24].mxu0 }
0x17c8   : > { %v6231_v25 = vpop.f32.mrb[25].mxu0  ;;  %6239 = vmatprep.mubr.msk.f32.mxu0 %vm1382_vm3, %v4385_v35  ;;  %v5116_v35 = vld [vmem:[%s8122_s28 + $0x8] sm:$0xff] }
0x17c9   : > { %v5117_v25 = vld [vmem:[%s8122_s28 + $0x10] sm:$0xff] }
0x17cb   : > { %v4461_v37 = vpop.f32.mrb[38].mxu1 }
0x17cc   : > { %v6236_v14 = vpop.f32.mrb[39].mxu1  ;;  %6240 = vmatmul.mubr.msk.f32.vlgmr.msra.gmra.mrb[22].mxu0 %vm1382_vm3, %v4461_v37  ;;  %v6329_v37 = vpack.c.bf16 %v5116_v35, %v5115_v32 }
0x17cd   : > { %6248 = vmatpush3.xpose.msk.msra.mxu0 %vm1382_vm3, %v4630_v31  ;;  %6249 = vmatprep.mubr.msk.f32.mxu0 %vm7299_vm2, %v7298_v10  ;;  %v5024_v31 = vld [vmem:[%s8119_s23 + $0x18] sm:$0xff] }
0x17ce   : > { %6257 = vmatprep.subr.mxu0 %v7298_v10  ;;  %v6325_v20 = vpack.c.bf16 %v5024_v31, %v5023_v13  ;;  %v5118_v14 = vld [vmem:[%s8122_s28 + $0x18] sm:$0xff] }
0x17cf   : > { %v4623_v40 = vpop.f32.mrb[40].mxu1 }
0x17d0   : > { %v4705_v43 = vmul.f32 0.35355338, %v4623_v40  ;;  %v6246_v44 = vpop.f32.mrb[41].mxu1  ;;  %6250 = vmatmul.mubr.msk.f32.vlgmr.msra.gmra.mrb[26].mxu0 %vm1382_vm3, %v4628_v39  ;;  %v6333_v39 = vpack.c.bf16 %v5118_v14, %v5117_v25  ;;  %v5119_v40 = vld [vmem:[%s8122_s28 + $0x20] sm:$0xff] }
0x17d1   : > { %6259 = vmatprep.mubr.msk.f32.mxu0 %vm7299_vm2, %v7298_v10 }
0x17d2   : > { %v4707_v41 = vadd.f32 %v4705_v43, %v8397_v51  ;;  %v5120_v43 = vld [vmem:[%s8122_s28 + $0x28] sm:$0xff] }
0x17d3   : > { %v6337_v44 = vpack.c.bf16 %v5120_v43, %v5119_v40 }
0x17d4   : > { %v4709_v42 = vsel %vm1382_vm3, %v4707_v41, -inf }
0x17d5   : > { %4710 = vmax.xlane.f32.xlu1 %v4709_v42 }
0x1862   : > { %v4711_v45 = vpop.xlane.xlu1 %4710 }
0x1863   : > { %v4715_v46 = vsub.f32 %v4707_v41, %v4711_v45 }
0x1865   : > { %v4717_v47 = vmul.f32 1.442695, %v4715_v46 }
0x1867   : > { %6560 = vpow2.f32 %v4717_v47 }
0x1871   : > { %v6561_v55 = vpop.eup %6560 }
0x1872   : > { %v4721_v10 = vsel %vm1382_vm3, %v6561_v55, 0.0 }
0x18a3   : > { %v4701_v48 = vpop.f32.mrb[26].mxu0 }
0x18a4   : > { %v4706_v49 = vmul.f32 0.35355338, %v4701_v48  ;;  %v6251_v50 = vpop.f32.mrb[27].mxu0 }
0x18a5   : > { %v5883_v50 = vld [vmem:[%s8125_s7 + $0x1] ss:$0 sm:$0xff] }
0x18a6   : > { %v4708_v53 = vadd.f32 %v4706_v49, %v8391_v15 }
0x18a8   : > { %v4712_v54 = vsel %vm1382_vm3, %v4708_v53, -inf }
0x18a9   : > { %4713 = vmax.xlane.f32.xlu0 %v4712_v54 }
0x18ad   : > { %4722 = vadd.xlane.f32.xlu0 %v4721_v10 }
0x18c3   : > { %4734 = vrot.lane.b32.xlu0 %v8367_v38, %s7308_s6 }
0x1936   : > { %v4714_v51 = vpop.xlane.xlu0 %4713 }
0x1937   : > { %v4716_v56 = vsub.f32 %v4708_v53, %v4714_v51  ;;  %v5884_v51 = vld [vmem:[%s8127_s21 + $0x1] ss:$0 sm:$0xff] }
0x1939   : > { %v4719_v57 = vmul.f32 1.442695, %v4716_v56 }
0x193a   : > { %v4723_v52 = vpop.xlane.xlu0 %4722 }
0x193b   : > { %6562 = vpow2.f32 %v4719_v57 }
0x193c   : > { %6564 = vrcp.f32 %v4723_v52 }
0x193e   : > { %v4735_v58 = vpop.permute.xlu0 %4734 }
0x193f   : > { %6253 = vmatpush3.msra.mxu1 %v4735_v58  ;;  %v5121_v58 = vld [vmem:[%s8122_s28 + $0x30] sm:$0xff] }
0x1940   : > { %6322 = vmatprep.subr.bf16.mxu1 %v6321_v30 }
0x1945   : > { %v6563_v15 = vpop.eup %6562 }
0x1946   : > { %v6565_v59 = vpop.eup %6564  ;;  %v4724_v60 = vsel %vm1382_vm3, %v6563_v15, 0.0 }
0x1947   : > { %v4728_v9 = vmul.f32 %v6565_v59, %v6561_v55  ;;  %4725 = vadd.xlane.f32.xlu1 %v4724_v60  ;;  %v5885_v60 = vld [vmem:[%s8859_s20] ss:$0 sm:$0xff] }
0x1949   : > { %5876 = vst.msk [vmem:[%s8131_s8 + $0x30] sm:$0xff] %vm1382_vm3, %v4728_v9  ;;  %6255 = vmatmul.mubr.msk.f32.vlgmr.msra.gmra.mrb[42].mxu1 %vm1382_vm3, %v4728_v9 }
0x194a   : > { %6324 = vmatpush3.bf16.msra.mxu1 %v6321_v30 }
0x194b   : > { %6326 = vmatprep.subr.bf16.mxu1 %v6325_v20 }
0x194e   : > { %6328 = vmatpush3.bf16.msra.mxu1 %v6325_v20 }
0x1958   : > { %4810 = vrot.lane.b32.xlu1 %v8365_v36, %s7308_s6  ;;  %s8863_s6 = sld [smem:[#allocation61_spill]] }
0x19d4   : > { %v4726_v38 = vpop.xlane.xlu1 %4725 }
0x19d5   : > { %6566 = vrcp.f32 %v4726_v38 }
0x19d8   : > { %v4811_v61 = vpop.permute.xlu1 %4810 }
0x19d9   : > { %6258 = vmatpush3.msra.mxu0 %v4811_v61 }
0x19da   : > { %6262 = vmatprep.subr.mxu0 %v4886_v7 }
0x19df   : > { %v6567_v62 = vpop.eup %6566 }
0x19e0   : > { %v4730_v63 = vmul.f32 %v6567_v62, %v6563_v15  ;;  %v5122_v15 = vld [vmem:[%s8122_s28 + $0x38] sm:$0xff]  ;;  %s8861_s28 = sld [smem:[#allocation40_spill]] }
0x19e1   : > { %v6341_v59 = vpack.c.bf16 %v5122_v15, %v5121_v58 }
0x19e2   : > { %5877 = vst.msk [vmem:[%s8131_s8 + $0x38] sm:$0xff] %vm1382_vm3, %v4730_v63  ;;  %6260 = vmatmul.mubr.msk.f32.vlgmr.msra.gmra.mrb[28].mxu0 %vm1382_vm3, %v4730_v63 }
0x19e3   : > { %6263 = vmatpush3.msra.mxu0 %v4886_v7 }
0x19e4   : > { %6330 = vmatprep.subr.bf16.mxu0 %v6329_v37 }
0x19e6   : > { %s5910_s2 = sshll.u32 %s8861_s28, 10  ;;  %s8864_s0 = sand.u32 1, %s8861_s28  }
0x19e7   : > { %s8593_s23 = scalar_lea.hbm %s8863_s6, %s5910_s2  ;;  %s8600_s27 = scalar_lea.sflag [#allocation29], %s8864_s0 }
0x1a1c   : > { %v4806_v0 = vpop.f32.mrb[42].mxu1 }
0x1a1d   : > { %v6256_v1 = vpop.f32.mrb[43].mxu1  ;;  %6264 = vmatprep.mubr.msk.f32.mxu0 %vm1382_vm3, %v4806_v0  ;;  %v5888_v0 = vld [vmem:[%s8860_s17] ss:$0 sm:$0xff] }
0x1ab5   : > { %v4882_v2 = vpop.f32.mrb[28].mxu0 }
0x1ab6   : > { %v6261_v36 = vpop.f32.mrb[29].mxu0  ;;  %6265 = vmatmul.mubr.msk.f32.vlgmr.msra.gmra.mrb[22].mxu0 %vm1382_vm3, %v4882_v2 }
0x1ab7   : > { %6332 = vmatpush3.bf16.msra.mxu0 %v6329_v37 }
0x1ab8   : > { %6334 = vmatprep.subr.bf16.mxu0 %v6333_v39 }
0x1abb   : > { %6336 = vmatpush3.bf16.msra.mxu0 %v6333_v39 }
0x1abc   : > { %6338 = vmatprep.subr.bf16.mxu0 %v6337_v44 }
0x1abf   : > { %6340 = vmatpush3.bf16.msra.mxu0 %v6337_v44 }
0x1ac0   : > { %6342 = vmatprep.subr.bf16.mxu0 %v6341_v59 }
0x1ac3   : > { %6344 = vmatpush3.bf16.msra.mxu0 %v6341_v59 }
0x1b89   : > { %v6266_v4 = vpop.f32.mrb[22].mxu0 }
0x1b8a   : > { %v4978_v5 = vadd.f32 %v6266_v4, %v5882_v3  ;;  %v4959_v6 = vpop.f32.mrb[23].mxu0 }
0x1b8b   : > { %v4977_v8 = vadd.f32 %v5882_v3, %v4959_v6 }
0x1b8c   : > { %v4980_v11 = vadd.f32 %v4978_v5, %v8355_v34 }
0x1b8d   : > { %v4979_v12 = vadd.f32 %v4977_v8, %v8353_v33 }
0x1b8e   : > { %v4984_v16 = vsel %vm1295_vm1, %v4980_v11, 0.0 }
0x1b8f   : > { %4985 = vadd.xlane.f32.xlu0 %v4984_v16  ;;  %v4981_v17 = vsel %vm1295_vm1, %v4979_v12, 0.0 }
0x1b90   : > { %4982 = vadd.xlane.f32.xlu1 %v4981_v17 }
0x1c1c   : > { %v4986_v18 = vpop.xlane.xlu0 %4985 }
0x1c1d   : > { %v4988_v19 = vmul.f32 0.03125, %v4986_v18  ;;  %v4983_v21 = vpop.xlane.xlu1 %4982 }
0x1c1e   : > { %v4987_v22 = vmul.f32 0.03125, %v4983_v21 }
0x1c1f   : > { %v4990_v24 = vsub.f32 %v4980_v11, %v4988_v19 }
0x1c20   : > { %v4989_v26 = vsub.f32 %v4979_v12, %v4987_v22 }
0x1c21   : > { %v4992_v27 = vmul.f32 %v4990_v24, %v4990_v24 }
0x1c22   : > { %v4991_v34 = vmul.f32 %v4989_v26, %v4989_v26 }
0x1c23   : > { %v4996_v33 = vsel %vm1295_vm1, %v4992_v27, 0.0 }
0x1c24   : > { %4997 = vadd.xlane.f32.xlu1 %v4996_v33  ;;  %v4993_v23 = vsel %vm1295_vm1, %v4991_v34, 0.0 }
0x1c25   : > { %4994 = vadd.xlane.f32.xlu0 %v4993_v23 }
0x1cb1   : > { %v4998_v41 = vpop.xlane.xlu1 %4997 }
0x1cb2   : > { %v5000_v42 = vmul.f32 0.03125, %v4998_v41  ;;  %v4995_v45 = vpop.xlane.xlu0 %4994 }
0x1cb3   : > { %v4999_v46 = vmul.f32 0.03125, %v4995_v45 }
0x1cb4   : > { %v5002_v47 = vadd.f32 1e-12, %v5000_v42 }
0x1cb5   : > { %v5001_v48 = vadd.f32 1e-12, %v4999_v46 }
0x1cb6   : > { %6568 = vrsqrt.f32 %v5002_v47 }
0x1cb7   : > { %6570 = vrsqrt.f32 %v5001_v48 }
0x1cc0   : > { %v6569_v49 = vpop.eup %6568 }
0x1cc1   : > { %v6571_v53 = vpop.eup %6570  ;;  %v5006_v54 = vmul.f32 %v6569_v49, %v4990_v24 }
0x1cc2   : > { %v5005_v55 = vmul.f32 %v6571_v53, %v4989_v26 }
0x1cc3   : > { %v5013_v10 = vmul.f32 %v5883_v50, %v5006_v54 }
0x1cc4   : > { %v5012_v56 = vmul.f32 %v5883_v50, %v5005_v55 }
0x1cc5   : > { %v5020_v52 = vadd.f32 %v5884_v51, %v5013_v10 }
0x1cc6   : > { %v5019_v57 = vadd.f32 %v5884_v51, %v5012_v56 }
0x1cc8   : > { %6275 = vmatprep.mubr.msk.f32.mxu1 %vm1295_vm1, %v5019_v57 }
0x1cc9   : > { %6276 = vmatmul.mubr.msk.f32.vlgmr.msra.gmra.mrb[44].mxu1 %vm1295_vm1, %v5020_v52 }
0x1d9c   : > { %v6277_v9 = vpop.f32.mrb[44].mxu1 }
0x1d9d   : > { %v5110_v38 = vadd.f32 %v6277_v9, %v5885_v60  ;;  %v5104_v7 = vpop.f32.mrb[45].mxu1 }
0x1d9e   : > { %v5105_v61 = vadd.f32 %v5885_v60, %v5104_v7 }
0x1d9f   : > { %v5114_v63 = vmax.f32 %v5110_v38, 0.0 }
0x1da0   : > { %v5113_v62 = vmax.f32 %v5105_v61, 0.0 }
0x1da2   : > { %6294 = vmatprep.mubr.msk.f32.mxu0 %vm5130_vm4, %v5113_v62 }
0x1da3   : > { %6295 = vmatmul.mubr.msk.f32.vlgmr.msra.gmra.mrb[30].mxu0 %vm5130_vm4, %v5114_v63 }
0x1e76   : > { %v6296_v1 = vpop.f32.mrb[30].mxu0 }
0x1e77   : > { %v5209_v2 = vadd.f32 %v6296_v1, %v5888_v0  ;;  %v5203_v36 = vpop.f32.mrb[31].mxu0 }
0x1e78   : > { %v5204_v3 = vadd.f32 %v5888_v0, %v5203_v36 }
0x1e79   : > { %v5213_v4 = vadd.f32 %v5209_v2, %v5020_v52 }
0x1e7a   : > { %v5212_v5 = vadd.f32 %v5204_v3, %v5019_v57 }
0x1e7b   : > { %v5217_v6 = vsel %vm1295_vm1, %v5213_v4, 0.0 }
0x1e7c   : > { %5218 = vadd.xlane.f32.xlu1 %v5217_v6  ;;  %v5214_v8 = vsel %vm1295_vm1, %v5212_v5, 0.0 }
0x1e7d   : > { %5215 = vadd.xlane.f32.xlu0 %v5214_v8 }
0x1f09   : > { %v5219_v11 = vpop.xlane.xlu1 %5218 }
0x1f0a   : > { %v5221_v12 = vmul.f32 0.03125, %v5219_v11  ;;  %v5216_v16 = vpop.xlane.xlu0 %5215 }
0x1f0b   : > { %v5220_v17 = vmul.f32 0.03125, %v5216_v16 }
0x1f0c   : > { %v8577_v18 = vsub.f32 %v5213_v4, %v5221_v12 }
0x1f0d   : > { %v8579_v19 = vsub.f32 %v5212_v5, %v5220_v17 }
0x1f0e   : > { %v5225_v21 = vmul.f32 %v8577_v18, %v8577_v18 }
0x1f0f   : > { %v5224_v22 = vmul.f32 %v8579_v19, %v8579_v19 }
0x1f10   : > { %v5229_v24 = vsel %vm1295_vm1, %v5225_v21, 0.0 }
0x1f11   : > { %5230 = vadd.xlane.f32.xlu1 %v5229_v24  ;;  %v5226_v26 = vsel %vm1295_vm1, %v5224_v22, 0.0 }
0x1f12   : > { %5227 = vadd.xlane.f32.xlu0 %v5226_v26 }
0x1f13   : > { %7149 = shalt.err (!%p7146_p10)
}
0x1f14   : > { %s7150_s3 = scalar_lea.hbm %s8593_s23, 1024  ;;  %s7154_s17 = scalar_lea.hbm %s8863_s6, 2048 }
0x1f15   : > { %p7151_p12 = scmp.ne.s32.totalorder %s8593_s23, %s7150_s3  ;;  %p7155_p3 = scmp.lt.u32.totalorder %s8593_s23, %s8863_s6 }
0x1f16   : > { %p7156_p0 = scmp.lt.u32.totalorder %s7154_s17, %s7150_s3  ;;  %p7158_p7 = scmp.lt.u32.totalorder %s7150_s3, %s8593_s23 }
0x1f17   : > { %p7152_p5 = pnand %p7151_p12, %p8865_p4 }
0x1f18   : > { %p7157_p11 = por %p7156_p0, %p7155_p3 }
0x1f19   : > { %p7153_p6 = pneg %p7152_p5 }
0x1f1a   : > { %p7159_p13 = por %p7158_p7, %p7157_p11 }
0x1f1c   : > { %p7160_p9 = pnand %p7159_p13, %p7153_p6 }
0x1f1e   : > { %7163 = shalt.err (!%p7160_p9)
}
0x1f1f   : > { %s7312_s0 = smov 128   ;;  %s7313_s25 = smov 8  }
0x1f20   : > { %6407 = dma.vmem_to_hbm [thread:$0]  (%p8865_p4), %s8596_s29, 1024, %s8593_s23, %s8600_s27, %s7312_s0, %s7312_s0, %s7313_s25  }
0x1f21   : > { %s8866_s4 = sld [smem:[#allocation62_spill]]  ;;  %s5306_s1 = sshll.u32 %s8131_s8, 4  ;;  %s8635_s1 = int_to_ptr.vmem [resolvable:$true] %s5306_s1 }
0x1f22   : > { %s7164_s20 = scalar_lea.vmem %s8635_s1, 1024  ;;  %s7314_s17 = smov [#allocation30]  }
0x1f23   : > { %p7165_p2 = scmp.ne.s32.totalorder %s8635_s1, %s7164_s20  ;;  %s7168_s16 = sshll.u32 %s7314_s17, 4  ;;  %s7169_s16 = int_to_ptr.vmem [resolvable:$false] %s7168_s16 }
0x1f24   : > { %s7170_s23 = scalar_lea.vmem %s7169_s16, 2048  ;;  %p7171_p10 = scmp.lt.s32.totalorder %s8635_s1, %s7169_s16 }
0x1f25   : > { %p7166_p1 = pnand %p7165_p2, %p8865_p4  ;;  %p7172_p12 = scmp.lt.s32.totalorder %s7170_s23, %s7164_s20 }
0x1f27   : > { %s8632_s3 = scalar_lea.hbm %s8866_s4, %s5910_s2  ;;  %p7167_p8 = pneg %p7166_p1 }
0x1f28   : > { %p7173_p5 = por %p7172_p12, %p7171_p10 }
0x1f2a   : > { %p7174_p6 = pnand %p7173_p5, %p7167_p8 }
0x1f2c   : > { %7177 = shalt.err (!%p7174_p6)
}
0x1f2d   : > { %s7178_s8 = scalar_lea.hbm %s8632_s3, 1024  ;;  %s7182_s5 = scalar_lea.hbm %s8866_s4, 2048 }
0x1f2e   : > { %p7179_p3 = scmp.ne.s32.totalorder %s8632_s3, %s7178_s8  ;;  %p7183_p7 = scmp.lt.u32.totalorder %s8632_s3, %s8866_s4 }
0x1f2f   : > { %p7184_p13 = scmp.lt.u32.totalorder %s7182_s5, %s7178_s8  ;;  %p7186_p2 = scmp.lt.u32.totalorder %s7178_s8, %s8632_s3 }
0x1f30   : > { %p7180_p0 = pnand %p7179_p3, %p8865_p4 }
0x1f31   : > { %p7185_p9 = por %p7184_p13, %p7183_p7 }
0x1f32   : > { %p7181_p11 = pneg %p7180_p0 }
0x1f33   : > { %p7187_p1 = por %p7186_p2, %p7185_p9 }
0x1f35   : > { %p7188_p8 = pnand %p7187_p1, %p7181_p11 }
0x1f37   : > { %7191 = shalt.err (!%p7188_p8)
}
0x1f38   : > { %6408 = dma.vmem_to_hbm [thread:$0]  (%p8865_p4), %s8635_s1, 1024, %s8632_s3, %s8600_s27, %s7312_s0, %s7312_s0, %s7313_s25  }
0x1f39   : > { %v5891_v13 = vld [vmem:[%s8125_s7 + $0x2] ss:$0 sm:$0xff]  ;;  %v5892_v35 = vld [vmem:[%s8127_s21 + $0x2] ss:$0 sm:$0xff]  ;;  %s7315_s30 = smov [#allocation27]   ;;  %p8867_p10 = scmp.eq.s32.totalorder %s8861_s28, 1 }
0x1f3a   : > { %s5274_s27 = sshll.u32 %s7315_s30, 4  ;;  %s5275_s27 = int_to_ptr.vmem [resolvable:$true] %s5274_s27 }
0x1f3b   : > { %s7192_s7 = scalar_lea.vmem %s5275_s27, 256  ;;  %p7199_p6 = scmp.lt.s32.totalorder %s5275_s27, %s5275_s27 }
0x1f3c   : > { %p7193_p4 = scmp.ne.s32.totalorder %s5275_s27, %s7192_s7  ;;  %p7200_p3 = scmp.lt.s32.totalorder %s7192_s7, %s7192_s7 }
0x1f3e   : > { %p7194_p12 = pnand %p7193_p4, %p8867_p10  ;;  %p7201_p0 = por %p7200_p3, %p7199_p6 }
0x1f40   : > { %p7195_p5 = pneg %p7194_p12 }
0x1f42   : > { %p7202_p11 = pnand %p7201_p0, %p7195_p5 }
0x1f9e   : > { %v5231_v27 = vpop.xlane.xlu1 %5230 }
0x1f9f   : > { %v5233_v34 = vmul.f32 0.03125, %v5231_v27  ;;  %v5228_v33 = vpop.xlane.xlu0 %5227 }
0x1fa0   : > { %v5232_v23 = vmul.f32 0.03125, %v5228_v33 }
0x1fa1   : > { %v5235_v28 = vadd.f32 1e-12, %v5233_v34 }
0x1fa2   : > { %v5234_v29 = vadd.f32 1e-12, %v5232_v23 }
0x1fa3   : > { %6572 = vrsqrt.f32 %v5235_v28 }
0x1fa4   : > { %6574 = vrsqrt.f32 %v5234_v29 }
0x1fad   : > { %v6573_v30 = vpop.eup %6572 }
0x1fae   : > { %v6575_v31 = vpop.eup %6574  ;;  %v5239_v20 = vmul.f32 %v6573_v30, %v8577_v18 }
0x1faf   : > { %v5238_v32 = vmul.f32 %v6575_v31, %v8579_v19 }
0x1fb0   : > { %v5246_v25 = vmul.f32 %v5891_v13, %v5239_v20 }
0x1fb1   : > { %v5245_v37 = vmul.f32 %v5891_v13, %v5238_v32 }
0x1fb2   : > { %v5253_v14 = vadd.f32 %v5892_v35, %v5246_v25 }
0x1fb3   : > { %v5252_v39 = vadd.f32 %v5892_v35, %v5245_v37 }
0x1fb4   : > { %5255 = vst.msk [vmem:[#allocation2 + $0x8] sm:$0xff] %vm1295_vm1, %v5253_v14  ;;  %5257 = vst.msk [vmem:[#allocation27 + $0x8] sm:$0xff] %vm1295_vm1, %v5253_v14 }
0x1fb5   : > { %5254 = vst.msk [vmem:[#allocation2] sm:$0xff] %vm1295_vm1, %v5252_v39  ;;  %5256 = vst.msk [vmem:[#allocation27] sm:$0xff] %vm1295_vm1, %v5252_v39 }
0x1fb6   : > { %7205 = shalt.err (!%p7202_p11)
}
0x1fb7   : > { %s8868_s1 = sld [smem:[#allocation60_spill]]  ;;  %p8869_p13 = pmov %p8867_p10 }
0x1fbd   : > { %s7206_s20 = scalar_lea.hbm %s8868_s1, 256 }
0x1fbe   : > { %p7207_p7 = scmp.ne.s32.totalorder %s8868_s1, %s7206_s20  ;;  %p7212_p1 = scmp.lt.u32.totalorder %s7206_s20, %s8868_s1 }
0x1fc0   : > { %p7208_p9 = pnand %p7207_p7, %p8869_p13 }
0x1fc2   : > { %p7209_p2 = pneg %p7208_p9 }
0x1fc4   : > { %p7214_p8 = pnand %p7212_p1, %p7209_p2 }
0x1fc6   : > { %7217 = shalt.err (!%p7214_p8)
}
0x1fc7   : > { %p8870_p4 = pmov %p8867_p10 }
0x1fc9   : > { %6406 = dma.vmem_to_hbm [thread:$0]  (%p8870_p4), %s5275_s27, 256, %s8868_s1, [#allocation5], %s7312_s0, %s7312_s0, %s7313_s25  }
0x1fca   : > { %p8871_p10 = pmov %p8870_p4 }
0x1fcb   : > { %p8872_p12 = pmov %p8870_p4 }
0x1fcc   : > { %7251 = dma.done.wait (%p8871_p10), [#allocation5], 256  }
0x1fcd   : > { %7253 = vsyncadd (%p8872_p12), [#allocation5], 4294967040 }
0x1fce PF: > { %s8873_s5 = sld [smem:[#allocation39_spill]]  ;;  %s8875_s26 = sld [smem:[#allocation45_spill]] }
0x1fd4   : > { %s8874_s22 = sadd.s32 4294967294, %s8873_s5   ;;  %p8876_p5 = scmp.ne.s32.totalorder %s8875_s26, 0 }
0x1fd5   : > { %s5325_s30 = sand.u32 1, %s8874_s22   ;;  %p8877_p6 = scmp.ge.s32.totalorder %s8873_s5, 2 }
0x1fd6   : > { %s5326_s7 = scalar_lea.sflag [#allocation29], %s5325_s30 }
0x1fd7   : > { %p6427_p3 = pnand %p8877_p6, %p8876_p5 }
0x1fd9   : > { %7255 = dma.done.wait (!%p6427_p3), %s5326_s7, 2048  }
0x1fda   : > { %7257 = vsyncadd (!%p6427_p3), %s5326_s7, 4294965248  ;;  %s8878_s30 = sld [smem:[#allocation41_spill]]  ;;  %s8879_s3 = sld [smem:[#allocation37_spill]] }
0x1fdb   : > { %s8880_s28 = sld [smem:[#allocation38_spill]]  ;;  %s8881_s29 = sld [smem:[#allocation42_spill]] }
0x1fe0   : > { %p37_p0 = scmp.ge.s32.totalorder %s8878_s30, 4  }
0x1fe2   :  { %39 = sbr.rel (!%p37_p0) target bundleno = 24 (0x18), region = 359 }
0x1fe9   :  { %5340 = vsyncpa [#allocation4], 1 }
0x1fea   :  { %5342 = vsyncpa [#allocation4 + $0x1], 1 }
0x1feb   :  { %5343 = vsyncpa [#allocation7], 1 }
0x1fec   :  { %5344 = vsyncpa [#allocation10], 1 }
0x1fed   :  { %5345 = vsyncpa [#allocation5], 1 }
0x1fee   :  { %5347 = vsyncpa [#allocation5 + $0x1], 1 }
0x1fef   :  { %5348 = vsyncpa [#allocation29], 1 }
0x1ff0   :  { %5350 = vsyncpa [#allocation29 + $0x1], 1 }

</bundles_post_ra>
